<compile_context>
chip_gen: v7x
topology: tpu7x:2x2x1
jax: 0.10.0
libtpu: 0.0.40
codegen_flags: <defaults>
</compile_context>

<pallas_src>
import jax
import jax.numpy as jnp
from jax import lax
from jax.experimental import pallas as pl
from jax.experimental.pallas import tpu as pltpu

# ----------------------- model hyper-parameters (small) -----------------------
EMB_DIM = 32
HID_DIM = 32
N_LAYERS = 2          # kernel below is written for exactly 2 layers
INPUT_DIM = 13        # len(en_vocab)  (synthetic)
OUTPUT_DIM = 11       # len(ye_vocab)  (synthetic)
SRC_LEN = 7
TRG_LEN = 6
BATCH = 2
TEACHER_FORCING_RATIO = 0.5

B_PAD = 8             # pad batch to the f32 sublane minimum
V_PAD = 128           # pad output vocab to full lane width (lane-dense store)
NEG_INF = -1e9        # bias for padded vocab lanes so argmax ignores them


# ------------------------------ fused Pallas kernel ----------------------------
def _seq2seq_kernel(tf_ref,                       # SMEM (T,)       int32 teacher-force flags
                    src_emb_ref,                  # (S, Bp, E)      f32   embedded source
                    trg_ref,                      # (T, Bp, 1)      int32 target tokens
                    ew0_ih_ref, ew0_hh_ref, eb0_ref,   # enc L0: (E,4H), (H,4H), (1,4H)
                    ew1_ih_ref, ew1_hh_ref, eb1_ref,   # enc L1: (H,4H), (H,4H), (1,4H)
                    dtab_ref, dw0_hh_ref, db0_ref,     # dec L0: (Vp,4H) emb⊗W_ih, (H,4H), (1,4H)
                    dw1_ih_ref, dw1_hh_ref, db1_ref,   # dec L1: (H,4H), (H,4H), (1,4H)
                    fcw_ref, fcb_ref,             # fc_out: (H, Vp), (1, Vp)
                    out_ref,                      # (T, Bp, Vp) f32 logits
                    xg_ref):                      # VMEM scratch (S, Bp, 4H)
    H = HID_DIM
    S = src_emb_ref.shape[0]
    T = out_ref.shape[0]
    Bp = src_emb_ref.shape[1]
    E = src_emb_ref.shape[2]
    Vp = out_ref.shape[2]

    def lstm_tail(gates, c):
        # gate columns pre-ordered [i, f, o, g] at init -> 2 EUP pushes (+1 for c tanh)
        ifo = jax.nn.sigmoid(gates[:, :3 * H])
        g = jnp.tanh(gates[:, 3 * H:])
        i = ifo[:, 0 * H:1 * H]
        f = ifo[:, 1 * H:2 * H]
        o = ifo[:, 2 * H:3 * H]
        c_new = f * c + i * g
        h_new = o * jnp.tanh(c_new)
        return h_new, c_new

    zeros = jnp.zeros((Bp, H), jnp.float32)

    # ------------------------------- encoder ---------------------------------
    # Layer-0 input projection for ALL source steps in one batched MXU dot.
    xg_ref[...] = jnp.dot(
        src_emb_ref[...].reshape(S * Bp, E), ew0_ih_ref[...],
        preferred_element_type=jnp.float32).reshape(S, Bp, 4 * H)

    # Hoist loop-resident weights / biases (JAX does not CSE broadcast_in_dim).
    ew0_hh = ew0_hh_ref[...]
    ew1_ih = ew1_ih_ref[...]
    ew1_hh = ew1_hh_ref[...]
    eb0 = jnp.broadcast_to(eb0_ref[...], (Bp, 4 * H))
    eb1 = jnp.broadcast_to(eb1_ref[...], (Bp, 4 * H))

    def enc_body(t, carry):
        h0, c0, h1, c1 = carry
        g0 = (xg_ref[t]
              + jnp.dot(h0, ew0_hh, preferred_element_type=jnp.float32) + eb0)
        h0, c0 = lstm_tail(g0, c0)
        # inter-layer dropout == identity (eval mode)
        g1 = (jnp.dot(h0, ew1_ih, preferred_element_type=jnp.float32)
              + jnp.dot(h1, ew1_hh, preferred_element_type=jnp.float32) + eb1)
        h1, c1 = lstm_tail(g1, c1)
        return (h0, c0, h1, c1)

    h0, c0, h1, c1 = lax.fori_loop(0, S, enc_body,
                                   (zeros, zeros, zeros, zeros), unroll=True)

    # ------------------------------- decoder ---------------------------------
    out_ref[0] = jnp.zeros((Bp, Vp), jnp.float32)   # row 0 of `outputs` stays zero

    dw0_hh = dw0_hh_ref[...]
    dw1_ih = dw1_ih_ref[...]
    dw1_hh = dw1_hh_ref[...]
    db0 = jnp.broadcast_to(db0_ref[...], (Bp, 4 * H))
    db1 = jnp.broadcast_to(db1_ref[...], (Bp, 4 * H))
    fcw = fcw_ref[...]
    fcb = jnp.broadcast_to(fcb_ref[...], (Bp, Vp))
    lane_ids = lax.broadcasted_iota(jnp.int32, (Bp, Vp), 1)

    inp = trg_ref[0]                                # (Bp, 1) int32, input = trg[0]

    def dec_body(t, carry):
        inp, h0, c0, h1, c1 = carry
        # embedding + layer-0 input projection fused: one (Bp,Vp)x(Vp,4H) MXU dot
        one_hot = (lane_ids == inp).astype(jnp.float32)                    # (Bp, Vp)
        g0 = (jnp.dot(one_hot, dtab_ref[...], preferred_element_type=jnp.float32)
              + jnp.dot(h0, dw0_hh, preferred_element_type=jnp.float32) + db0)
        h0, c0 = lstm_tail(g0, c0)
        g1 = (jnp.dot(h0, dw1_ih, preferred_element_type=jnp.float32)
              + jnp.dot(h1, dw1_hh, preferred_element_type=jnp.float32) + db1)
        h1, c1 = lstm_tail(g1, c1)
        logits = jnp.dot(h1, fcw, preferred_element_type=jnp.float32) + fcb  # (Bp, Vp)
        out_ref[t] = logits                         # lane-dense (8,128) store, in VMEM

        trg_t = trg_ref[t]                          # (Bp, 1) int32

        def _greedy():
            # first-max argmax; padded lanes carry -1e9 bias so they never win
            m = jnp.max(logits, axis=1, keepdims=True)
            return jnp.min(jnp.where(logits == m, lane_ids, Vp),
                           axis=1, keepdims=True).astype(jnp.int32)

        def _teacher():
            return trg_t

        # Skip the XLU reductions at runtime on teacher-forced steps.
        inp_next = lax.cond(tf_ref[t] == 1, _teacher, _greedy)
        return (inp_next, h0, c0, h1, c1)

    lax.fori_loop(1, T, dec_body, (inp, h0, c0, h1, c1), unroll=True)


def _seq2seq_pallas(tf_flags, src_emb, trg_p, params):
    return pl.pallas_call(
        _seq2seq_kernel,
        out_shape=jax.ShapeDtypeStruct((TRG_LEN, B_PAD, V_PAD), jnp.float32),
        in_specs=[pl.BlockSpec(memory_space=pltpu.MemorySpace.SMEM)]
                 + [pl.BlockSpec(memory_space=pltpu.MemorySpace.VMEM)] * 16,
        out_specs=pl.BlockSpec(memory_space=pltpu.MemorySpace.VMEM),
        scratch_shapes=[pltpu.VMEM((SRC_LEN, B_PAD, 4 * HID_DIM), jnp.float32)],
    )(tf_flags, src_emb, trg_p,
      params["ew0_ih"], params["ew0_hh"], params["eb0"],
      params["ew1_ih"], params["ew1_hh"], params["eb1"],
      params["dec_ihtab"], params["dw0_hh"], params["db0"],
      params["dw1_ih"], params["dw1_hh"], params["db1"],
      params["fc_w_pad"], params["fc_b_pad"])


# ------------------------------ parameter init --------------------------------
def init_params(key):
    ks = list(jax.random.split(key, 20))
    k_iter = iter(ks)
    bound = HID_DIM ** -0.5
    H = HID_DIM

    def uni(shape):
        return jax.random.uniform(next(k_iter), shape, jnp.float32, -bound, bound)

    # permutation taking PyTorch gate row order [i, f, g, o] -> [i, f, o, g]
    perm = jnp.concatenate([jnp.arange(0, 2 * H),
                            jnp.arange(3 * H, 4 * H),
                            jnp.arange(2 * H, 3 * H)])

    def lstm_layer(in_dim):
        # PyTorch: weight_ih (4H, in), weight_hh (4H, H), bias_ih, bias_hh (4H,)
        w_ih = uni((4 * H, in_dim))
        w_hh = uni((4 * H, H))
        b_ih = uni((4 * H,))
        b_hh = uni((4 * H,))
        w_ih = w_ih[perm]
        w_hh = w_hh[perm]
        b = (b_ih + b_hh)[perm].reshape(1, 4 * H)
        return w_ih.T, w_hh.T, b                     # (in,4H), (H,4H), (1,4H)

    ew0_ih, ew0_hh, eb0 = lstm_layer(EMB_DIM)
    ew1_ih, ew1_hh, eb1 = lstm_layer(HID_DIM)
    dw0_ih, dw0_hh, db0 = lstm_layer(EMB_DIM)
    dw1_ih, dw1_hh, db1 = lstm_layer(HID_DIM)

    enc_emb = jax.random.normal(next(k_iter), (INPUT_DIM, EMB_DIM), jnp.float32)
    dec_emb = jax.random.normal(next(k_iter), (OUTPUT_DIM, EMB_DIM), jnp.float32)
    dec_emb_pad = jnp.zeros((V_PAD, EMB_DIM), jnp.float32).at[:OUTPUT_DIM].set(dec_emb)
    # fold decoder embedding into its layer-0 input projection: (V_PAD, 4H)
    dec_ihtab = dec_emb_pad @ dw0_ih

    fc_w = uni((OUTPUT_DIM, HID_DIM))                 # PyTorch Linear (V, H)
    fc_b = uni((OUTPUT_DIM,))
    fc_w_pad = jnp.zeros((HID_DIM, V_PAD), jnp.float32).at[:, :OUTPUT_DIM].set(fc_w.T)
    fc_b_pad = jnp.full((1, V_PAD), NEG_INF, jnp.float32).at[0, :OUTPUT_DIM].set(fc_b)

    return {
        "enc_emb": enc_emb,
        "ew0_ih": ew0_ih, "ew0_hh": ew0_hh, "eb0": eb0,
        "ew1_ih": ew1_ih, "ew1_hh": ew1_hh, "eb1": eb1,
        "dec_ihtab": dec_ihtab, "dw0_hh": dw0_hh, "db0": db0,
        "dw1_ih": dw1_ih, "dw1_hh": dw1_hh, "db1": db1,
        "fc_w_pad": fc_w_pad, "fc_b_pad": fc_b_pad,
    }


# ------------------------------ jitted forward ---------------------------------
@jax.jit
def seq2seq_forward(params, src, trg, key):
    S, B = src.shape
    T, _ = trg.shape
    # glue: encoder embedding gather + batch padding (dropout == identity, eval mode)
    src_emb = params["enc_emb"][src]                                     # (S, B, E)
    src_emb = jnp.pad(src_emb, ((0, 0), (0, B_PAD - B), (0, 0)))
    trg_p = jnp.pad(trg, ((0, 0), (0, B_PAD - B))).astype(jnp.int32)
    trg_p = trg_p.reshape(T, B_PAD, 1)
    # deterministic stand-in for torch.rand(1).item() per step
    rands = jax.random.uniform(key, (T,))
    tf_flags = (rands < TEACHER_FORCING_RATIO).astype(jnp.int32)

    out_p = _seq2seq_pallas(tf_flags, src_emb, trg_p, params)            # (T, Bp, Vp)
    return out_p[:, :B, :OUTPUT_DIM]


# ------------------------------------ main --------------------------------------
if __name__ == "__main__":
    root = jax.random.PRNGKey(0)
    k_params, k_src, k_trg, k_tf = jax.random.split(root, 4)

    params = init_params(k_params)
    src = jax.random.randint(k_src, (SRC_LEN, BATCH), 0, INPUT_DIM, dtype=jnp.int32)
    trg = jax.random.randint(k_trg, (TRG_LEN, BATCH), 0, OUTPUT_DIM, dtype=jnp.int32)

    out = seq2seq_forward(params, src, trg, k_tf)
    out = jax.block_until_ready(out)

    assert out.shape == (TRG_LEN, BATCH, OUTPUT_DIM)
    assert bool(jnp.all(jnp.isfinite(out)))
    # TODO(synk): train-mode stochastic dropout (p=0.5) is modeled as eval-mode identity.
    print("KERNEL_OK")
</pallas_src>

<mosaic_0001>
module attributes {stable_mosaic.version = 11 : i64} {
  func.func @_seq2seq_kernel(%arg0: memref<6xi32, #tpu.memory_space<smem>>, %arg1: memref<7x8x32xf32, #tpu.memory_space<vmem>>, %arg2: memref<6x8x1xi32, #tpu.memory_space<vmem>>, %arg3: memref<32x128xf32, #tpu.memory_space<vmem>>, %arg4: memref<32x128xf32, #tpu.memory_space<vmem>>, %arg5: memref<1x128xf32, #tpu.memory_space<vmem>>, %arg6: memref<32x128xf32, #tpu.memory_space<vmem>>, %arg7: memref<32x128xf32, #tpu.memory_space<vmem>>, %arg8: memref<1x128xf32, #tpu.memory_space<vmem>>, %arg9: memref<128x128xf32, #tpu.memory_space<vmem>>, %arg10: memref<32x128xf32, #tpu.memory_space<vmem>>, %arg11: memref<1x128xf32, #tpu.memory_space<vmem>>, %arg12: memref<32x128xf32, #tpu.memory_space<vmem>>, %arg13: memref<32x128xf32, #tpu.memory_space<vmem>>, %arg14: memref<1x128xf32, #tpu.memory_space<vmem>>, %arg15: memref<32x128xf32, #tpu.memory_space<vmem>>, %arg16: memref<1x128xf32, #tpu.memory_space<vmem>>, %arg17: memref<6x8x128xf32, #tpu.memory_space<vmem>>, %arg18: memref<7x8x128xf32, #tpu.memory_space<vmem>>) attributes {dimension_semantics = [], scalar_prefetch = 0 : i64, scratch_operands = 1 : i64, tpu.core_type = #tpu.core_type<tc>} {
    %cst = arith.constant 0.000000e+00 : f32
    %0 = vector.broadcast %cst : f32 to vector<8x32xf32>
    %c0 = arith.constant 0 : index
    %c0_0 = arith.constant 0 : index
    %c0_1 = arith.constant 0 : index
    %1 = vector.load %arg1[%c0, %c0_0, %c0_1] : memref<7x8x32xf32, #tpu.memory_space<vmem>>, vector<7x8x32xf32>
    %2 = vector.shape_cast %1 : vector<7x8x32xf32> to vector<56x32xf32>
    %c0_2 = arith.constant 0 : index
    %c0_3 = arith.constant 0 : index
    %3 = vector.load %arg3[%c0_2, %c0_3] : memref<32x128xf32, #tpu.memory_space<vmem>>, vector<32x128xf32>
    %cst_4 = arith.constant dense<0.000000e+00> : vector<56x128xf32>
    %4 = tpu.matmul %2, %3, %cst_4 {dimension_numbers = #tpu.dot_dimension_numbers<[1], [0], [0], [1], [0, 0, 1, 1], [], []>} : vector<56x32xf32>, vector<32x128xf32>, vector<56x128xf32> -> vector<56x128xf32>
    %5 = vector.shape_cast %4 : vector<56x128xf32> to vector<7x8x128xf32>
    %c0_5 = arith.constant 0 : index
    %c0_6 = arith.constant 0 : index
    %c0_7 = arith.constant 0 : index
    %6 = vector.load %arg18[%c0_5, %c0_6, %c0_7] : memref<7x8x128xf32, #tpu.memory_space<vmem>>, vector<7x8x128xf32>
    tpu.vector_store %arg18[%c0_5, %c0_6, %c0_7], %5 {strides = array<i32>} : memref<7x8x128xf32, #tpu.memory_space<vmem>>, vector<7x8x128xf32>,
    %c0_8 = arith.constant 0 : index
    %c0_9 = arith.constant 0 : index
    %7 = vector.load %arg4[%c0_8, %c0_9] : memref<32x128xf32, #tpu.memory_space<vmem>>, vector<32x128xf32>
    %c0_10 = arith.constant 0 : index
    %c0_11 = arith.constant 0 : index
    %8 = vector.load %arg6[%c0_10, %c0_11] : memref<32x128xf32, #tpu.memory_space<vmem>>, vector<32x128xf32>
    %c0_12 = arith.constant 0 : index
    %c0_13 = arith.constant 0 : index
    %9 = vector.load %arg7[%c0_12, %c0_13] : memref<32x128xf32, #tpu.memory_space<vmem>>, vector<32x128xf32>
    %c0_14 = arith.constant 0 : index
    %c0_15 = arith.constant 0 : index
    %10 = vector.load %arg5[%c0_14, %c0_15] : memref<1x128xf32, #tpu.memory_space<vmem>>, vector<1x128xf32>
    %11 = vector.shape_cast %10 : vector<1x128xf32> to vector<1x128xf32>
    %12 = vector.broadcast %11 : vector<1x128xf32> to vector<8x128xf32>
    %c0_16 = arith.constant 0 : index
    %c0_17 = arith.constant 0 : index
    %13 = vector.load %arg8[%c0_16, %c0_17] : memref<1x128xf32, #tpu.memory_space<vmem>>, vector<1x128xf32>
    %14 = vector.shape_cast %13 : vector<1x128xf32> to vector<1x128xf32>
    %15 = vector.broadcast %14 : vector<1x128xf32> to vector<8x128xf32>
    %c0_i32 = arith.constant 0 : i32
    %16 = arith.index_cast %c0_i32 : i32 to index
    %c0_18 = arith.constant 0 : index
    %c0_19 = arith.constant 0 : index
    %17 = vector.load %arg18[%16, %c0_18, %c0_19] : memref<7x8x128xf32, #tpu.memory_space<vmem>>, vector<1x8x128xf32>
    %18 = vector.shape_cast %17 : vector<1x8x128xf32> to vector<8x128xf32>
    %cst_20 = arith.constant dense<0.000000e+00> : vector<8x128xf32>
    %19 = tpu.matmul %0, %7, %cst_20 {dimension_numbers = #tpu.dot_dimension_numbers<[1], [0], [0], [1], [0, 0, 1, 1], [], []>} : vector<8x32xf32>, vector<32x128xf32>, vector<8x128xf32> -> vector<8x128xf32>
    %20 = arith.addf %18, %19 : vector<8x128xf32>
    %21 = arith.addf %20, %12 : vector<8x128xf32>
    %22 = vector.extract_strided_slice %21 {offsets = [0, 0], sizes = [8, 96], strides = [1, 1]} : vector<8x128xf32> to vector<8x96xf32>
    %23 = arith.negf %22 : vector<8x96xf32>
    %24 = math.exp %23 : vector<8x96xf32>
    %cst_21 = arith.constant 1.000000e+00 : f32
    %25 = vector.broadcast %cst_21 : f32 to vector<8x96xf32>
    %26 = arith.addf %25, %24 : vector<8x96xf32>
    %27 = arith.divf %25, %26 : vector<8x96xf32>
    %28 = vector.extract_strided_slice %21 {offsets = [0, 96], sizes = [8, 32], strides = [1, 1]} : vector<8x128xf32> to vector<8x32xf32>
    %29 = math.tanh %28 : vector<8x32xf32>
    %30 = vector.extract_strided_slice %27 {offsets = [0, 0], sizes = [8, 32], strides = [1, 1]} : vector<8x96xf32> to vector<8x32xf32>
    %31 = vector.extract_strided_slice %27 {offsets = [0, 32], sizes = [8, 32], strides = [1, 1]} : vector<8x96xf32> to vector<8x32xf32>
    %32 = vector.extract_strided_slice %27 {offsets = [0, 64], sizes = [8, 32], strides = [1, 1]} : vector<8x96xf32> to vector<8x32xf32>
    %33 = arith.mulf %31, %0 : vector<8x32xf32>
    %34 = arith.mulf %30, %29 : vector<8x32xf32>
    %35 = arith.addf %33, %34 : vector<8x32xf32>
    %36 = math.tanh %35 : vector<8x32xf32>
    %37 = arith.mulf %32, %36 : vector<8x32xf32>
    %cst_22 = arith.constant dense<0.000000e+00> : vector<8x128xf32>
    %38 = tpu.matmul %37, %8, %cst_22 {dimension_numbers = #tpu.dot_dimension_numbers<[1], [0], [0], [1], [0, 0, 1, 1], [], []>} : vector<8x32xf32>, vector<32x128xf32>, vector<8x128xf32> -> vector<8x128xf32>
    %cst_23 = arith.constant dense<0.000000e+00> : vector<8x128xf32>
    %39 = tpu.matmul %0, %9, %cst_23 {dimension_numbers = #tpu.dot_dimension_numbers<[1], [0], [0], [1], [0, 0, 1, 1], [], []>} : vector<8x32xf32>, vector<32x128xf32>, vector<8x128xf32> -> vector<8x128xf32>
    %40 = arith.addf %38, %39 : vector<8x128xf32>
    %41 = arith.addf %40, %15 : vector<8x128xf32>
    %42 = vector.extract_strided_slice %41 {offsets = [0, 0], sizes = [8, 96], strides = [1, 1]} : vector<8x128xf32> to vector<8x96xf32>
    %43 = arith.negf %42 : vector<8x96xf32>
    %44 = math.exp %43 : vector<8x96xf32>
    %cst_24 = arith.constant 1.000000e+00 : f32
    %45 = vector.broadcast %cst_24 : f32 to vector<8x96xf32>
    %46 = arith.addf %45, %44 : vector<8x96xf32>
    %47 = arith.divf %45, %46 : vector<8x96xf32>
    %48 = vector.extract_strided_slice %41 {offsets = [0, 96], sizes = [8, 32], strides = [1, 1]} : vector<8x128xf32> to vector<8x32xf32>
    %49 = math.tanh %48 : vector<8x32xf32>
    %50 = vector.extract_strided_slice %47 {offsets = [0, 0], sizes = [8, 32], strides = [1, 1]} : vector<8x96xf32> to vector<8x32xf32>
    %51 = vector.extract_strided_slice %47 {offsets = [0, 32], sizes = [8, 32], strides = [1, 1]} : vector<8x96xf32> to vector<8x32xf32>
    %52 = vector.extract_strided_slice %47 {offsets = [0, 64], sizes = [8, 32], strides = [1, 1]} : vector<8x96xf32> to vector<8x32xf32>
    %53 = arith.mulf %51, %0 : vector<8x32xf32>
    %54 = arith.mulf %50, %49 : vector<8x32xf32>
    %55 = arith.addf %53, %54 : vector<8x32xf32>
    %56 = math.tanh %55 : vector<8x32xf32>
    %57 = arith.mulf %52, %56 : vector<8x32xf32>
    %c1_i32 = arith.constant 1 : i32
    %58 = arith.index_cast %c1_i32 : i32 to index
    %c0_25 = arith.constant 0 : index
    %c0_26 = arith.constant 0 : index
    %59 = vector.load %arg18[%58, %c0_25, %c0_26] : memref<7x8x128xf32, #tpu.memory_space<vmem>>, vector<1x8x128xf32>
    %60 = vector.shape_cast %59 : vector<1x8x128xf32> to vector<8x128xf32>
    %cst_27 = arith.constant dense<0.000000e+00> : vector<8x128xf32>
    %61 = tpu.matmul %37, %7, %cst_27 {dimension_numbers = #tpu.dot_dimension_numbers<[1], [0], [0], [1], [0, 0, 1, 1], [], []>} : vector<8x32xf32>, vector<32x128xf32>, vector<8x128xf32> -> vector<8x128xf32>
    %62 = arith.addf %60, %61 : vector<8x128xf32>
    %63 = arith.addf %62, %12 : vector<8x128xf32>
    %64 = vector.extract_strided_slice %63 {offsets = [0, 0], sizes = [8, 96], strides = [1, 1]} : vector<8x128xf32> to vector<8x96xf32>
    %65 = arith.negf %64 : vector<8x96xf32>
    %66 = math.exp %65 : vector<8x96xf32>
    %cst_28 = arith.constant 1.000000e+00 : f32
    %67 = vector.broadcast %cst_28 : f32 to vector<8x96xf32>
    %68 = arith.addf %67, %66 : vector<8x96xf32>
    %69 = arith.divf %67, %68 : vector<8x96xf32>
    %70 = vector.extract_strided_slice %63 {offsets = [0, 96], sizes = [8, 32], strides = [1, 1]} : vector<8x128xf32> to vector<8x32xf32>
    %71 = math.tanh %70 : vector<8x32xf32>
    %72 = vector.extract_strided_slice %69 {offsets = [0, 0], sizes = [8, 32], strides = [1, 1]} : vector<8x96xf32> to vector<8x32xf32>
    %73 = vector.extract_strided_slice %69 {offsets = [0, 32], sizes = [8, 32], strides = [1, 1]} : vector<8x96xf32> to vector<8x32xf32>
    %74 = vector.extract_strided_slice %69 {offsets = [0, 64], sizes = [8, 32], strides = [1, 1]} : vector<8x96xf32> to vector<8x32xf32>
    %75 = arith.mulf %73, %35 : vector<8x32xf32>
    %76 = arith.mulf %72, %71 : vector<8x32xf32>
    %77 = arith.addf %75, %76 : vector<8x32xf32>
    %78 = math.tanh %77 : vector<8x32xf32>
    %79 = arith.mulf %74, %78 : vector<8x32xf32>
    %cst_29 = arith.constant dense<0.000000e+00> : vector<8x128xf32>
    %80 = tpu.matmul %79, %8, %cst_29 {dimension_numbers = #tpu.dot_dimension_numbers<[1], [0], [0], [1], [0, 0, 1, 1], [], []>} : vector<8x32xf32>, vector<32x128xf32>, vector<8x128xf32> -> vector<8x128xf32>
    %cst_30 = arith.constant dense<0.000000e+00> : vector<8x128xf32>
    %81 = tpu.matmul %57, %9, %cst_30 {dimension_numbers = #tpu.dot_dimension_numbers<[1], [0], [0], [1], [0, 0, 1, 1], [], []>} : vector<8x32xf32>, vector<32x128xf32>, vector<8x128xf32> -> vector<8x128xf32>
    %82 = arith.addf %80, %81 : vector<8x128xf32>
    %83 = arith.addf %82, %15 : vector<8x128xf32>
    %84 = vector.extract_strided_slice %83 {offsets = [0, 0], sizes = [8, 96], strides = [1, 1]} : vector<8x128xf32> to vector<8x96xf32>
    %85 = arith.negf %84 : vector<8x96xf32>
    %86 = math.exp %85 : vector<8x96xf32>
    %cst_31 = arith.constant 1.000000e+00 : f32
    %87 = vector.broadcast %cst_31 : f32 to vector<8x96xf32>
    %88 = arith.addf %87, %86 : vector<8x96xf32>
    %89 = arith.divf %87, %88 : vector<8x96xf32>
    %90 = vector.extract_strided_slice %83 {offsets = [0, 96], sizes = [8, 32], strides = [1, 1]} : vector<8x128xf32> to vector<8x32xf32>
    %91 = math.tanh %90 : vector<8x32xf32>
    %92 = vector.extract_strided_slice %89 {offsets = [0, 0], sizes = [8, 32], strides = [1, 1]} : vector<8x96xf32> to vector<8x32xf32>
    %93 = vector.extract_strided_slice %89 {offsets = [0, 32], sizes = [8, 32], strides = [1, 1]} : vector<8x96xf32> to vector<8x32xf32>
    %94 = vector.extract_strided_slice %89 {offsets = [0, 64], sizes = [8, 32], strides = [1, 1]} : vector<8x96xf32> to vector<8x32xf32>
    %95 = arith.mulf %93, %55 : vector<8x32xf32>
    %96 = arith.mulf %92, %91 : vector<8x32xf32>
    %97 = arith.addf %95, %96 : vector<8x32xf32>
    %98 = math.tanh %97 : vector<8x32xf32>
    %99 = arith.mulf %94, %98 : vector<8x32xf32>
    %c2_i32 = arith.constant 2 : i32
    %100 = arith.index_cast %c2_i32 : i32 to index
    %c0_32 = arith.constant 0 : index
    %c0_33 = arith.constant 0 : index
    %101 = vector.load %arg18[%100, %c0_32, %c0_33] : memref<7x8x128xf32, #tpu.memory_space<vmem>>, vector<1x8x128xf32>
    %102 = vector.shape_cast %101 : vector<1x8x128xf32> to vector<8x128xf32>
    %cst_34 = arith.constant dense<0.000000e+00> : vector<8x128xf32>
    %103 = tpu.matmul %79, %7, %cst_34 {dimension_numbers = #tpu.dot_dimension_numbers<[1], [0], [0], [1], [0, 0, 1, 1], [], []>} : vector<8x32xf32>, vector<32x128xf32>, vector<8x128xf32> -> vector<8x128xf32>
    %104 = arith.addf %102, %103 : vector<8x128xf32>
    %105 = arith.addf %104, %12 : vector<8x128xf32>
    %106 = vector.extract_strided_slice %105 {offsets = [0, 0], sizes = [8, 96], strides = [1, 1]} : vector<8x128xf32> to vector<8x96xf32>
    %107 = arith.negf %106 : vector<8x96xf32>
    %108 = math.exp %107 : vector<8x96xf32>
    %cst_35 = arith.constant 1.000000e+00 : f32
    %109 = vector.broadcast %cst_35 : f32 to vector<8x96xf32>
    %110 = arith.addf %109, %108 : vector<8x96xf32>
    %111 = arith.divf %109, %110 : vector<8x96xf32>
    %112 = vector.extract_strided_slice %105 {offsets = [0, 96], sizes = [8, 32], strides = [1, 1]} : vector<8x128xf32> to vector<8x32xf32>
    %113 = math.tanh %112 : vector<8x32xf32>
    %114 = vector.extract_strided_slice %111 {offsets = [0, 0], sizes = [8, 32], strides = [1, 1]} : vector<8x96xf32> to vector<8x32xf32>
    %115 = vector.extract_strided_slice %111 {offsets = [0, 32], sizes = [8, 32], strides = [1, 1]} : vector<8x96xf32> to vector<8x32xf32>
    %116 = vector.extract_strided_slice %111 {offsets = [0, 64], sizes = [8, 32], strides = [1, 1]} : vector<8x96xf32> to vector<8x32xf32>
    %117 = arith.mulf %115, %77 : vector<8x32xf32>
    %118 = arith.mulf %114, %113 : vector<8x32xf32>
    %119 = arith.addf %117, %118 : vector<8x32xf32>
    %120 = math.tanh %119 : vector<8x32xf32>
    %121 = arith.mulf %116, %120 : vector<8x32xf32>
    %cst_36 = arith.constant dense<0.000000e+00> : vector<8x128xf32>
    %122 = tpu.matmul %121, %8, %cst_36 {dimension_numbers = #tpu.dot_dimension_numbers<[1], [0], [0], [1], [0, 0, 1, 1], [], []>} : vector<8x32xf32>, vector<32x128xf32>, vector<8x128xf32> -> vector<8x128xf32>
    %cst_37 = arith.constant dense<0.000000e+00> : vector<8x128xf32>
    %123 = tpu.matmul %99, %9, %cst_37 {dimension_numbers = #tpu.dot_dimension_numbers<[1], [0], [0], [1], [0, 0, 1, 1], [], []>} : vector<8x32xf32>, vector<32x128xf32>, vector<8x128xf32> -> vector<8x128xf32>
    %124 = arith.addf %122, %123 : vector<8x128xf32>
    %125 = arith.addf %124, %15 : vector<8x128xf32>
    %126 = vector.extract_strided_slice %125 {offsets = [0, 0], sizes = [8, 96], strides = [1, 1]} : vector<8x128xf32> to vector<8x96xf32>
    %127 = arith.negf %126 : vector<8x96xf32>
    %128 = math.exp %127 : vector<8x96xf32>
    %cst_38 = arith.constant 1.000000e+00 : f32
    %129 = vector.broadcast %cst_38 : f32 to vector<8x96xf32>
    %130 = arith.addf %129, %128 : vector<8x96xf32>
    %131 = arith.divf %129, %130 : vector<8x96xf32>
    %132 = vector.extract_strided_slice %125 {offsets = [0, 96], sizes = [8, 32], strides = [1, 1]} : vector<8x128xf32> to vector<8x32xf32>
    %133 = math.tanh %132 : vector<8x32xf32>
    %134 = vector.extract_strided_slice %131 {offsets = [0, 0], sizes = [8, 32], strides = [1, 1]} : vector<8x96xf32> to vector<8x32xf32>
    %135 = vector.extract_strided_slice %131 {offsets = [0, 32], sizes = [8, 32], strides = [1, 1]} : vector<8x96xf32> to vector<8x32xf32>
    %136 = vector.extract_strided_slice %131 {offsets = [0, 64], sizes = [8, 32], strides = [1, 1]} : vector<8x96xf32> to vector<8x32xf32>
    %137 = arith.mulf %135, %97 : vector<8x32xf32>
    %138 = arith.mulf %134, %133 : vector<8x32xf32>
    %139 = arith.addf %137, %138 : vector<8x32xf32>
    %140 = math.tanh %139 : vector<8x32xf32>
    %141 = arith.mulf %136, %140 : vector<8x32xf32>
    %c3_i32 = arith.constant 3 : i32
    %142 = arith.index_cast %c3_i32 : i32 to index
    %c0_39 = arith.constant 0 : index
    %c0_40 = arith.constant 0 : index
    %143 = vector.load %arg18[%142, %c0_39, %c0_40] : memref<7x8x128xf32, #tpu.memory_space<vmem>>, vector<1x8x128xf32>
    %144 = vector.shape_cast %143 : vector<1x8x128xf32> to vector<8x128xf32>
    %cst_41 = arith.constant dense<0.000000e+00> : vector<8x128xf32>
    %145 = tpu.matmul %121, %7, %cst_41 {dimension_numbers = #tpu.dot_dimension_numbers<[1], [0], [0], [1], [0, 0, 1, 1], [], []>} : vector<8x32xf32>, vector<32x128xf32>, vector<8x128xf32> -> vector<8x128xf32>
    %146 = arith.addf %144, %145 : vector<8x128xf32>
    %147 = arith.addf %146, %12 : vector<8x128xf32>
    %148 = vector.extract_strided_slice %147 {offsets = [0, 0], sizes = [8, 96], strides = [1, 1]} : vector<8x128xf32> to vector<8x96xf32>
    %149 = arith.negf %148 : vector<8x96xf32>
    %150 = math.exp %149 : vector<8x96xf32>
    %cst_42 = arith.constant 1.000000e+00 : f32
    %151 = vector.broadcast %cst_42 : f32 to vector<8x96xf32>
    %152 = arith.addf %151, %150 : vector<8x96xf32>
    %153 = arith.divf %151, %152 : vector<8x96xf32>
    %154 = vector.extract_strided_slice %147 {offsets = [0, 96], sizes = [8, 32], strides = [1, 1]} : vector<8x128xf32> to vector<8x32xf32>
    %155 = math.tanh %154 : vector<8x32xf32>
    %156 = vector.extract_strided_slice %153 {offsets = [0, 0], sizes = [8, 32], strides = [1, 1]} : vector<8x96xf32> to vector<8x32xf32>
    %157 = vector.extract_strided_slice %153 {offsets = [0, 32], sizes = [8, 32], strides = [1, 1]} : vector<8x96xf32> to vector<8x32xf32>
    %158 = vector.extract_strided_slice %153 {offsets = [0, 64], sizes = [8, 32], strides = [1, 1]} : vector<8x96xf32> to vector<8x32xf32>
    %159 = arith.mulf %157, %119 : vector<8x32xf32>
    %160 = arith.mulf %156, %155 : vector<8x32xf32>
    %161 = arith.addf %159, %160 : vector<8x32xf32>
    %162 = math.tanh %161 : vector<8x32xf32>
    %163 = arith.mulf %158, %162 : vector<8x32xf32>
    %cst_43 = arith.constant dense<0.000000e+00> : vector<8x128xf32>
    %164 = tpu.matmul %163, %8, %cst_43 {dimension_numbers = #tpu.dot_dimension_numbers<[1], [0], [0], [1], [0, 0, 1, 1], [], []>} : vector<8x32xf32>, vector<32x128xf32>, vector<8x128xf32> -> vector<8x128xf32>
    %cst_44 = arith.constant dense<0.000000e+00> : vector<8x128xf32>
    %165 = tpu.matmul %141, %9, %cst_44 {dimension_numbers = #tpu.dot_dimension_numbers<[1], [0], [0], [1], [0, 0, 1, 1], [], []>} : vector<8x32xf32>, vector<32x128xf32>, vector<8x128xf32> -> vector<8x128xf32>
    %166 = arith.addf %164, %165 : vector<8x128xf32>
    %167 = arith.addf %166, %15 : vector<8x128xf32>
    %168 = vector.extract_strided_slice %167 {offsets = [0, 0], sizes = [8, 96], strides = [1, 1]} : vector<8x128xf32> to vector<8x96xf32>
    %169 = arith.negf %168 : vector<8x96xf32>
    %170 = math.exp %169 : vector<8x96xf32>
    %cst_45 = arith.constant 1.000000e+00 : f32
    %171 = vector.broadcast %cst_45 : f32 to vector<8x96xf32>
    %172 = arith.addf %171, %170 : vector<8x96xf32>
    %173 = arith.divf %171, %172 : vector<8x96xf32>
    %174 = vector.extract_strided_slice %167 {offsets = [0, 96], sizes = [8, 32], strides = [1, 1]} : vector<8x128xf32> to vector<8x32xf32>
    %175 = math.tanh %174 : vector<8x32xf32>
    %176 = vector.extract_strided_slice %173 {offsets = [0, 0], sizes = [8, 32], strides = [1, 1]} : vector<8x96xf32> to vector<8x32xf32>
    %177 = vector.extract_strided_slice %173 {offsets = [0, 32], sizes = [8, 32], strides = [1, 1]} : vector<8x96xf32> to vector<8x32xf32>
    %178 = vector.extract_strided_slice %173 {offsets = [0, 64], sizes = [8, 32], strides = [1, 1]} : vector<8x96xf32> to vector<8x32xf32>
    %179 = arith.mulf %177, %139 : vector<8x32xf32>
    %180 = arith.mulf %176, %175 : vector<8x32xf32>
    %181 = arith.addf %179, %180 : vector<8x32xf32>
    %182 = math.tanh %181 : vector<8x32xf32>
    %183 = arith.mulf %178, %182 : vector<8x32xf32>
    %c4_i32 = arith.constant 4 : i32
    %184 = arith.index_cast %c4_i32 : i32 to index
    %c0_46 = arith.constant 0 : index
    %c0_47 = arith.constant 0 : index
    %185 = vector.load %arg18[%184, %c0_46, %c0_47] : memref<7x8x128xf32, #tpu.memory_space<vmem>>, vector<1x8x128xf32>
    %186 = vector.shape_cast %185 : vector<1x8x128xf32> to vector<8x128xf32>
    %cst_48 = arith.constant dense<0.000000e+00> : vector<8x128xf32>
    %187 = tpu.matmul %163, %7, %cst_48 {dimension_numbers = #tpu.dot_dimension_numbers<[1], [0], [0], [1], [0, 0, 1, 1], [], []>} : vector<8x32xf32>, vector<32x128xf32>, vector<8x128xf32> -> vector<8x128xf32>
    %188 = arith.addf %186, %187 : vector<8x128xf32>
    %189 = arith.addf %188, %12 : vector<8x128xf32>
    %190 = vector.extract_strided_slice %189 {offsets = [0, 0], sizes = [8, 96], strides = [1, 1]} : vector<8x128xf32> to vector<8x96xf32>
    %191 = arith.negf %190 : vector<8x96xf32>
    %192 = math.exp %191 : vector<8x96xf32>
    %cst_49 = arith.constant 1.000000e+00 : f32
    %193 = vector.broadcast %cst_49 : f32 to vector<8x96xf32>
    %194 = arith.addf %193, %192 : vector<8x96xf32>
    %195 = arith.divf %193, %194 : vector<8x96xf32>
    %196 = vector.extract_strided_slice %189 {offsets = [0, 96], sizes = [8, 32], strides = [1, 1]} : vector<8x128xf32> to vector<8x32xf32>
    %197 = math.tanh %196 : vector<8x32xf32>
    %198 = vector.extract_strided_slice %195 {offsets = [0, 0], sizes = [8, 32], strides = [1, 1]} : vector<8x96xf32> to vector<8x32xf32>
    %199 = vector.extract_strided_slice %195 {offsets = [0, 32], sizes = [8, 32], strides = [1, 1]} : vector<8x96xf32> to vector<8x32xf32>
    %200 = vector.extract_strided_slice %195 {offsets = [0, 64], sizes = [8, 32], strides = [1, 1]} : vector<8x96xf32> to vector<8x32xf32>
    %201 = arith.mulf %199, %161 : vector<8x32xf32>
    %202 = arith.mulf %198, %197 : vector<8x32xf32>
    %203 = arith.addf %201, %202 : vector<8x32xf32>
    %204 = math.tanh %203 : vector<8x32xf32>
    %205 = arith.mulf %200, %204 : vector<8x32xf32>
    %cst_50 = arith.constant dense<0.000000e+00> : vector<8x128xf32>
    %206 = tpu.matmul %205, %8, %cst_50 {dimension_numbers = #tpu.dot_dimension_numbers<[1], [0], [0], [1], [0, 0, 1, 1], [], []>} : vector<8x32xf32>, vector<32x128xf32>, vector<8x128xf32> -> vector<8x128xf32>
    %cst_51 = arith.constant dense<0.000000e+00> : vector<8x128xf32>
    %207 = tpu.matmul %183, %9, %cst_51 {dimension_numbers = #tpu.dot_dimension_numbers<[1], [0], [0], [1], [0, 0, 1, 1], [], []>} : vector<8x32xf32>, vector<32x128xf32>, vector<8x128xf32> -> vector<8x128xf32>
    %208 = arith.addf %206, %207 : vector<8x128xf32>
    %209 = arith.addf %208, %15 : vector<8x128xf32>
    %210 = vector.extract_strided_slice %209 {offsets = [0, 0], sizes = [8, 96], strides = [1, 1]} : vector<8x128xf32> to vector<8x96xf32>
    %211 = arith.negf %210 : vector<8x96xf32>
    %212 = math.exp %211 : vector<8x96xf32>
    %cst_52 = arith.constant 1.000000e+00 : f32
    %213 = vector.broadcast %cst_52 : f32 to vector<8x96xf32>
    %214 = arith.addf %213, %212 : vector<8x96xf32>
    %215 = arith.divf %213, %214 : vector<8x96xf32>
    %216 = vector.extract_strided_slice %209 {offsets = [0, 96], sizes = [8, 32], strides = [1, 1]} : vector<8x128xf32> to vector<8x32xf32>
    %217 = math.tanh %216 : vector<8x32xf32>
    %218 = vector.extract_strided_slice %215 {offsets = [0, 0], sizes = [8, 32], strides = [1, 1]} : vector<8x96xf32> to vector<8x32xf32>
    %219 = vector.extract_strided_slice %215 {offsets = [0, 32], sizes = [8, 32], strides = [1, 1]} : vector<8x96xf32> to vector<8x32xf32>
    %220 = vector.extract_strided_slice %215 {offsets = [0, 64], sizes = [8, 32], strides = [1, 1]} : vector<8x96xf32> to vector<8x32xf32>
    %221 = arith.mulf %219, %181 : vector<8x32xf32>
    %222 = arith.mulf %218, %217 : vector<8x32xf32>
    %223 = arith.addf %221, %222 : vector<8x32xf32>
    %224 = math.tanh %223 : vector<8x32xf32>
    %225 = arith.mulf %220, %224 : vector<8x32xf32>
    %c5_i32 = arith.constant 5 : i32
    %226 = arith.index_cast %c5_i32 : i32 to index
    %c0_53 = arith.constant 0 : index
    %c0_54 = arith.constant 0 : index
    %227 = vector.load %arg18[%226, %c0_53, %c0_54] : memref<7x8x128xf32, #tpu.memory_space<vmem>>, vector<1x8x128xf32>
    %228 = vector.shape_cast %227 : vector<1x8x128xf32> to vector<8x128xf32>
    %cst_55 = arith.constant dense<0.000000e+00> : vector<8x128xf32>
    %229 = tpu.matmul %205, %7, %cst_55 {dimension_numbers = #tpu.dot_dimension_numbers<[1], [0], [0], [1], [0, 0, 1, 1], [], []>} : vector<8x32xf32>, vector<32x128xf32>, vector<8x128xf32> -> vector<8x128xf32>
    %230 = arith.addf %228, %229 : vector<8x128xf32>
    %231 = arith.addf %230, %12 : vector<8x128xf32>
    %232 = vector.extract_strided_slice %231 {offsets = [0, 0], sizes = [8, 96], strides = [1, 1]} : vector<8x128xf32> to vector<8x96xf32>
    %233 = arith.negf %232 : vector<8x96xf32>
    %234 = math.exp %233 : vector<8x96xf32>
    %cst_56 = arith.constant 1.000000e+00 : f32
    %235 = vector.broadcast %cst_56 : f32 to vector<8x96xf32>
    %236 = arith.addf %235, %234 : vector<8x96xf32>
    %237 = arith.divf %235, %236 : vector<8x96xf32>
    %238 = vector.extract_strided_slice %231 {offsets = [0, 96], sizes = [8, 32], strides = [1, 1]} : vector<8x128xf32> to vector<8x32xf32>
    %239 = math.tanh %238 : vector<8x32xf32>
    %240 = vector.extract_strided_slice %237 {offsets = [0, 0], sizes = [8, 32], strides = [1, 1]} : vector<8x96xf32> to vector<8x32xf32>
    %241 = vector.extract_strided_slice %237 {offsets = [0, 32], sizes = [8, 32], strides = [1, 1]} : vector<8x96xf32> to vector<8x32xf32>
    %242 = vector.extract_strided_slice %237 {offsets = [0, 64], sizes = [8, 32], strides = [1, 1]} : vector<8x96xf32> to vector<8x32xf32>
    %243 = arith.mulf %241, %203 : vector<8x32xf32>
    %244 = arith.mulf %240, %239 : vector<8x32xf32>
    %245 = arith.addf %243, %244 : vector<8x32xf32>
    %246 = math.tanh %245 : vector<8x32xf32>
    %247 = arith.mulf %242, %246 : vector<8x32xf32>
    %cst_57 = arith.constant dense<0.000000e+00> : vector<8x128xf32>
    %248 = tpu.matmul %247, %8, %cst_57 {dimension_numbers = #tpu.dot_dimension_numbers<[1], [0], [0], [1], [0, 0, 1, 1], [], []>} : vector<8x32xf32>, vector<32x128xf32>, vector<8x128xf32> -> vector<8x128xf32>
    %cst_58 = arith.constant dense<0.000000e+00> : vector<8x128xf32>
    %249 = tpu.matmul %225, %9, %cst_58 {dimension_numbers = #tpu.dot_dimension_numbers<[1], [0], [0], [1], [0, 0, 1, 1], [], []>} : vector<8x32xf32>, vector<32x128xf32>, vector<8x128xf32> -> vector<8x128xf32>
    %250 = arith.addf %248, %249 : vector<8x128xf32>
    %251 = arith.addf %250, %15 : vector<8x128xf32>
    %252 = vector.extract_strided_slice %251 {offsets = [0, 0], sizes = [8, 96], strides = [1, 1]} : vector<8x128xf32> to vector<8x96xf32>
    %253 = arith.negf %252 : vector<8x96xf32>
    %254 = math.exp %253 : vector<8x96xf32>
    %cst_59 = arith.constant 1.000000e+00 : f32
    %255 = vector.broadcast %cst_59 : f32 to vector<8x96xf32>
    %256 = arith.addf %255, %254 : vector<8x96xf32>
    %257 = arith.divf %255, %256 : vector<8x96xf32>
    %258 = vector.extract_strided_slice %251 {offsets = [0, 96], sizes = [8, 32], strides = [1, 1]} : vector<8x128xf32> to vector<8x32xf32>
    %259 = math.tanh %258 : vector<8x32xf32>
    %260 = vector.extract_strided_slice %257 {offsets = [0, 0], sizes = [8, 32], strides = [1, 1]} : vector<8x96xf32> to vector<8x32xf32>
    %261 = vector.extract_strided_slice %257 {offsets = [0, 32], sizes = [8, 32], strides = [1, 1]} : vector<8x96xf32> to vector<8x32xf32>
    %262 = vector.extract_strided_slice %257 {offsets = [0, 64], sizes = [8, 32], strides = [1, 1]} : vector<8x96xf32> to vector<8x32xf32>
    %263 = arith.mulf %261, %223 : vector<8x32xf32>
    %264 = arith.mulf %260, %259 : vector<8x32xf32>
    %265 = arith.addf %263, %264 : vector<8x32xf32>
    %266 = math.tanh %265 : vector<8x32xf32>
    %267 = arith.mulf %262, %266 : vector<8x32xf32>
    %c6_i32 = arith.constant 6 : i32
    %268 = arith.index_cast %c6_i32 : i32 to index
    %c0_60 = arith.constant 0 : index
    %c0_61 = arith.constant 0 : index
    %269 = vector.load %arg18[%268, %c0_60, %c0_61] : memref<7x8x128xf32, #tpu.memory_space<vmem>>, vector<1x8x128xf32>
    %270 = vector.shape_cast %269 : vector<1x8x128xf32> to vector<8x128xf32>
    %cst_62 = arith.constant dense<0.000000e+00> : vector<8x128xf32>
    %271 = tpu.matmul %247, %7, %cst_62 {dimension_numbers = #tpu.dot_dimension_numbers<[1], [0], [0], [1], [0, 0, 1, 1], [], []>} : vector<8x32xf32>, vector<32x128xf32>, vector<8x128xf32> -> vector<8x128xf32>
    %272 = arith.addf %270, %271 : vector<8x128xf32>
    %273 = arith.addf %272, %12 : vector<8x128xf32>
    %274 = vector.extract_strided_slice %273 {offsets = [0, 0], sizes = [8, 96], strides = [1, 1]} : vector<8x128xf32> to vector<8x96xf32>
    %275 = arith.negf %274 : vector<8x96xf32>
    %276 = math.exp %275 : vector<8x96xf32>
    %cst_63 = arith.constant 1.000000e+00 : f32
    %277 = vector.broadcast %cst_63 : f32 to vector<8x96xf32>
    %278 = arith.addf %277, %276 : vector<8x96xf32>
    %279 = arith.divf %277, %278 : vector<8x96xf32>
    %280 = vector.extract_strided_slice %273 {offsets = [0, 96], sizes = [8, 32], strides = [1, 1]} : vector<8x128xf32> to vector<8x32xf32>
    %281 = math.tanh %280 : vector<8x32xf32>
    %282 = vector.extract_strided_slice %279 {offsets = [0, 0], sizes = [8, 32], strides = [1, 1]} : vector<8x96xf32> to vector<8x32xf32>
    %283 = vector.extract_strided_slice %279 {offsets = [0, 32], sizes = [8, 32], strides = [1, 1]} : vector<8x96xf32> to vector<8x32xf32>
    %284 = vector.extract_strided_slice %279 {offsets = [0, 64], sizes = [8, 32], strides = [1, 1]} : vector<8x96xf32> to vector<8x32xf32>
    %285 = arith.mulf %283, %245 : vector<8x32xf32>
    %286 = arith.mulf %282, %281 : vector<8x32xf32>
    %287 = arith.addf %285, %286 : vector<8x32xf32>
    %288 = math.tanh %287 : vector<8x32xf32>
    %289 = arith.mulf %284, %288 : vector<8x32xf32>
    %cst_64 = arith.constant dense<0.000000e+00> : vector<8x128xf32>
    %290 = tpu.matmul %289, %8, %cst_64 {dimension_numbers = #tpu.dot_dimension_numbers<[1], [0], [0], [1], [0, 0, 1, 1], [], []>} : vector<8x32xf32>, vector<32x128xf32>, vector<8x128xf32> -> vector<8x128xf32>
    %cst_65 = arith.constant dense<0.000000e+00> : vector<8x128xf32>
    %291 = tpu.matmul %267, %9, %cst_65 {dimension_numbers = #tpu.dot_dimension_numbers<[1], [0], [0], [1], [0, 0, 1, 1], [], []>} : vector<8x32xf32>, vector<32x128xf32>, vector<8x128xf32> -> vector<8x128xf32>
    %292 = arith.addf %290, %291 : vector<8x128xf32>
    %293 = arith.addf %292, %15 : vector<8x128xf32>
    %294 = vector.extract_strided_slice %293 {offsets = [0, 0], sizes = [8, 96], strides = [1, 1]} : vector<8x128xf32> to vector<8x96xf32>
    %295 = arith.negf %294 : vector<8x96xf32>
    %296 = math.exp %295 : vector<8x96xf32>
    %cst_66 = arith.constant 1.000000e+00 : f32
    %297 = vector.broadcast %cst_66 : f32 to vector<8x96xf32>
    %298 = arith.addf %297, %296 : vector<8x96xf32>
    %299 = arith.divf %297, %298 : vector<8x96xf32>
    %300 = vector.extract_strided_slice %293 {offsets = [0, 96], sizes = [8, 32], strides = [1, 1]} : vector<8x128xf32> to vector<8x32xf32>
    %301 = math.tanh %300 : vector<8x32xf32>
    %302 = vector.extract_strided_slice %299 {offsets = [0, 0], sizes = [8, 32], strides = [1, 1]} : vector<8x96xf32> to vector<8x32xf32>
    %303 = vector.extract_strided_slice %299 {offsets = [0, 32], sizes = [8, 32], strides = [1, 1]} : vector<8x96xf32> to vector<8x32xf32>
    %304 = vector.extract_strided_slice %299 {offsets = [0, 64], sizes = [8, 32], strides = [1, 1]} : vector<8x96xf32> to vector<8x32xf32>
    %305 = arith.mulf %303, %265 : vector<8x32xf32>
    %306 = arith.mulf %302, %301 : vector<8x32xf32>
    %307 = arith.addf %305, %306 : vector<8x32xf32>
    %308 = math.tanh %307 : vector<8x32xf32>
    %309 = arith.mulf %304, %308 : vector<8x32xf32>
    %c7_i32 = arith.constant 7 : i32
    %cst_67 = arith.constant 0.000000e+00 : f32
    %310 = vector.broadcast %cst_67 : f32 to vector<8x128xf32>
    %c0_68 = arith.constant 0 : index
    %c0_69 = arith.constant 0 : index
    %c0_70 = arith.constant 0 : index
    %311 = vector.load %arg17[%c0_68, %c0_69, %c0_70] : memref<6x8x128xf32, #tpu.memory_space<vmem>>, vector<1x8x128xf32>
    %312 = vector.shape_cast %311 : vector<1x8x128xf32> to vector<8x128xf32>
    %313 = vector.shape_cast %310 : vector<8x128xf32> to vector<1x8x128xf32>
    tpu.vector_store %arg17[%c0_68, %c0_69, %c0_70], %313 {strides = array<i32>} : memref<6x8x128xf32, #tpu.memory_space<vmem>>, vector<1x8x128xf32>,
    %c0_71 = arith.constant 0 : index
    %c0_72 = arith.constant 0 : index
    %314 = vector.load %arg10[%c0_71, %c0_72] : memref<32x128xf32, #tpu.memory_space<vmem>>, vector<32x128xf32>
    %c0_73 = arith.constant 0 : index
    %c0_74 = arith.constant 0 : index
    %315 = vector.load %arg12[%c0_73, %c0_74] : memref<32x128xf32, #tpu.memory_space<vmem>>, vector<32x128xf32>
    %c0_75 = arith.constant 0 : index
    %c0_76 = arith.constant 0 : index
    %316 = vector.load %arg13[%c0_75, %c0_76] : memref<32x128xf32, #tpu.memory_space<vmem>>, vector<32x128xf32>
    %c0_77 = arith.constant 0 : index
    %c0_78 = arith.constant 0 : index
    %317 = vector.load %arg11[%c0_77, %c0_78] : memref<1x128xf32, #tpu.memory_space<vmem>>, vector<1x128xf32>
    %318 = vector.shape_cast %317 : vector<1x128xf32> to vector<1x128xf32>
    %319 = vector.broadcast %318 : vector<1x128xf32> to vector<8x128xf32>
    %c0_79 = arith.constant 0 : index
    %c0_80 = arith.constant 0 : index
    %320 = vector.load %arg14[%c0_79, %c0_80] : memref<1x128xf32, #tpu.memory_space<vmem>>, vector<1x128xf32>
    %321 = vector.shape_cast %320 : vector<1x128xf32> to vector<1x128xf32>
    %322 = vector.broadcast %321 : vector<1x128xf32> to vector<8x128xf32>
    %c0_81 = arith.constant 0 : index
    %c0_82 = arith.constant 0 : index
    %323 = vector.load %arg15[%c0_81, %c0_82] : memref<32x128xf32, #tpu.memory_space<vmem>>, vector<32x128xf32>
    %c0_83 = arith.constant 0 : index
    %c0_84 = arith.constant 0 : index
    %324 = vector.load %arg16[%c0_83, %c0_84] : memref<1x128xf32, #tpu.memory_space<vmem>>, vector<1x128xf32>
    %325 = vector.shape_cast %324 : vector<1x128xf32> to vector<1x128xf32>
    %326 = vector.broadcast %325 : vector<1x128xf32> to vector<8x128xf32>
    %327 = tpu.iota {dimensions = array<i32: 1>} : vector<8x128xi32>
    %c0_85 = arith.constant 0 : index
    %c0_86 = arith.constant 0 : index
    %c0_87 = arith.constant 0 : index
    %328 = vector.load %arg2[%c0_85, %c0_86, %c0_87] : memref<6x8x1xi32, #tpu.memory_space<vmem>>, vector<1x8x1xi32>
    %329 = vector.shape_cast %328 : vector<1x8x1xi32> to vector<8x1xi32>
    %c1_i32_88 = arith.constant 1 : i32
    %330 = vector.broadcast %329 : vector<8x1xi32> to vector<8x128xi32>
    %331 = arith.cmpi eq, %327, %330 : vector<8x128xi32>
    %332 = arith.extui %331 : vector<8x128xi1> to vector<8x128xi32>
    %333 = arith.sitofp %332 : vector<8x128xi32> to vector<8x128xf32>
    %c0_89 = arith.constant 0 : index
    %c0_90 = arith.constant 0 : index
    %334 = vector.load %arg9[%c0_89, %c0_90] : memref<128x128xf32, #tpu.memory_space<vmem>>, vector<128x128xf32>
    %cst_91 = arith.constant dense<0.000000e+00> : vector<8x128xf32>
    %335 = tpu.matmul %333, %334, %cst_91 {dimension_numbers = #tpu.dot_dimension_numbers<[1], [0], [0], [1], [0, 0, 1, 1], [], []>} : vector<8x128xf32>, vector<128x128xf32>, vector<8x128xf32> -> vector<8x128xf32>
    %cst_92 = arith.constant dense<0.000000e+00> : vector<8x128xf32>
    %336 = tpu.matmul %289, %314, %cst_92 {dimension_numbers = #tpu.dot_dimension_numbers<[1], [0], [0], [1], [0, 0, 1, 1], [], []>} : vector<8x32xf32>, vector<32x128xf32>, vector<8x128xf32> -> vector<8x128xf32>
    %337 = arith.addf %335, %336 : vector<8x128xf32>
    %338 = arith.addf %337, %319 : vector<8x128xf32>
    %339 = vector.extract_strided_slice %338 {offsets = [0, 0], sizes = [8, 96], strides = [1, 1]} : vector<8x128xf32> to vector<8x96xf32>
    %340 = arith.negf %339 : vector<8x96xf32>
    %341 = math.exp %340 : vector<8x96xf32>
    %cst_93 = arith.constant 1.000000e+00 : f32
    %342 = vector.broadcast %cst_93 : f32 to vector<8x96xf32>
    %343 = arith.addf %342, %341 : vector<8x96xf32>
    %344 = arith.divf %342, %343 : vector<8x96xf32>
    %345 = vector.extract_strided_slice %338 {offsets = [0, 96], sizes = [8, 32], strides = [1, 1]} : vector<8x128xf32> to vector<8x32xf32>
    %346 = math.tanh %345 : vector<8x32xf32>
    %347 = vector.extract_strided_slice %344 {offsets = [0, 0], sizes = [8, 32], strides = [1, 1]} : vector<8x96xf32> to vector<8x32xf32>
    %348 = vector.extract_strided_slice %344 {offsets = [0, 32], sizes = [8, 32], strides = [1, 1]} : vector<8x96xf32> to vector<8x32xf32>
    %349 = vector.extract_strided_slice %344 {offsets = [0, 64], sizes = [8, 32], strides = [1, 1]} : vector<8x96xf32> to vector<8x32xf32>
    %350 = arith.mulf %348, %287 : vector<8x32xf32>
    %351 = arith.mulf %347, %346 : vector<8x32xf32>
    %352 = arith.addf %350, %351 : vector<8x32xf32>
    %353 = math.tanh %352 : vector<8x32xf32>
    %354 = arith.mulf %349, %353 : vector<8x32xf32>
    %cst_94 = arith.constant dense<0.000000e+00> : vector<8x128xf32>
    %355 = tpu.matmul %354, %315, %cst_94 {dimension_numbers = #tpu.dot_dimension_numbers<[1], [0], [0], [1], [0, 0, 1, 1], [], []>} : vector<8x32xf32>, vector<32x128xf32>, vector<8x128xf32> -> vector<8x128xf32>
    %cst_95 = arith.constant dense<0.000000e+00> : vector<8x128xf32>
    %356 = tpu.matmul %309, %316, %cst_95 {dimension_numbers = #tpu.dot_dimension_numbers<[1], [0], [0], [1], [0, 0, 1, 1], [], []>} : vector<8x32xf32>, vector<32x128xf32>, vector<8x128xf32> -> vector<8x128xf32>
    %357 = arith.addf %355, %356 : vector<8x128xf32>
    %358 = arith.addf %357, %322 : vector<8x128xf32>
    %359 = vector.extract_strided_slice %358 {offsets = [0, 0], sizes = [8, 96], strides = [1, 1]} : vector<8x128xf32> to vector<8x96xf32>
    %360 = arith.negf %359 : vector<8x96xf32>
    %361 = math.exp %360 : vector<8x96xf32>
    %cst_96 = arith.constant 1.000000e+00 : f32
    %362 = vector.broadcast %cst_96 : f32 to vector<8x96xf32>
    %363 = arith.addf %362, %361 : vector<8x96xf32>
    %364 = arith.divf %362, %363 : vector<8x96xf32>
    %365 = vector.extract_strided_slice %358 {offsets = [0, 96], sizes = [8, 32], strides = [1, 1]} : vector<8x128xf32> to vector<8x32xf32>
    %366 = math.tanh %365 : vector<8x32xf32>
    %367 = vector.extract_strided_slice %364 {offsets = [0, 0], sizes = [8, 32], strides = [1, 1]} : vector<8x96xf32> to vector<8x32xf32>
    %368 = vector.extract_strided_slice %364 {offsets = [0, 32], sizes = [8, 32], strides = [1, 1]} : vector<8x96xf32> to vector<8x32xf32>
    %369 = vector.extract_strided_slice %364 {offsets = [0, 64], sizes = [8, 32], strides = [1, 1]} : vector<8x96xf32> to vector<8x32xf32>
    %370 = arith.mulf %368, %307 : vector<8x32xf32>
    %371 = arith.mulf %367, %366 : vector<8x32xf32>
    %372 = arith.addf %370, %371 : vector<8x32xf32>
    %373 = math.tanh %372 : vector<8x32xf32>
    %374 = arith.mulf %369, %373 : vector<8x32xf32>
    %cst_97 = arith.constant dense<0.000000e+00> : vector<8x128xf32>
    %375 = tpu.matmul %374, %323, %cst_97 {dimension_numbers = #tpu.dot_dimension_numbers<[1], [0], [0], [1], [0, 0, 1, 1], [], []>} : vector<8x32xf32>, vector<32x128xf32>, vector<8x128xf32> -> vector<8x128xf32>
    %376 = arith.addf %375, %326 : vector<8x128xf32>
    %377 = arith.index_cast %c1_i32_88 : i32 to index
    %c0_98 = arith.constant 0 : index
    %c0_99 = arith.constant 0 : index
    %378 = vector.load %arg17[%377, %c0_98, %c0_99] : memref<6x8x128xf32, #tpu.memory_space<vmem>>, vector<1x8x128xf32>
    %379 = vector.shape_cast %378 : vector<1x8x128xf32> to vector<8x128xf32>
    %380 = vector.shape_cast %376 : vector<8x128xf32> to vector<1x8x128xf32>
    tpu.vector_store %arg17[%377, %c0_98, %c0_99], %380 {strides = array<i32>} : memref<6x8x128xf32, #tpu.memory_space<vmem>>, vector<1x8x128xf32>,
    %381 = arith.index_cast %c1_i32_88 : i32 to index
    %c0_100 = arith.constant 0 : index
    %c0_101 = arith.constant 0 : index
    %382 = vector.load %arg2[%381, %c0_100, %c0_101] : memref<6x8x1xi32, #tpu.memory_space<vmem>>, vector<1x8x1xi32>
    %383 = vector.shape_cast %382 : vector<1x8x1xi32> to vector<8x1xi32>
    %384 = arith.index_cast %c1_i32_88 : i32 to index
    %385 = memref.load %arg0[%384] : memref<6xi32, #tpu.memory_space<smem>>
    %c1_i32_102 = arith.constant 1 : i32
    %386 = arith.cmpi eq, %385, %c1_i32_102 : i32
    %387 = arith.extui %386 : i1 to i32
    %c0_i32_103 = arith.constant 0 : i32
    %388 = arith.cmpi ne, %387, %c0_i32_103 : i32
    %389 = scf.if %388 -> (vector<8x1xi32>) {
      scf.yield %383 : vector<8x1xi32>
    } else {
      %cst_169 = arith.constant dense<0xFF800000> : vector<8xf32>
      %630 = vector.multi_reduction <maximumf>, %376, %cst_169 [1] : vector<8x128xf32> to vector<8xf32>
      %631 = vector.shape_cast %630 : vector<8xf32> to vector<8x1xf32>
      %632 = vector.broadcast %631 : vector<8x1xf32> to vector<8x128xf32>
      %633 = arith.cmpf oeq, %376, %632 : vector<8x128xf32>
      %c128_i32 = arith.constant 128 : i32
      %634 = vector.broadcast %c128_i32 : i32 to vector<8x128xi32>
      %635 = arith.select %633, %327, %634 : vector<8x128xi1>, vector<8x128xi32>
      %cst_170 = arith.constant dense<2147483647> : vector<8xi32>
      %636 = vector.multi_reduction <minsi>, %635, %cst_170 [1] : vector<8x128xi32> to vector<8xi32>
      %637 = vector.shape_cast %636 : vector<8xi32> to vector<8x1xi32>
      scf.yield %637 : vector<8x1xi32>
    }
    %c2_i32_104 = arith.constant 2 : i32
    %390 = vector.broadcast %389 : vector<8x1xi32> to vector<8x128xi32>
    %391 = arith.cmpi eq, %327, %390 : vector<8x128xi32>
    %392 = arith.extui %391 : vector<8x128xi1> to vector<8x128xi32>
    %393 = arith.sitofp %392 : vector<8x128xi32> to vector<8x128xf32>
    %c0_105 = arith.constant 0 : index
    %c0_106 = arith.constant 0 : index
    %394 = vector.load %arg9[%c0_105, %c0_106] : memref<128x128xf32, #tpu.memory_space<vmem>>, vector<128x128xf32>
    %cst_107 = arith.constant dense<0.000000e+00> : vector<8x128xf32>
    %395 = tpu.matmul %393, %394, %cst_107 {dimension_numbers = #tpu.dot_dimension_numbers<[1], [0], [0], [1], [0, 0, 1, 1], [], []>} : vector<8x128xf32>, vector<128x128xf32>, vector<8x128xf32> -> vector<8x128xf32>
    %cst_108 = arith.constant dense<0.000000e+00> : vector<8x128xf32>
    %396 = tpu.matmul %354, %314, %cst_108 {dimension_numbers = #tpu.dot_dimension_numbers<[1], [0], [0], [1], [0, 0, 1, 1], [], []>} : vector<8x32xf32>, vector<32x128xf32>, vector<8x128xf32> -> vector<8x128xf32>
    %397 = arith.addf %395, %396 : vector<8x128xf32>
    %398 = arith.addf %397, %319 : vector<8x128xf32>
    %399 = vector.extract_strided_slice %398 {offsets = [0, 0], sizes = [8, 96], strides = [1, 1]} : vector<8x128xf32> to vector<8x96xf32>
    %400 = arith.negf %399 : vector<8x96xf32>
    %401 = math.exp %400 : vector<8x96xf32>
    %cst_109 = arith.constant 1.000000e+00 : f32
    %402 = vector.broadcast %cst_109 : f32 to vector<8x96xf32>
    %403 = arith.addf %402, %401 : vector<8x96xf32>
    %404 = arith.divf %402, %403 : vector<8x96xf32>
    %405 = vector.extract_strided_slice %398 {offsets = [0, 96], sizes = [8, 32], strides = [1, 1]} : vector<8x128xf32> to vector<8x32xf32>
    %406 = math.tanh %405 : vector<8x32xf32>
    %407 = vector.extract_strided_slice %404 {offsets = [0, 0], sizes = [8, 32], strides = [1, 1]} : vector<8x96xf32> to vector<8x32xf32>
    %408 = vector.extract_strided_slice %404 {offsets = [0, 32], sizes = [8, 32], strides = [1, 1]} : vector<8x96xf32> to vector<8x32xf32>
    %409 = vector.extract_strided_slice %404 {offsets = [0, 64], sizes = [8, 32], strides = [1, 1]} : vector<8x96xf32> to vector<8x32xf32>
    %410 = arith.mulf %408, %352 : vector<8x32xf32>
    %411 = arith.mulf %407, %406 : vector<8x32xf32>
    %412 = arith.addf %410, %411 : vector<8x32xf32>
    %413 = math.tanh %412 : vector<8x32xf32>
    %414 = arith.mulf %409, %413 : vector<8x32xf32>
    %cst_110 = arith.constant dense<0.000000e+00> : vector<8x128xf32>
    %415 = tpu.matmul %414, %315, %cst_110 {dimension_numbers = #tpu.dot_dimension_numbers<[1], [0], [0], [1], [0, 0, 1, 1], [], []>} : vector<8x32xf32>, vector<32x128xf32>, vector<8x128xf32> -> vector<8x128xf32>
    %cst_111 = arith.constant dense<0.000000e+00> : vector<8x128xf32>
    %416 = tpu.matmul %374, %316, %cst_111 {dimension_numbers = #tpu.dot_dimension_numbers<[1], [0], [0], [1], [0, 0, 1, 1], [], []>} : vector<8x32xf32>, vector<32x128xf32>, vector<8x128xf32> -> vector<8x128xf32>
    %417 = arith.addf %415, %416 : vector<8x128xf32>
    %418 = arith.addf %417, %322 : vector<8x128xf32>
    %419 = vector.extract_strided_slice %418 {offsets = [0, 0], sizes = [8, 96], strides = [1, 1]} : vector<8x128xf32> to vector<8x96xf32>
    %420 = arith.negf %419 : vector<8x96xf32>
    %421 = math.exp %420 : vector<8x96xf32>
    %cst_112 = arith.constant 1.000000e+00 : f32
    %422 = vector.broadcast %cst_112 : f32 to vector<8x96xf32>
    %423 = arith.addf %422, %421 : vector<8x96xf32>
    %424 = arith.divf %422, %423 : vector<8x96xf32>
    %425 = vector.extract_strided_slice %418 {offsets = [0, 96], sizes = [8, 32], strides = [1, 1]} : vector<8x128xf32> to vector<8x32xf32>
    %426 = math.tanh %425 : vector<8x32xf32>
    %427 = vector.extract_strided_slice %424 {offsets = [0, 0], sizes = [8, 32], strides = [1, 1]} : vector<8x96xf32> to vector<8x32xf32>
    %428 = vector.extract_strided_slice %424 {offsets = [0, 32], sizes = [8, 32], strides = [1, 1]} : vector<8x96xf32> to vector<8x32xf32>
    %429 = vector.extract_strided_slice %424 {offsets = [0, 64], sizes = [8, 32], strides = [1, 1]} : vector<8x96xf32> to vector<8x32xf32>
    %430 = arith.mulf %428, %372 : vector<8x32xf32>
    %431 = arith.mulf %427, %426 : vector<8x32xf32>
    %432 = arith.addf %430, %431 : vector<8x32xf32>
    %433 = math.tanh %432 : vector<8x32xf32>
    %434 = arith.mulf %429, %433 : vector<8x32xf32>
    %cst_113 = arith.constant dense<0.000000e+00> : vector<8x128xf32>
    %435 = tpu.matmul %434, %323, %cst_113 {dimension_numbers = #tpu.dot_dimension_numbers<[1], [0], [0], [1], [0, 0, 1, 1], [], []>} : vector<8x32xf32>, vector<32x128xf32>, vector<8x128xf32> -> vector<8x128xf32>
    %436 = arith.addf %435, %326 : vector<8x128xf32>
    %437 = arith.index_cast %c2_i32_104 : i32 to index
    %c0_114 = arith.constant 0 : index
    %c0_115 = arith.constant 0 : index
    %438 = vector.load %arg17[%437, %c0_114, %c0_115] : memref<6x8x128xf32, #tpu.memory_space<vmem>>, vector<1x8x128xf32>
    %439 = vector.shape_cast %438 : vector<1x8x128xf32> to vector<8x128xf32>
    %440 = vector.shape_cast %436 : vector<8x128xf32> to vector<1x8x128xf32>
    tpu.vector_store %arg17[%437, %c0_114, %c0_115], %440 {strides = array<i32>} : memref<6x8x128xf32, #tpu.memory_space<vmem>>, vector<1x8x128xf32>,
    %441 = arith.index_cast %c2_i32_104 : i32 to index
    %c0_116 = arith.constant 0 : index
    %c0_117 = arith.constant 0 : index
    %442 = vector.load %arg2[%441, %c0_116, %c0_117] : memref<6x8x1xi32, #tpu.memory_space<vmem>>, vector<1x8x1xi32>
    %443 = vector.shape_cast %442 : vector<1x8x1xi32> to vector<8x1xi32>
    %444 = arith.index_cast %c2_i32_104 : i32 to index
    %445 = memref.load %arg0[%444] : memref<6xi32, #tpu.memory_space<smem>>
    %c1_i32_118 = arith.constant 1 : i32
    %446 = arith.cmpi eq, %445, %c1_i32_118 : i32
    %447 = arith.extui %446 : i1 to i32
    %c0_i32_119 = arith.constant 0 : i32
    %448 = arith.cmpi ne, %447, %c0_i32_119 : i32
    %449 = scf.if %448 -> (vector<8x1xi32>) {
      scf.yield %443 : vector<8x1xi32>
    } else {
      %cst_169 = arith.constant dense<0xFF800000> : vector<8xf32>
      %630 = vector.multi_reduction <maximumf>, %436, %cst_169 [1] : vector<8x128xf32> to vector<8xf32>
      %631 = vector.shape_cast %630 : vector<8xf32> to vector<8x1xf32>
      %632 = vector.broadcast %631 : vector<8x1xf32> to vector<8x128xf32>
      %633 = arith.cmpf oeq, %436, %632 : vector<8x128xf32>
      %c128_i32 = arith.constant 128 : i32
      %634 = vector.broadcast %c128_i32 : i32 to vector<8x128xi32>
      %635 = arith.select %633, %327, %634 : vector<8x128xi1>, vector<8x128xi32>
      %cst_170 = arith.constant dense<2147483647> : vector<8xi32>
      %636 = vector.multi_reduction <minsi>, %635, %cst_170 [1] : vector<8x128xi32> to vector<8xi32>
      %637 = vector.shape_cast %636 : vector<8xi32> to vector<8x1xi32>
      scf.yield %637 : vector<8x1xi32>
    }
    %c3_i32_120 = arith.constant 3 : i32
    %450 = vector.broadcast %449 : vector<8x1xi32> to vector<8x128xi32>
    %451 = arith.cmpi eq, %327, %450 : vector<8x128xi32>
    %452 = arith.extui %451 : vector<8x128xi1> to vector<8x128xi32>
    %453 = arith.sitofp %452 : vector<8x128xi32> to vector<8x128xf32>
    %c0_121 = arith.constant 0 : index
    %c0_122 = arith.constant 0 : index
    %454 = vector.load %arg9[%c0_121, %c0_122] : memref<128x128xf32, #tpu.memory_space<vmem>>, vector<128x128xf32>
    %cst_123 = arith.constant dense<0.000000e+00> : vector<8x128xf32>
    %455 = tpu.matmul %453, %454, %cst_123 {dimension_numbers = #tpu.dot_dimension_numbers<[1], [0], [0], [1], [0, 0, 1, 1], [], []>} : vector<8x128xf32>, vector<128x128xf32>, vector<8x128xf32> -> vector<8x128xf32>
    %cst_124 = arith.constant dense<0.000000e+00> : vector<8x128xf32>
    %456 = tpu.matmul %414, %314, %cst_124 {dimension_numbers = #tpu.dot_dimension_numbers<[1], [0], [0], [1], [0, 0, 1, 1], [], []>} : vector<8x32xf32>, vector<32x128xf32>, vector<8x128xf32> -> vector<8x128xf32>
    %457 = arith.addf %455, %456 : vector<8x128xf32>
    %458 = arith.addf %457, %319 : vector<8x128xf32>
    %459 = vector.extract_strided_slice %458 {offsets = [0, 0], sizes = [8, 96], strides = [1, 1]} : vector<8x128xf32> to vector<8x96xf32>
    %460 = arith.negf %459 : vector<8x96xf32>
    %461 = math.exp %460 : vector<8x96xf32>
    %cst_125 = arith.constant 1.000000e+00 : f32
    %462 = vector.broadcast %cst_125 : f32 to vector<8x96xf32>
    %463 = arith.addf %462, %461 : vector<8x96xf32>
    %464 = arith.divf %462, %463 : vector<8x96xf32>
    %465 = vector.extract_strided_slice %458 {offsets = [0, 96], sizes = [8, 32], strides = [1, 1]} : vector<8x128xf32> to vector<8x32xf32>
    %466 = math.tanh %465 : vector<8x32xf32>
    %467 = vector.extract_strided_slice %464 {offsets = [0, 0], sizes = [8, 32], strides = [1, 1]} : vector<8x96xf32> to vector<8x32xf32>
    %468 = vector.extract_strided_slice %464 {offsets = [0, 32], sizes = [8, 32], strides = [1, 1]} : vector<8x96xf32> to vector<8x32xf32>
    %469 = vector.extract_strided_slice %464 {offsets = [0, 64], sizes = [8, 32], strides = [1, 1]} : vector<8x96xf32> to vector<8x32xf32>
    %470 = arith.mulf %468, %412 : vector<8x32xf32>
    %471 = arith.mulf %467, %466 : vector<8x32xf32>
    %472 = arith.addf %470, %471 : vector<8x32xf32>
    %473 = math.tanh %472 : vector<8x32xf32>
    %474 = arith.mulf %469, %473 : vector<8x32xf32>
    %cst_126 = arith.constant dense<0.000000e+00> : vector<8x128xf32>
    %475 = tpu.matmul %474, %315, %cst_126 {dimension_numbers = #tpu.dot_dimension_numbers<[1], [0], [0], [1], [0, 0, 1, 1], [], []>} : vector<8x32xf32>, vector<32x128xf32>, vector<8x128xf32> -> vector<8x128xf32>
    %cst_127 = arith.constant dense<0.000000e+00> : vector<8x128xf32>
    %476 = tpu.matmul %434, %316, %cst_127 {dimension_numbers = #tpu.dot_dimension_numbers<[1], [0], [0], [1], [0, 0, 1, 1], [], []>} : vector<8x32xf32>, vector<32x128xf32>, vector<8x128xf32> -> vector<8x128xf32>
    %477 = arith.addf %475, %476 : vector<8x128xf32>
    %478 = arith.addf %477, %322 : vector<8x128xf32>
    %479 = vector.extract_strided_slice %478 {offsets = [0, 0], sizes = [8, 96], strides = [1, 1]} : vector<8x128xf32> to vector<8x96xf32>
    %480 = arith.negf %479 : vector<8x96xf32>
    %481 = math.exp %480 : vector<8x96xf32>
    %cst_128 = arith.constant 1.000000e+00 : f32
    %482 = vector.broadcast %cst_128 : f32 to vector<8x96xf32>
    %483 = arith.addf %482, %481 : vector<8x96xf32>
    %484 = arith.divf %482, %483 : vector<8x96xf32>
    %485 = vector.extract_strided_slice %478 {offsets = [0, 96], sizes = [8, 32], strides = [1, 1]} : vector<8x128xf32> to vector<8x32xf32>
    %486 = math.tanh %485 : vector<8x32xf32>
    %487 = vector.extract_strided_slice %484 {offsets = [0, 0], sizes = [8, 32], strides = [1, 1]} : vector<8x96xf32> to vector<8x32xf32>
    %488 = vector.extract_strided_slice %484 {offsets = [0, 32], sizes = [8, 32], strides = [1, 1]} : vector<8x96xf32> to vector<8x32xf32>
    %489 = vector.extract_strided_slice %484 {offsets = [0, 64], sizes = [8, 32], strides = [1, 1]} : vector<8x96xf32> to vector<8x32xf32>
    %490 = arith.mulf %488, %432 : vector<8x32xf32>
    %491 = arith.mulf %487, %486 : vector<8x32xf32>
    %492 = arith.addf %490, %491 : vector<8x32xf32>
    %493 = math.tanh %492 : vector<8x32xf32>
    %494 = arith.mulf %489, %493 : vector<8x32xf32>
    %cst_129 = arith.constant dense<0.000000e+00> : vector<8x128xf32>
    %495 = tpu.matmul %494, %323, %cst_129 {dimension_numbers = #tpu.dot_dimension_numbers<[1], [0], [0], [1], [0, 0, 1, 1], [], []>} : vector<8x32xf32>, vector<32x128xf32>, vector<8x128xf32> -> vector<8x128xf32>
    %496 = arith.addf %495, %326 : vector<8x128xf32>
    %497 = arith.index_cast %c3_i32_120 : i32 to index
    %c0_130 = arith.constant 0 : index
    %c0_131 = arith.constant 0 : index
    %498 = vector.load %arg17[%497, %c0_130, %c0_131] : memref<6x8x128xf32, #tpu.memory_space<vmem>>, vector<1x8x128xf32>
    %499 = vector.shape_cast %498 : vector<1x8x128xf32> to vector<8x128xf32>
    %500 = vector.shape_cast %496 : vector<8x128xf32> to vector<1x8x128xf32>
    tpu.vector_store %arg17[%497, %c0_130, %c0_131], %500 {strides = array<i32>} : memref<6x8x128xf32, #tpu.memory_space<vmem>>, vector<1x8x128xf32>,
    %501 = arith.index_cast %c3_i32_120 : i32 to index
    %c0_132 = arith.constant 0 : index
    %c0_133 = arith.constant 0 : index
    %502 = vector.load %arg2[%501, %c0_132, %c0_133] : memref<6x8x1xi32, #tpu.memory_space<vmem>>, vector<1x8x1xi32>
    %503 = vector.shape_cast %502 : vector<1x8x1xi32> to vector<8x1xi32>
    %504 = arith.index_cast %c3_i32_120 : i32 to index
    %505 = memref.load %arg0[%504] : memref<6xi32, #tpu.memory_space<smem>>
    %c1_i32_134 = arith.constant 1 : i32
    %506 = arith.cmpi eq, %505, %c1_i32_134 : i32
    %507 = arith.extui %506 : i1 to i32
    %c0_i32_135 = arith.constant 0 : i32
    %508 = arith.cmpi ne, %507, %c0_i32_135 : i32
    %509 = scf.if %508 -> (vector<8x1xi32>) {
      scf.yield %503 : vector<8x1xi32>
    } else {
      %cst_169 = arith.constant dense<0xFF800000> : vector<8xf32>
      %630 = vector.multi_reduction <maximumf>, %496, %cst_169 [1] : vector<8x128xf32> to vector<8xf32>
      %631 = vector.shape_cast %630 : vector<8xf32> to vector<8x1xf32>
      %632 = vector.broadcast %631 : vector<8x1xf32> to vector<8x128xf32>
      %633 = arith.cmpf oeq, %496, %632 : vector<8x128xf32>
      %c128_i32 = arith.constant 128 : i32
      %634 = vector.broadcast %c128_i32 : i32 to vector<8x128xi32>
      %635 = arith.select %633, %327, %634 : vector<8x128xi1>, vector<8x128xi32>
      %cst_170 = arith.constant dense<2147483647> : vector<8xi32>
      %636 = vector.multi_reduction <minsi>, %635, %cst_170 [1] : vector<8x128xi32> to vector<8xi32>
      %637 = vector.shape_cast %636 : vector<8xi32> to vector<8x1xi32>
      scf.yield %637 : vector<8x1xi32>
    }
    %c4_i32_136 = arith.constant 4 : i32
    %510 = vector.broadcast %509 : vector<8x1xi32> to vector<8x128xi32>
    %511 = arith.cmpi eq, %327, %510 : vector<8x128xi32>
    %512 = arith.extui %511 : vector<8x128xi1> to vector<8x128xi32>
    %513 = arith.sitofp %512 : vector<8x128xi32> to vector<8x128xf32>
    %c0_137 = arith.constant 0 : index
    %c0_138 = arith.constant 0 : index
    %514 = vector.load %arg9[%c0_137, %c0_138] : memref<128x128xf32, #tpu.memory_space<vmem>>, vector<128x128xf32>
    %cst_139 = arith.constant dense<0.000000e+00> : vector<8x128xf32>
    %515 = tpu.matmul %513, %514, %cst_139 {dimension_numbers = #tpu.dot_dimension_numbers<[1], [0], [0], [1], [0, 0, 1, 1], [], []>} : vector<8x128xf32>, vector<128x128xf32>, vector<8x128xf32> -> vector<8x128xf32>
    %cst_140 = arith.constant dense<0.000000e+00> : vector<8x128xf32>
    %516 = tpu.matmul %474, %314, %cst_140 {dimension_numbers = #tpu.dot_dimension_numbers<[1], [0], [0], [1], [0, 0, 1, 1], [], []>} : vector<8x32xf32>, vector<32x128xf32>, vector<8x128xf32> -> vector<8x128xf32>
    %517 = arith.addf %515, %516 : vector<8x128xf32>
    %518 = arith.addf %517, %319 : vector<8x128xf32>
    %519 = vector.extract_strided_slice %518 {offsets = [0, 0], sizes = [8, 96], strides = [1, 1]} : vector<8x128xf32> to vector<8x96xf32>
    %520 = arith.negf %519 : vector<8x96xf32>
    %521 = math.exp %520 : vector<8x96xf32>
    %cst_141 = arith.constant 1.000000e+00 : f32
    %522 = vector.broadcast %cst_141 : f32 to vector<8x96xf32>
    %523 = arith.addf %522, %521 : vector<8x96xf32>
    %524 = arith.divf %522, %523 : vector<8x96xf32>
    %525 = vector.extract_strided_slice %518 {offsets = [0, 96], sizes = [8, 32], strides = [1, 1]} : vector<8x128xf32> to vector<8x32xf32>
    %526 = math.tanh %525 : vector<8x32xf32>
    %527 = vector.extract_strided_slice %524 {offsets = [0, 0], sizes = [8, 32], strides = [1, 1]} : vector<8x96xf32> to vector<8x32xf32>
    %528 = vector.extract_strided_slice %524 {offsets = [0, 32], sizes = [8, 32], strides = [1, 1]} : vector<8x96xf32> to vector<8x32xf32>
    %529 = vector.extract_strided_slice %524 {offsets = [0, 64], sizes = [8, 32], strides = [1, 1]} : vector<8x96xf32> to vector<8x32xf32>
    %530 = arith.mulf %528, %472 : vector<8x32xf32>
    %531 = arith.mulf %527, %526 : vector<8x32xf32>
    %532 = arith.addf %530, %531 : vector<8x32xf32>
    %533 = math.tanh %532 : vector<8x32xf32>
    %534 = arith.mulf %529, %533 : vector<8x32xf32>
    %cst_142 = arith.constant dense<0.000000e+00> : vector<8x128xf32>
    %535 = tpu.matmul %534, %315, %cst_142 {dimension_numbers = #tpu.dot_dimension_numbers<[1], [0], [0], [1], [0, 0, 1, 1], [], []>} : vector<8x32xf32>, vector<32x128xf32>, vector<8x128xf32> -> vector<8x128xf32>
    %cst_143 = arith.constant dense<0.000000e+00> : vector<8x128xf32>
    %536 = tpu.matmul %494, %316, %cst_143 {dimension_numbers = #tpu.dot_dimension_numbers<[1], [0], [0], [1], [0, 0, 1, 1], [], []>} : vector<8x32xf32>, vector<32x128xf32>, vector<8x128xf32> -> vector<8x128xf32>
    %537 = arith.addf %535, %536 : vector<8x128xf32>
    %538 = arith.addf %537, %322 : vector<8x128xf32>
    %539 = vector.extract_strided_slice %538 {offsets = [0, 0], sizes = [8, 96], strides = [1, 1]} : vector<8x128xf32> to vector<8x96xf32>
    %540 = arith.negf %539 : vector<8x96xf32>
    %541 = math.exp %540 : vector<8x96xf32>
    %cst_144 = arith.constant 1.000000e+00 : f32
    %542 = vector.broadcast %cst_144 : f32 to vector<8x96xf32>
    %543 = arith.addf %542, %541 : vector<8x96xf32>
    %544 = arith.divf %542, %543 : vector<8x96xf32>
    %545 = vector.extract_strided_slice %538 {offsets = [0, 96], sizes = [8, 32], strides = [1, 1]} : vector<8x128xf32> to vector<8x32xf32>
    %546 = math.tanh %545 : vector<8x32xf32>
    %547 = vector.extract_strided_slice %544 {offsets = [0, 0], sizes = [8, 32], strides = [1, 1]} : vector<8x96xf32> to vector<8x32xf32>
    %548 = vector.extract_strided_slice %544 {offsets = [0, 32], sizes = [8, 32], strides = [1, 1]} : vector<8x96xf32> to vector<8x32xf32>
    %549 = vector.extract_strided_slice %544 {offsets = [0, 64], sizes = [8, 32], strides = [1, 1]} : vector<8x96xf32> to vector<8x32xf32>
    %550 = arith.mulf %548, %492 : vector<8x32xf32>
    %551 = arith.mulf %547, %546 : vector<8x32xf32>
    %552 = arith.addf %550, %551 : vector<8x32xf32>
    %553 = math.tanh %552 : vector<8x32xf32>
    %554 = arith.mulf %549, %553 : vector<8x32xf32>
    %cst_145 = arith.constant dense<0.000000e+00> : vector<8x128xf32>
    %555 = tpu.matmul %554, %323, %cst_145 {dimension_numbers = #tpu.dot_dimension_numbers<[1], [0], [0], [1], [0, 0, 1, 1], [], []>} : vector<8x32xf32>, vector<32x128xf32>, vector<8x128xf32> -> vector<8x128xf32>
    %556 = arith.addf %555, %326 : vector<8x128xf32>
    %557 = arith.index_cast %c4_i32_136 : i32 to index
    %c0_146 = arith.constant 0 : index
    %c0_147 = arith.constant 0 : index
    %558 = vector.load %arg17[%557, %c0_146, %c0_147] : memref<6x8x128xf32, #tpu.memory_space<vmem>>, vector<1x8x128xf32>
    %559 = vector.shape_cast %558 : vector<1x8x128xf32> to vector<8x128xf32>
    %560 = vector.shape_cast %556 : vector<8x128xf32> to vector<1x8x128xf32>
    tpu.vector_store %arg17[%557, %c0_146, %c0_147], %560 {strides = array<i32>} : memref<6x8x128xf32, #tpu.memory_space<vmem>>, vector<1x8x128xf32>,
    %561 = arith.index_cast %c4_i32_136 : i32 to index
    %c0_148 = arith.constant 0 : index
    %c0_149 = arith.constant 0 : index
    %562 = vector.load %arg2[%561, %c0_148, %c0_149] : memref<6x8x1xi32, #tpu.memory_space<vmem>>, vector<1x8x1xi32>
    %563 = vector.shape_cast %562 : vector<1x8x1xi32> to vector<8x1xi32>
    %564 = arith.index_cast %c4_i32_136 : i32 to index
    %565 = memref.load %arg0[%564] : memref<6xi32, #tpu.memory_space<smem>>
    %c1_i32_150 = arith.constant 1 : i32
    %566 = arith.cmpi eq, %565, %c1_i32_150 : i32
    %567 = arith.extui %566 : i1 to i32
    %c0_i32_151 = arith.constant 0 : i32
    %568 = arith.cmpi ne, %567, %c0_i32_151 : i32
    %569 = scf.if %568 -> (vector<8x1xi32>) {
      scf.yield %563 : vector<8x1xi32>
    } else {
      %cst_169 = arith.constant dense<0xFF800000> : vector<8xf32>
      %630 = vector.multi_reduction <maximumf>, %556, %cst_169 [1] : vector<8x128xf32> to vector<8xf32>
      %631 = vector.shape_cast %630 : vector<8xf32> to vector<8x1xf32>
      %632 = vector.broadcast %631 : vector<8x1xf32> to vector<8x128xf32>
      %633 = arith.cmpf oeq, %556, %632 : vector<8x128xf32>
      %c128_i32 = arith.constant 128 : i32
      %634 = vector.broadcast %c128_i32 : i32 to vector<8x128xi32>
      %635 = arith.select %633, %327, %634 : vector<8x128xi1>, vector<8x128xi32>
      %cst_170 = arith.constant dense<2147483647> : vector<8xi32>
      %636 = vector.multi_reduction <minsi>, %635, %cst_170 [1] : vector<8x128xi32> to vector<8xi32>
      %637 = vector.shape_cast %636 : vector<8xi32> to vector<8x1xi32>
      scf.yield %637 : vector<8x1xi32>
    }
    %c5_i32_152 = arith.constant 5 : i32
    %570 = vector.broadcast %569 : vector<8x1xi32> to vector<8x128xi32>
    %571 = arith.cmpi eq, %327, %570 : vector<8x128xi32>
    %572 = arith.extui %571 : vector<8x128xi1> to vector<8x128xi32>
    %573 = arith.sitofp %572 : vector<8x128xi32> to vector<8x128xf32>
    %c0_153 = arith.constant 0 : index
    %c0_154 = arith.constant 0 : index
    %574 = vector.load %arg9[%c0_153, %c0_154] : memref<128x128xf32, #tpu.memory_space<vmem>>, vector<128x128xf32>
    %cst_155 = arith.constant dense<0.000000e+00> : vector<8x128xf32>
    %575 = tpu.matmul %573, %574, %cst_155 {dimension_numbers = #tpu.dot_dimension_numbers<[1], [0], [0], [1], [0, 0, 1, 1], [], []>} : vector<8x128xf32>, vector<128x128xf32>, vector<8x128xf32> -> vector<8x128xf32>
    %cst_156 = arith.constant dense<0.000000e+00> : vector<8x128xf32>
    %576 = tpu.matmul %534, %314, %cst_156 {dimension_numbers = #tpu.dot_dimension_numbers<[1], [0], [0], [1], [0, 0, 1, 1], [], []>} : vector<8x32xf32>, vector<32x128xf32>, vector<8x128xf32> -> vector<8x128xf32>
    %577 = arith.addf %575, %576 : vector<8x128xf32>
    %578 = arith.addf %577, %319 : vector<8x128xf32>
    %579 = vector.extract_strided_slice %578 {offsets = [0, 0], sizes = [8, 96], strides = [1, 1]} : vector<8x128xf32> to vector<8x96xf32>
    %580 = arith.negf %579 : vector<8x96xf32>
    %581 = math.exp %580 : vector<8x96xf32>
    %cst_157 = arith.constant 1.000000e+00 : f32
    %582 = vector.broadcast %cst_157 : f32 to vector<8x96xf32>
    %583 = arith.addf %582, %581 : vector<8x96xf32>
    %584 = arith.divf %582, %583 : vector<8x96xf32>
    %585 = vector.extract_strided_slice %578 {offsets = [0, 96], sizes = [8, 32], strides = [1, 1]} : vector<8x128xf32> to vector<8x32xf32>
    %586 = math.tanh %585 : vector<8x32xf32>
    %587 = vector.extract_strided_slice %584 {offsets = [0, 0], sizes = [8, 32], strides = [1, 1]} : vector<8x96xf32> to vector<8x32xf32>
    %588 = vector.extract_strided_slice %584 {offsets = [0, 32], sizes = [8, 32], strides = [1, 1]} : vector<8x96xf32> to vector<8x32xf32>
    %589 = vector.extract_strided_slice %584 {offsets = [0, 64], sizes = [8, 32], strides = [1, 1]} : vector<8x96xf32> to vector<8x32xf32>
    %590 = arith.mulf %588, %532 : vector<8x32xf32>
    %591 = arith.mulf %587, %586 : vector<8x32xf32>
    %592 = arith.addf %590, %591 : vector<8x32xf32>
    %593 = math.tanh %592 : vector<8x32xf32>
    %594 = arith.mulf %589, %593 : vector<8x32xf32>
    %cst_158 = arith.constant dense<0.000000e+00> : vector<8x128xf32>
    %595 = tpu.matmul %594, %315, %cst_158 {dimension_numbers = #tpu.dot_dimension_numbers<[1], [0], [0], [1], [0, 0, 1, 1], [], []>} : vector<8x32xf32>, vector<32x128xf32>, vector<8x128xf32> -> vector<8x128xf32>
    %cst_159 = arith.constant dense<0.000000e+00> : vector<8x128xf32>
    %596 = tpu.matmul %554, %316, %cst_159 {dimension_numbers = #tpu.dot_dimension_numbers<[1], [0], [0], [1], [0, 0, 1, 1], [], []>} : vector<8x32xf32>, vector<32x128xf32>, vector<8x128xf32> -> vector<8x128xf32>
    %597 = arith.addf %595, %596 : vector<8x128xf32>
    %598 = arith.addf %597, %322 : vector<8x128xf32>
    %599 = vector.extract_strided_slice %598 {offsets = [0, 0], sizes = [8, 96], strides = [1, 1]} : vector<8x128xf32> to vector<8x96xf32>
    %600 = arith.negf %599 : vector<8x96xf32>
    %601 = math.exp %600 : vector<8x96xf32>
    %cst_160 = arith.constant 1.000000e+00 : f32
    %602 = vector.broadcast %cst_160 : f32 to vector<8x96xf32>
    %603 = arith.addf %602, %601 : vector<8x96xf32>
    %604 = arith.divf %602, %603 : vector<8x96xf32>
    %605 = vector.extract_strided_slice %598 {offsets = [0, 96], sizes = [8, 32], strides = [1, 1]} : vector<8x128xf32> to vector<8x32xf32>
    %606 = math.tanh %605 : vector<8x32xf32>
    %607 = vector.extract_strided_slice %604 {offsets = [0, 0], sizes = [8, 32], strides = [1, 1]} : vector<8x96xf32> to vector<8x32xf32>
    %608 = vector.extract_strided_slice %604 {offsets = [0, 32], sizes = [8, 32], strides = [1, 1]} : vector<8x96xf32> to vector<8x32xf32>
    %609 = vector.extract_strided_slice %604 {offsets = [0, 64], sizes = [8, 32], strides = [1, 1]} : vector<8x96xf32> to vector<8x32xf32>
    %610 = arith.mulf %608, %552 : vector<8x32xf32>
    %611 = arith.mulf %607, %606 : vector<8x32xf32>
    %612 = arith.addf %610, %611 : vector<8x32xf32>
    %613 = math.tanh %612 : vector<8x32xf32>
    %614 = arith.mulf %609, %613 : vector<8x32xf32>
    %cst_161 = arith.constant dense<0.000000e+00> : vector<8x128xf32>
    %615 = tpu.matmul %614, %323, %cst_161 {dimension_numbers = #tpu.dot_dimension_numbers<[1], [0], [0], [1], [0, 0, 1, 1], [], []>} : vector<8x32xf32>, vector<32x128xf32>, vector<8x128xf32> -> vector<8x128xf32>
    %616 = arith.addf %615, %326 : vector<8x128xf32>
    %617 = arith.index_cast %c5_i32_152 : i32 to index
    %c0_162 = arith.constant 0 : index
    %c0_163 = arith.constant 0 : index
    %618 = vector.load %arg17[%617, %c0_162, %c0_163] : memref<6x8x128xf32, #tpu.memory_space<vmem>>, vector<1x8x128xf32>
    %619 = vector.shape_cast %618 : vector<1x8x128xf32> to vector<8x128xf32>
    %620 = vector.shape_cast %616 : vector<8x128xf32> to vector<1x8x128xf32>
    tpu.vector_store %arg17[%617, %c0_162, %c0_163], %620 {strides = array<i32>} : memref<6x8x128xf32, #tpu.memory_space<vmem>>, vector<1x8x128xf32>,
    %621 = arith.index_cast %c5_i32_152 : i32 to index
    %c0_164 = arith.constant 0 : index
    %c0_165 = arith.constant 0 : index
    %622 = vector.load %arg2[%621, %c0_164, %c0_165] : memref<6x8x1xi32, #tpu.memory_space<vmem>>, vector<1x8x1xi32>
    %623 = vector.shape_cast %622 : vector<1x8x1xi32> to vector<8x1xi32>
    %624 = arith.index_cast %c5_i32_152 : i32 to index
    %625 = memref.load %arg0[%624] : memref<6xi32, #tpu.memory_space<smem>>
    %c1_i32_166 = arith.constant 1 : i32
    %626 = arith.cmpi eq, %625, %c1_i32_166 : i32
    %627 = arith.extui %626 : i1 to i32
    %c0_i32_167 = arith.constant 0 : i32
    %628 = arith.cmpi ne, %627, %c0_i32_167 : i32
    %629 = scf.if %628 -> (vector<8x1xi32>) {
      scf.yield %623 : vector<8x1xi32>
    } else {
      %cst_169 = arith.constant dense<0xFF800000> : vector<8xf32>
      %630 = vector.multi_reduction <maximumf>, %616, %cst_169 [1] : vector<8x128xf32> to vector<8xf32>
      %631 = vector.shape_cast %630 : vector<8xf32> to vector<8x1xf32>
      %632 = vector.broadcast %631 : vector<8x1xf32> to vector<8x128xf32>
      %633 = arith.cmpf oeq, %616, %632 : vector<8x128xf32>
      %c128_i32 = arith.constant 128 : i32
      %634 = vector.broadcast %c128_i32 : i32 to vector<8x128xi32>
      %635 = arith.select %633, %327, %634 : vector<8x128xi1>, vector<8x128xi32>
      %cst_170 = arith.constant dense<2147483647> : vector<8xi32>
      %636 = vector.multi_reduction <minsi>, %635, %cst_170 [1] : vector<8x128xi32> to vector<8xi32>
      %637 = vector.shape_cast %636 : vector<8xi32> to vector<8x1xi32>
      scf.yield %637 : vector<8x1xi32>
    }
    %c5_i32_168 = arith.constant 5 : i32
    return
  }
}

</mosaic_0001>

<bundles_post_ra>
// kernel: seq2seq_forward.1
= control target key start
LH: loop header
LB: loop body
LE: loop exit
PB: predicated region body
PF: predicated region fallthrough
CT: control target
= control target key end

     0   :  { %s7376_s0 = inlined_call_operand.vmem [shape: s32[6], index: 0, kind: input, shape index: {}]   ;;  %s7377_s1 = inlined_call_operand.vmem [shape: f32[7,8,32], index: 1, kind: input, shape index: {}]   ;;  %s7378_s2 = inlined_call_operand.vmem [shape: s32[6,8,1], index: 2, kind: input, shape index: {}]   ;;  %s7379_s3 = inlined_call_operand.vmem [shape: f32[32,128], index: 3, kind: input, shape index: {}]   ;;  %s7380_s4 = inlined_call_operand.vmem [shape: f32[32,128], index: 4, kind: input, shape index: {}]   ;;  %s7381_s5 = inlined_call_operand.vmem [shape: f32[1,128], index: 5, kind: input, shape index: {}]   ;;  %s7382_s6 = inlined_call_operand.vmem [shape: f32[32,128], index: 6, kind: input, shape index: {}]   ;;  %s7383_s7 = inlined_call_operand.vmem [shape: f32[32,128], index: 7, kind: input, shape index: {}]   ;;  %s7384_s8 = inlined_call_operand.vmem [shape: f32[1,128], index: 8, kind: input, shape index: {}]   ;;  %s7385_s9 = inlined_call_operand.vmem [shape: f32[128,128], index: 9, kind: input, shape index: {}]   ;;  %s7386_s10 = inlined_call_operand.vmem [shape: f32[32,128], index: 10, kind: input, shape index: {}]   ;;  %s7387_s11 = inlined_call_operand.vmem [shape: f32[1,128], index: 11, kind: input, shape index: {}]   ;;  %s7388_s12 = inlined_call_operand.vmem [shape: f32[32,128], index: 12, kind: input, shape index: {}]   ;;  %s7389_s13 = inlined_call_operand.vmem [shape: f32[32,128], index: 13, kind: input, shape index: {}]   ;;  %s7390_s14 = inlined_call_operand.vmem [shape: f32[1,128], index: 14, kind: input, shape index: {}]   ;;  %s7391_s15 = inlined_call_operand.vmem [shape: f32[32,128], index: 15, kind: input, shape index: {}]   ;;  %s7392_s16 = inlined_call_operand.vmem [shape: f32[1,128], index: 16, kind: input, shape index: {}]   ;;  %s7393_s17 = inlined_call_operand.vmem [shape: f32[6,8,128], index: 17, kind: output, shape index: {}]  }
   0x1   :  { %7395 = sst [smem:[#allocation6_spill]] %s7376_s0 }
   0x2   :  { %7396 = sst [smem:[#allocation7_spill]] %s7377_s1 }
   0x3   :  { %22 = vsyncpa [#allocation4], 0  ;;  %s7397_s26 = sld [smem:[#allocation6_spill]] }
   0x9   :  { %s29_s27 = sshll.u32 %s7397_s26, 4  ;;  %s30_s27 = int_to_ptr.vmem [resolvable:$true] %s29_s27 }
   0xa   :  { %s6145_s28 = scalar_lea.vmem %s30_s27, 16  ;;  %p6150_p1 = scmp.lt.s32.totalorder %s30_s27, %s30_s27 }
   0xb   :  { %p6146_p0 = scmp.ne.s32.totalorder %s30_s27, %s6145_s28  ;;  %p6151_p2 = scmp.lt.s32.totalorder %s6145_s28, %s6145_s28 }
   0xd   :  { %p6152_p3 = por %p6151_p2, %p6150_p1 }
   0xf   :  { %p6153_p4 = pnand %p6152_p3, %p6146_p0 }
  0x11   :  { %6156 = shalt.err (!%p6153_p4)
}
  0x12   :  { %s6191_s29 = smov [#allocation3]  }
  0x13   :  { %32 = dma.vmem_to_smem %s30_s27, 16, %s6191_s29, [#allocation4]  }
  0x14   :  { %6173 = dma.done.wait [#allocation4], 16  }
  0x15   :  { %6174 = vsyncadd [#allocation4], 4294967280 }
  0x16   :  { %68 = sfence }
  0x17   :  { %v76_v0 = vld [vmem:[%s7379_s3] sm:$0xff]  ;;  %v77_v1 = vld [vmem:[%s7379_s3 + $0x8] sm:$0xff]  ;;  %v6192_v3 = vmov 0.0|0.0   ;;  %v78_v6 = vld [vmem:[%s7379_s3 + $0x10] sm:$0xff]  ;;  %v6193_v8 = vmov 0.0   ;;  %vm6194_vm0 = vmmov 0  }
  0x18   :  { %v209_v2 = vld [vmem:[%s7380_s4] sm:$0xff]  ;;  %5534 = vmatprep.subr.bf16.mxu0 %v6192_v3  ;;  %5540 = vmatprep.subr.bf16.mxu1 %v6192_v3  ;;  %v5535_v4 = vpack.c.bf16 %v77_v1, %v76_v0  ;;  %v210_v5 = vld [vmem:[%s7380_s4 + $0x8] sm:$0xff]  ;;  %v79_v7 = vld [vmem:[%s7379_s3 + $0x18] sm:$0xff]  ;;  %2143 = vst [vmem:[%s7393_s17] sm:$0xff] %v6193_v8  ;;  %s7398_s19 = sld [smem:[#allocation7_spill]]  ;;  %vm80_vm1 = vcmask 261120   ;;  %s6195_s21 = smov 32  }
  0x19   :  { %v6316_v9 = vpack.c.bf16 %v210_v5, %v209_v2  ;;  %v211_v10 = vld [vmem:[%s7380_s4 + $0x10] sm:$0xff]  ;;  %v212_v11 = vld [vmem:[%s7380_s4 + $0x18] sm:$0xff]  ;;  %4887 = vmatprep.mubr.msk.f32.mxu0 %vm6194_vm0, %v6193_v8  ;;  %4916 = vmatprep.mubr.msk.f32.mxu1 %vm6194_vm0, %v6193_v8  ;;  %v5538_v12 = vpack.c.bf16 %v79_v7, %v78_v6  ;;  %v6348_v16 = vld [vmem:[%s7381_s5] ss:$0 sm:$0xff]  ;;  %s6196_s5 = smov 64  }
  0x1a   :  { %5536 = vmatpush3.bf16.msra.mxu0 %v5535_v4  ;;  %v6330_v13 = vpack.c.bf16 %v212_v11, %v211_v10  ;;  %v217_v32 = vld [vmem:[%s7383_s7] sm:$0xff]  ;;  %v218_v33 = vld [vmem:[%s7383_s7 + $0x8] sm:$0xff]  ;;  %v219_v34 = vld [vmem:[%s7383_s7 + $0x10] sm:$0xff] }
  0x1b   :  { %5542 = vmatpush3.bf16.msra.mxu1 %v6316_v9  ;;  %5537 = vmatprep.subr.bf16.mxu0 %v6192_v3  ;;  %v6365_v35 = vpack.c.bf16 %v218_v33, %v217_v32  ;;  %v220_v36 = vld [vmem:[%s7383_s7 + $0x18] sm:$0xff]  ;;  %v213_v38 = vld [vmem:[%s7382_s6] sm:$0xff]  ;;  %v214_v39 = vld [vmem:[%s7382_s6 + $0x8] sm:$0xff] }
  0x1c   :  { %5543 = vmatprep.subr.bf16.mxu1 %v6192_v3  ;;  %v6371_v37 = vpack.c.bf16 %v220_v36, %v219_v34  ;;  %v6383_v40 = vpack.c.bf16 %v214_v39, %v213_v38  ;;  %v215_v41 = vld [vmem:[%s7382_s6 + $0x10] sm:$0xff]  ;;  %v216_v42 = vld [vmem:[%s7382_s6 + $0x18] sm:$0xff]  ;;  %v6428_v53 = vld [vmem:[%s7384_s8] ss:$0 sm:$0xff] }
  0x1d   :  { %v6397_v44 = vpack.c.bf16 %v216_v42, %v215_v41 }
  0x1e   :  { %5539 = vmatpush3.bf16.msra.mxu0 %v5538_v12  ;;  %v69_v14 = vld [vmem:[%s7398_s19] sm:$0xff]  ;;  %v70_v45 = vld [vmem:[%s7398_s19 + $0x8] sm:$0xff] }
  0x1f   :  { %5545 = vmatpush3.bf16.msra.mxu1 %v6330_v13  ;;  %5564 = vmatprep.subr.bf16.mxu0 %v6192_v3 }
  0x20   :  { %5546 = vmatprep.subr.bf16.mxu1 %v6192_v3 }
  0x21   :  { %4888 = vmatmul.mubr.msk.f32.vlgmr.msra.gmra.mrb[0].mxu0 %vm80_vm1, %v69_v14 }
  0x22   :  { %4917 = vmatmul.mubr.f32.vlgmr.msra.gmra.mrb[0].mxu1 %v6193_v8  ;;  %4890 = vmatprep.mubr.msk.f32.mxu0 %vm6194_vm0, %v6193_v8 }
  0x23   :  { %4927 = vmatprep.mubr.msk.f32.mxu1 %vm6194_vm0, %v6193_v8  ;;  %5548 = vmatpush3.bf16.msra.mxu1 %v6365_v35 }
  0x24   :  { %5566 = vmatpush3.bf16.msra.mxu0 %v6365_v35  ;;  %5549 = vmatprep.subr.bf16.mxu1 %v6192_v3 }
  0x25   :  { %5567 = vmatprep.subr.bf16.mxu0 %v6192_v3  ;;  %4891 = vmatmul.mubr.msk.f32.gmra.mrb[2].mxu0 %vm80_vm1, %v70_v45 }
  0x26   :  { %4893 = vmatprep.mubr.msk.f32.mxu0 %vm6194_vm0, %v6193_v8 }
  0x27   :  { %5551 = vmatpush3.bf16.msra.mxu1 %v6371_v37 }
  0x28   :  { %5569 = vmatpush3.bf16.msra.mxu0 %v6371_v37  ;;  %5552 = vmatprep.subr.bf16.mxu1 %v6192_v3 }
  0x29   :  { %5576 = vmatprep.subr.bf16.mxu0 %v6192_v3 }
  0x2a   :  { %4928 = vmatmul.mubr.f32.vlgmr.msra.gmra.mrb[2].mxu1 %v6193_v8 }
  0x2b   :  { %5554 = vmatpush3.bf16.msra.mxu1 %v6383_v40  ;;  %4938 = vmatprep.mubr.msk.f32.mxu1 %vm6194_vm0, %v6193_v8 }
  0x2c   :  { %5555 = vmatprep.subr.bf16.mxu1 %v6192_v3 }
  0x2f   :  { %5557 = vmatpush3.bf16.msra.mxu1 %v6397_v44 }
  0x30   :  { %5558 = vmatprep.subr.bf16.mxu1 %v6192_v3 }
  0xf4   :  { %v168_v15 = vpop.f32.mrb[0].mxu0 }
  0xf5   :  { %v305_v17 = vpop.f32.mrb[0].mxu1  ;;  %v4889_v18 = vpop.f32.mrb[1].mxu0 }
  0xf6   :  { %v309_v19 = vadd.f32 %v305_v17, %v168_v15  ;;  %v4918_v20 = vpop.f32.mrb[1].mxu1 }
  0xf8   :  { %v310_v21 = vadd.f32 %v6348_v16, %v309_v19  ;;  %v173_v51 = vpop.f32.mrb[2].mxu0 }
  0xf9   :  { %v4892_v52 = vpop.f32.mrb[3].mxu0 }
  0xfa   :  { %5948 = vtanh.f32 %v310_v21  ;;  %v4489_v23 = vmul.f32 -1.442695, %v310_v21 }
  0xfc   :  { %5950 = vpow2.f32 %v4489_v23  ;;  %v71_v23 = vld [vmem:[%s7398_s19 + $0x10] sm:$0xff] }
  0xfd   :  { %v401_v48 = vpop.f32.mrb[2].mxu1  ;;  %4894 = vmatmul.mubr.msk.f32.gmra.mrb[4].mxu0 %vm80_vm1, %v71_v23 }
  0xfe   :  { %v4929_v49 = vpop.f32.mrb[3].mxu1  ;;  %4896 = vmatprep.mubr.msk.f32.mxu0 %vm6194_vm0, %v6193_v8 }
 0x104   :  { %v5949_v22 = vpop.eup %5948 }
 0x105   :  { %320 = vrot.lane.b32.xlu0 %v5949_v22, %s6195_s21 }
 0x106   :  { %v5951_v24 = vpop.eup %5950 }
 0x107   :  { %v314_v25 = vadd.f32 1.0, %v5951_v24 }
 0x109   :  { %5952 = vrcp.f32 %v314_v25  ;;  %v72_v25 = vld [vmem:[%s7398_s19 + $0x18] sm:$0xff] }
 0x10a   :  { %4897 = vmatmul.mubr.msk.f32.gmra.mrb[6].mxu0 %vm80_vm1, %v72_v25 }
 0x10b   :  { %4899 = vmatprep.mubr.msk.f32.mxu0 %vm6194_vm0, %v6193_v8 }
 0x113   :  { %v5953_v26 = vpop.eup %5952 }
 0x114   :  { %v318_v29 = vmul.f32 0.0, %v5953_v26 }
 0x177   :  { %v321_v27 = vpop.permute.xlu0 %320 }
 0x178   :  { %v323_v28 = vmul.f32 %v5953_v26, %v321_v27 }
 0x17a   :  { %325 = vrot.lane.b32.xlu0 %v323_v28, %s6195_s21  ;;  %v74_v28 = vld [vmem:[%s7398_s19 + $0x28] sm:$0xff] }
 0x1d0   :  { %v178_v34 = vpop.f32.mrb[4].mxu0 }
 0x1d1   :  { %v4895_v36 = vpop.f32.mrb[5].mxu0 }
 0x1dd   :  { %v6477_v38 = vpop.f32.mrb[6].mxu0 }
 0x1de   :  { %v4898_v39 = vpop.f32.mrb[7].mxu0 }
 0x1ec   :  { %v326_v30 = vpop.permute.xlu0 %325 }
 0x1ed   :  { %v6353_v31 = vadd.f32 %v326_v30, %v318_v29  ;;  %v75_v29 = vld [vmem:[%s7398_s19 + $0x30] sm:$0xff] }
 0x1ef   :  { %5954 = vtanh.f32 %v6353_v31 }
 0x1f9   :  { %v5955_v43 = vpop.eup %5954 }
 0x1fa   :  { %331 = vrot.lane.b32.xlu1 %v5955_v43, %s6195_s21 }
 0x26c   :  { %v332_v46 = vpop.permute.xlu1 %331 }
 0x26d   :  { %v334_v47 = vmul.f32 %v5953_v26, %v332_v46  ;;  %v73_v26 = vld [vmem:[%s7398_s19 + $0x20] sm:$0xff] }
 0x26e   :  { %4900 = vmatmul.mubr.msk.f32.gmra.mrb[8].mxu0 %vm80_vm1, %v73_v26 }
 0x26f   :  { %406 = vrot.lane.b32.xlu1 %v334_v47, %s6196_s5  ;;  %4902 = vmatprep.mubr.msk.f32.mxu0 %vm6194_vm0, %v6193_v8 }
 0x272   :  { %4903 = vmatmul.mubr.msk.f32.gmra.mrb[10].mxu0 %vm80_vm1, %v74_v28 }
 0x273   :  { %4905 = vmatprep.mubr.msk.f32.mxu0 %vm6194_vm0, %v6193_v8 }
 0x276   :  { %4906 = vmatmul.mubr.msk.f32.gmra.mrb[12].mxu0 %vm80_vm1, %v75_v29 }
 0x277   :  { %4960 = vmatprep.mubr.msk.f32.mxu0 %vm6194_vm0, %v6193_v8 }
 0x2e1   :  { %v407_v50 = vpop.permute.xlu1 %406 }
 0x2e2   :  { %4939 = vmatmul.mubr.msk.f32.vlgmr.msra.gmra.mrb[4].mxu1 %vm80_vm1, %v407_v50 }
 0x2e3   :  { %5560 = vmatpush3.bf16.msra.mxu1 %v6316_v9  ;;  %4949 = vmatprep.mubr.msk.f32.mxu1 %vm6194_vm0, %v6193_v8 }
 0x2e4   :  { %5561 = vmatprep.subr.bf16.mxu1 %v6192_v3 }
 0x2e7   :  { %5563 = vmatpush3.bf16.msra.mxu1 %v6330_v13 }
 0x2e8   :  { %5570 = vmatprep.subr.bf16.mxu1 %v6192_v3 }
 0x2ea   :  { %4950 = vmatmul.mubr.msk.f32.vlgmr.msra.gmra.mrb[6].mxu1 %vm80_vm1, %v407_v50 }
 0x2eb   :  { %5572 = vmatpush3.bf16.msra.mxu1 %v6383_v40  ;;  %4971 = vmatprep.mubr.msk.f32.mxu1 %vm6194_vm0, %v6193_v8 }
 0x2ec   :  { %5573 = vmatprep.subr.bf16.mxu1 %v6192_v3 }
 0x2ef   :  { %5575 = vmatpush3.bf16.msra.mxu1 %v6397_v44 }
 0x2f0   :  { %5582 = vmatprep.subr.bf16.mxu1 %v6192_v3 }
 0x341   :  { %v6479_v41 = vpop.f32.mrb[8].mxu0 }
 0x342   :  { %v4901_v42 = vpop.f32.mrb[9].mxu0 }
 0x345   :  { %v6481_v43 = vpop.f32.mrb[10].mxu0 }
 0x346   :  { %v4904_v45 = vpop.f32.mrb[11].mxu0 }
 0x349   :  { %v6483_v46 = vpop.f32.mrb[12].mxu0 }
 0x34a   :  { %v4907_v47 = vpop.f32.mrb[13].mxu0 }
 0x3b5   :  { %v476_v54 = vpop.f32.mrb[4].mxu1 }
 0x3b6   :  { %v477_v55 = vadd.f32 %v476_v54, %v401_v48  ;;  %v4940_v56 = vpop.f32.mrb[5].mxu1 }
 0x3b8   :  { %v480_v57 = vadd.f32 %v6428_v53, %v477_v55 }
 0x3ba   :  { %5956 = vtanh.f32 %v480_v57  ;;  %v4491_v0 = vmul.f32 -1.442695, %v480_v57 }
 0x3bd   :  { %v573_v58 = vpop.f32.mrb[6].mxu1 }
 0x3be   :  { %v577_v59 = vadd.f32 %v573_v58, %v173_v51  ;;  %v4951_v60 = vpop.f32.mrb[7].mxu1 }
 0x3c0   :  { %v578_v61 = vadd.f32 %v6348_v16, %v577_v59 }
 0x3c2   :  { %5958 = vtanh.f32 %v578_v61  ;;  %v4493_v1 = vmul.f32 -1.442695, %v578_v61 }
 0x3c3   :  { %5960 = vpow2.f32 %v4491_v0 }
 0x3c4   :  { %v5957_v62 = vpop.eup %5956  ;;  %5962 = vpow2.f32 %v4493_v1 }
 0x3c5   :  { %490 = vrot.lane.b32.xlu0 %v5957_v62, %s6195_s21 }
 0x3cc   :  { %v5959_v63 = vpop.eup %5958 }
 0x3cd   :  { %588 = vrot.lane.b32.xlu1 %v5959_v63, %s6195_s21  ;;  %v5961_v2 = vpop.eup %5960 }
 0x3ce   :  { %v484_v4 = vadd.f32 1.0, %v5961_v2  ;;  %v5963_v5 = vpop.eup %5962 }
 0x3cf   :  { %v582_v6 = vadd.f32 1.0, %v5963_v5 }
 0x3d0   :  { %5964 = vrcp.f32 %v484_v4 }
 0x3d1   :  { %5966 = vrcp.f32 %v582_v6 }
 0x3da   :  { %v5965_v7 = vpop.eup %5964 }
 0x3db   :  { %v5967_v12 = vpop.eup %5966  ;;  %v488_v17 = vmul.f32 0.0, %v5965_v7 }
 0x3dc   :  { %v586_v20 = vmul.f32 %v5967_v12, %v6353_v31 }
 0x437   :  { %v491_v10 = vpop.permute.xlu0 %490 }
 0x438   :  { %v493_v11 = vmul.f32 %v5965_v7, %v491_v10 }
 0x43a   :  { %495 = vrot.lane.b32.xlu0 %v493_v11, %s6195_s21 }
 0x43f   :  { %v589_v14 = vpop.permute.xlu1 %588 }
 0x440   :  { %v591_v15 = vmul.f32 %v5967_v12, %v589_v14 }
 0x442   :  { %593 = vrot.lane.b32.xlu1 %v591_v15, %s6195_s21 }
 0x4ac   :  { %v496_v18 = vpop.permute.xlu0 %495 }
 0x4ad   :  { %v6436_v19 = vadd.f32 %v496_v18, %v488_v17 }
 0x4af   :  { %5968 = vtanh.f32 %v6436_v19 }
 0x4b4   :  { %v594_v21 = vpop.permute.xlu1 %593 }
 0x4b5   :  { %v6440_v22 = vadd.f32 %v594_v21, %v586_v20 }
 0x4b7   :  { %5970 = vtanh.f32 %v6440_v22 }
 0x4b9   :  { %v5969_v24 = vpop.eup %5968 }
 0x4ba   :  { %501 = vrot.lane.b32.xlu0 %v5969_v24, %s6195_s21 }
 0x4c1   :  { %v5971_v27 = vpop.eup %5970 }
 0x4c2   :  { %599 = vrot.lane.b32.xlu1 %v5971_v27, %s6195_s21 }
 0x52c   :  { %v502_v30 = vpop.permute.xlu0 %501 }
 0x52d   :  { %v504_v31 = vmul.f32 %v5965_v7, %v502_v30 }
 0x52f   :  { %604 = vrot.lane.b32.xlu0 %v504_v31, %s6196_s5 }
 0x534   :  { %v600_v32 = vpop.permute.xlu1 %599 }
 0x535   :  { %v602_v33 = vmul.f32 %v5967_v12, %v600_v32 }
 0x537   :  { %679 = vrot.lane.b32.xlu1 %v602_v33, %s6196_s5 }
 0x5a1   :  { %v605_v48 = vpop.permute.xlu0 %604 }
 0x5a2   :  { %4961 = vmatmul.mubr.msk.f32.vlgmr.msra.gmra.mrb[14].mxu0 %vm80_vm1, %v605_v48 }
 0x5a3   :  { %5578 = vmatpush3.bf16.msra.mxu0 %v6316_v9  ;;  %4982 = vmatprep.mubr.msk.f32.mxu0 %vm6194_vm0, %v6193_v8 }
 0x5a4   :  { %5579 = vmatprep.subr.bf16.mxu0 %v6192_v3 }
 0x5a7   :  { %5581 = vmatpush3.bf16.msra.mxu0 %v6330_v13 }
 0x5a8   :  { %5588 = vmatprep.subr.bf16.mxu0 %v6192_v3 }
 0x5a9   :  { %v680_v49 = vpop.permute.xlu1 %679 }
 0x5aa   :  { %4972 = vmatmul.mubr.msk.f32.vlgmr.msra.gmra.mrb[8].mxu1 %vm80_vm1, %v680_v49  ;;  %4983 = vmatmul.mubr.msk.f32.vlgmr.msra.gmra.mrb[16].mxu0 %vm80_vm1, %v680_v49 }
 0x5ab   :  { %5584 = vmatpush3.bf16.msra.mxu1 %v6365_v35  ;;  %5590 = vmatpush3.bf16.msra.mxu0 %v6383_v40 }
 0x5ac   :  { %5585 = vmatprep.subr.bf16.mxu1 %v6192_v3  ;;  %5591 = vmatprep.subr.bf16.mxu0 %v6192_v3 }
 0x5ad   :  { %4993 = vmatprep.mubr.msk.f32.mxu1 %vm6194_vm0, %v6193_v8  ;;  %5004 = vmatprep.mubr.msk.f32.mxu0 %vm6194_vm0, %v6193_v8 }
 0x5af   :  { %5587 = vmatpush3.bf16.msra.mxu1 %v6371_v37  ;;  %5593 = vmatpush3.bf16.msra.mxu0 %v6397_v44 }
 0x5b0   :  { %5594 = vmatprep.subr.bf16.mxu1 %v6192_v3  ;;  %5600 = vmatprep.subr.bf16.mxu0 %v6192_v3 }
 0x675   :  { %v674_v50 = vpop.f32.mrb[14].mxu0 }
 0x676   :  { %v4962_v51 = vpop.f32.mrb[15].mxu0 }
 0x67d   :  { %v749_v52 = vpop.f32.mrb[8].mxu1  ;;  %v846_v54 = vpop.f32.mrb[16].mxu0 }
 0x67e   :  { %v750_v55 = vadd.f32 %v749_v52, %v674_v50  ;;  %v850_v56 = vadd.f32 %v846_v54, %v178_v34  ;;  %v4973_v57 = vpop.f32.mrb[9].mxu1  ;;  %v4984_v58 = vpop.f32.mrb[17].mxu0 }
 0x680   :  { %v753_v59 = vadd.f32 %v6428_v53, %v750_v55  ;;  %v851_v60 = vadd.f32 %v6348_v16, %v850_v56 }
 0x682   :  { %5972 = vtanh.f32 %v753_v59  ;;  %v4496_v63 = vmul.f32 -1.442695, %v753_v59  ;;  %v4498_v0 = vmul.f32 -1.442695, %v851_v60 }
 0x683   :  { %5974 = vtanh.f32 %v851_v60 }
 0x684   :  { %5976 = vpow2.f32 %v4496_v63 }
 0x685   :  { %5978 = vpow2.f32 %v4498_v0 }
 0x68c   :  { %v5973_v61 = vpop.eup %5972 }
 0x68d   :  { %v5975_v62 = vpop.eup %5974  ;;  %763 = vrot.lane.b32.xlu0 %v5973_v61, %s6195_s21 }
 0x68e   :  { %861 = vrot.lane.b32.xlu1 %v5975_v62, %s6195_s21  ;;  %v5977_v1 = vpop.eup %5976 }
 0x68f   :  { %v5979_v2 = vpop.eup %5978  ;;  %v757_v4 = vadd.f32 1.0, %v5977_v1 }
 0x690   :  { %v855_v5 = vadd.f32 1.0, %v5979_v2 }
 0x691   :  { %5980 = vrcp.f32 %v757_v4 }
 0x692   :  { %5982 = vrcp.f32 %v855_v5 }
 0x69b   :  { %v5981_v6 = vpop.eup %5980 }
 0x69c   :  { %v5983_v10 = vpop.eup %5982  ;;  %v761_v15 = vmul.f32 %v5981_v6, %v6436_v19 }
 0x69d   :  { %v859_v18 = vmul.f32 %v5983_v10, %v6440_v22 }
 0x6ff   :  { %v764_v7 = vpop.permute.xlu0 %763 }
 0x700   :  { %v766_v11 = vmul.f32 %v5981_v6, %v764_v7  ;;  %v862_v12 = vpop.permute.xlu1 %861 }
 0x701   :  { %v864_v14 = vmul.f32 %v5983_v10, %v862_v12 }
 0x702   :  { %768 = vrot.lane.b32.xlu0 %v766_v11, %s6195_s21 }
 0x703   :  { %866 = vrot.lane.b32.xlu1 %v864_v14, %s6195_s21 }
 0x774   :  { %v769_v17 = vpop.permute.xlu0 %768 }
 0x775   :  { %v6514_v20 = vadd.f32 %v769_v17, %v761_v15  ;;  %v867_v21 = vpop.permute.xlu1 %866 }
 0x776   :  { %v6516_v23 = vadd.f32 %v867_v21, %v859_v18 }
 0x777   :  { %5984 = vtanh.f32 %v6514_v20 }
 0x778   :  { %5986 = vtanh.f32 %v6516_v23 }
 0x781   :  { %v5985_v24 = vpop.eup %5984 }
 0x782   :  { %v5987_v25 = vpop.eup %5986  ;;  %774 = vrot.lane.b32.xlu0 %v5985_v24, %s6195_s21 }
 0x783   :  { %872 = vrot.lane.b32.xlu1 %v5987_v25, %s6195_s21 }
 0x7f4   :  { %v775_v26 = vpop.permute.xlu0 %774 }
 0x7f5   :  { %v777_v19 = vmul.f32 %v5981_v6, %v775_v26  ;;  %v873_v27 = vpop.permute.xlu1 %872 }
 0x7f6   :  { %v875_v28 = vmul.f32 %v5983_v10, %v873_v27 }
 0x7f7   :  { %877 = vrot.lane.b32.xlu0 %v777_v19, %s6196_s5 }
 0x7f8   :  { %952 = vrot.lane.b32.xlu1 %v875_v28, %s6196_s5 }
 0x869   :  { %v878_v22 = vpop.permute.xlu0 %877 }
 0x86a   :  { %v953_v29 = vpop.permute.xlu1 %952  ;;  %4994 = vmatmul.mubr.msk.f32.vlgmr.msra.gmra.mrb[10].mxu1 %vm80_vm1, %v878_v22 }
 0x86b   :  { %5005 = vmatmul.mubr.msk.f32.vlgmr.msra.gmra.mrb[18].mxu0 %vm80_vm1, %v953_v29  ;;  %5596 = vmatpush3.bf16.msra.mxu1 %v6316_v9 }
 0x86c   :  { %5597 = vmatprep.subr.bf16.mxu1 %v6192_v3  ;;  %5015 = vmatprep.mubr.msk.f32.mxu1 %vm6194_vm0, %v6193_v8 }
 0x86d   :  { %5602 = vmatpush3.bf16.msra.mxu0 %v6365_v35  ;;  %5026 = vmatprep.mubr.msk.f32.mxu0 %vm6194_vm0, %v6193_v8 }
 0x86e   :  { %5603 = vmatprep.subr.bf16.mxu0 %v6192_v3 }
 0x86f   :  { %5599 = vmatpush3.bf16.msra.mxu1 %v6330_v13 }
 0x870   :  { %5606 = vmatprep.subr.bf16.mxu1 %v6192_v3 }
 0x871   :  { %5605 = vmatpush3.bf16.msra.mxu0 %v6371_v37 }
 0x872   :  { %5016 = vmatmul.mubr.msk.f32.vlgmr.msra.gmra.mrb[12].mxu1 %vm80_vm1, %v953_v29  ;;  %5612 = vmatprep.subr.bf16.mxu0 %v6192_v3 }
 0x873   :  { %5608 = vmatpush3.bf16.msra.mxu1 %v6383_v40  ;;  %5037 = vmatprep.mubr.msk.f32.mxu1 %vm6194_vm0, %v6193_v8 }
 0x874   :  { %5609 = vmatprep.subr.bf16.mxu1 %v6192_v3 }
 0x877   :  { %5611 = vmatpush3.bf16.msra.mxu1 %v6397_v44 }
 0x878   :  { %5618 = vmatprep.subr.bf16.mxu1 %v6192_v3 }
 0x93d   :  { %v947_v30 = vpop.f32.mrb[10].mxu1 }
 0x93e   :  { %v1022_v31 = vpop.f32.mrb[18].mxu0  ;;  %v4995_v32 = vpop.f32.mrb[11].mxu1 }
 0x93f   :  { %v1023_v33 = vadd.f32 %v1022_v31, %v947_v30  ;;  %v5006_v34 = vpop.f32.mrb[19].mxu0 }
 0x941   :  { %v1026_v36 = vadd.f32 %v6428_v53, %v1023_v33 }
 0x943   :  { %5988 = vtanh.f32 %v1026_v36  ;;  %v4501_v50 = vmul.f32 -1.442695, %v1026_v36 }
 0x945   :  { %v1119_v39 = vpop.f32.mrb[12].mxu1 }
 0x946   :  { %v1123_v42 = vadd.f32 %v1119_v39, %v6477_v38  ;;  %v5017_v45 = vpop.f32.mrb[13].mxu1 }
 0x948   :  { %v1124_v47 = vadd.f32 %v6348_v16, %v1123_v42 }
 0x94a   :  { %5990 = vtanh.f32 %v1124_v47  ;;  %v4503_v51 = vmul.f32 -1.442695, %v1124_v47 }
 0x94b   :  { %5992 = vpow2.f32 %v4501_v50 }
 0x94c   :  { %5994 = vpow2.f32 %v4503_v51 }
 0x94d   :  { %v5989_v48 = vpop.eup %5988 }
 0x94e   :  { %1036 = vrot.lane.b32.xlu0 %v5989_v48, %s6195_s21 }
 0x954   :  { %v5991_v49 = vpop.eup %5990 }
 0x955   :  { %1134 = vrot.lane.b32.xlu1 %v5991_v49, %s6195_s21  ;;  %v5993_v52 = vpop.eup %5992 }
 0x956   :  { %v1030_v54 = vadd.f32 1.0, %v5993_v52  ;;  %v5995_v55 = vpop.eup %5994 }
 0x957   :  { %v1128_v56 = vadd.f32 1.0, %v5995_v55 }
 0x958   :  { %5996 = vrcp.f32 %v1030_v54 }
 0x959   :  { %5998 = vrcp.f32 %v1128_v56 }
 0x962   :  { %v5997_v38 = vpop.eup %5996 }
 0x963   :  { %v5999_v59 = vpop.eup %5998  ;;  %v1034_v62 = vmul.f32 %v5997_v38, %v6514_v20 }
 0x964   :  { %v1132_v1 = vmul.f32 %v5999_v59, %v6516_v23 }
 0x9c0   :  { %v1037_v57 = vpop.permute.xlu0 %1036 }
 0x9c1   :  { %v1039_v58 = vmul.f32 %v5997_v38, %v1037_v57 }
 0x9c3   :  { %1041 = vrot.lane.b32.xlu0 %v1039_v58, %s6195_s21 }
 0x9c7   :  { %v1135_v60 = vpop.permute.xlu1 %1134 }
 0x9c8   :  { %v1137_v61 = vmul.f32 %v5999_v59, %v1135_v60 }
 0x9ca   :  { %1139 = vrot.lane.b32.xlu1 %v1137_v61, %s6195_s21 }
 0xa35   :  { %v1042_v63 = vpop.permute.xlu0 %1041 }
 0xa36   :  { %v6553_v0 = vadd.f32 %v1042_v63, %v1034_v62 }
 0xa38   :  { %6000 = vtanh.f32 %v6553_v0 }
 0xa3c   :  { %v1140_v2 = vpop.permute.xlu1 %1139 }
 0xa3d   :  { %v6557_v4 = vadd.f32 %v1140_v2, %v1132_v1 }
 0xa3f   :  { %6002 = vtanh.f32 %v6557_v4 }
 0xa42   :  { %v6001_v5 = vpop.eup %6000 }
 0xa43   :  { %1047 = vrot.lane.b32.xlu0 %v6001_v5, %s6195_s21 }
 0xa49   :  { %v6003_v6 = vpop.eup %6002 }
 0xa4a   :  { %1145 = vrot.lane.b32.xlu1 %v6003_v6, %s6195_s21 }
 0xab5   :  { %v1048_v7 = vpop.permute.xlu0 %1047 }
 0xab6   :  { %v1050_v10 = vmul.f32 %v5997_v38, %v1048_v7 }
 0xab8   :  { %1150 = vrot.lane.b32.xlu0 %v1050_v10, %s6196_s5 }
 0xabc   :  { %v1146_v11 = vpop.permute.xlu1 %1145 }
 0xabd   :  { %v1148_v12 = vmul.f32 %v5999_v59, %v1146_v11 }
 0xabf   :  { %1225 = vrot.lane.b32.xlu1 %v1148_v12, %s6196_s5 }
 0xb2a   :  { %v1151_v14 = vpop.permute.xlu0 %1150 }
 0xb2b   :  { %5027 = vmatmul.mubr.msk.f32.vlgmr.msra.gmra.mrb[20].mxu0 %vm80_vm1, %v1151_v14 }
 0xb2c   :  { %5614 = vmatpush3.bf16.msra.mxu0 %v6316_v9  ;;  %5048 = vmatprep.mubr.msk.f32.mxu0 %vm6194_vm0, %v6193_v8 }
 0xb2d   :  { %5615 = vmatprep.subr.bf16.mxu0 %v6192_v3 }
 0xb30   :  { %5617 = vmatpush3.bf16.msra.mxu0 %v6330_v13 }
 0xb31   :  { %v1226_v15 = vpop.permute.xlu1 %1225  ;;  %5624 = vmatprep.subr.bf16.mxu0 %v6192_v3 }
 0xb32   :  { %5038 = vmatmul.mubr.msk.f32.vlgmr.msra.gmra.mrb[14].mxu1 %vm80_vm1, %v1226_v15 }
 0xb33   :  { %5049 = vmatmul.mubr.msk.f32.vlgmr.msra.gmra.mrb[22].mxu0 %vm80_vm1, %v1226_v15  ;;  %5620 = vmatpush3.bf16.msra.mxu1 %v6365_v35 }
 0xb34   :  { %5626 = vmatpush3.bf16.msra.mxu0 %v6383_v40  ;;  %5621 = vmatprep.subr.bf16.mxu1 %v6192_v3 }
 0xb35   :  { %5627 = vmatprep.subr.bf16.mxu0 %v6192_v3  ;;  %5059 = vmatprep.mubr.msk.f32.mxu1 %vm6194_vm0, %v6193_v8 }
 0xb36   :  { %5070 = vmatprep.mubr.msk.f32.mxu0 %vm6194_vm0, %v6193_v8 }
 0xb37   :  { %5623 = vmatpush3.bf16.msra.mxu1 %v6371_v37 }
 0xb38   :  { %5629 = vmatpush3.bf16.msra.mxu0 %v6397_v44  ;;  %5630 = vmatprep.subr.bf16.mxu1 %v6192_v3 }
 0xb39   :  { %5636 = vmatprep.subr.bf16.mxu0 %v6192_v3 }
 0xbfe   :  { %v1220_v17 = vpop.f32.mrb[20].mxu0 }
 0xbff   :  { %v5028_v18 = vpop.f32.mrb[21].mxu0 }
 0xc05   :  { %v1295_v20 = vpop.f32.mrb[14].mxu1 }
 0xc06   :  { %v1296_v21 = vadd.f32 %v1295_v20, %v1220_v17  ;;  %v1392_v23 = vpop.f32.mrb[22].mxu0  ;;  %v5039_v24 = vpop.f32.mrb[15].mxu1 }
 0xc07   :  { %v1396_v25 = vadd.f32 %v1392_v23, %v6479_v41  ;;  %v5050_v26 = vpop.f32.mrb[23].mxu0 }
 0xc08   :  { %v1299_v19 = vadd.f32 %v6428_v53, %v1296_v21 }
 0xc09   :  { %v1397_v27 = vadd.f32 %v6348_v16, %v1396_v25 }
 0xc0a   :  { %6004 = vtanh.f32 %v1299_v19  ;;  %v4506_v29 = vmul.f32 -1.442695, %v1299_v19 }
 0xc0b   :  { %6006 = vtanh.f32 %v1397_v27  ;;  %v4508_v30 = vmul.f32 -1.442695, %v1397_v27 }
 0xc0c   :  { %6008 = vpow2.f32 %v4506_v29 }
 0xc0d   :  { %6010 = vpow2.f32 %v4508_v30 }
 0xc14   :  { %v6005_v28 = vpop.eup %6004 }
 0xc15   :  { %v6007_v22 = vpop.eup %6006  ;;  %1309 = vrot.lane.b32.xlu0 %v6005_v28, %s6195_s21 }
 0xc16   :  { %1407 = vrot.lane.b32.xlu1 %v6007_v22, %s6195_s21  ;;  %v6009_v31 = vpop.eup %6008 }
 0xc17   :  { %v6011_v32 = vpop.eup %6010  ;;  %v1303_v41 = vadd.f32 1.0, %v6009_v31 }
 0xc18   :  { %v1401_v33 = vadd.f32 1.0, %v6011_v32 }
 0xc19   :  { %6012 = vrcp.f32 %v1303_v41 }
 0xc1a   :  { %6014 = vrcp.f32 %v1401_v33 }
 0xc23   :  { %v6013_v34 = vpop.eup %6012 }
 0xc24   :  { %v6015_v39 = vpop.eup %6014  ;;  %v1307_v48 = vmul.f32 %v6013_v34, %v6553_v0 }
 0xc25   :  { %v1405_v50 = vmul.f32 %v6015_v39, %v6557_v4 }
 0xc87   :  { %v1310_v36 = vpop.permute.xlu0 %1309 }
 0xc88   :  { %v1312_v42 = vmul.f32 %v6013_v34, %v1310_v36  ;;  %v1408_v45 = vpop.permute.xlu1 %1407 }
 0xc89   :  { %v1410_v47 = vmul.f32 %v6015_v39, %v1408_v45 }
 0xc8a   :  { %1314 = vrot.lane.b32.xlu0 %v1312_v42, %s6195_s21 }
 0xc8b   :  { %1412 = vrot.lane.b32.xlu1 %v1410_v47, %s6195_s21 }
 0xcfc   :  { %v1315_v49 = vpop.permute.xlu0 %1314 }
 0xcfd   :  { %v6594_v51 = vadd.f32 %v1315_v49, %v1307_v48  ;;  %v1413_v52 = vpop.permute.xlu1 %1412 }
 0xcfe   :  { %v6596_v54 = vadd.f32 %v1413_v52, %v1405_v50 }
 0xcff   :  { %6016 = vtanh.f32 %v6594_v51 }
 0xd00   :  { %6018 = vtanh.f32 %v6596_v54 }
 0xd09   :  { %v6017_v55 = vpop.eup %6016 }
 0xd0a   :  { %v6019_v56 = vpop.eup %6018  ;;  %1320 = vrot.lane.b32.xlu0 %v6017_v55, %s6195_s21 }
 0xd0b   :  { %1418 = vrot.lane.b32.xlu1 %v6019_v56, %s6195_s21 }
 0xd7c   :  { %v1321_v38 = vpop.permute.xlu0 %1320 }
 0xd7d   :  { %v1323_v57 = vmul.f32 %v6013_v34, %v1321_v38  ;;  %v1419_v58 = vpop.permute.xlu1 %1418 }
 0xd7e   :  { %v1421_v59 = vmul.f32 %v6015_v39, %v1419_v58 }
 0xd7f   :  { %1423 = vrot.lane.b32.xlu0 %v1323_v57, %s6196_s5 }
 0xd80   :  { %1498 = vrot.lane.b32.xlu1 %v1421_v59, %s6196_s5 }
 0xdf1   :  { %v1424_v60 = vpop.permute.xlu0 %1423 }
 0xdf2   :  { %v1499_v61 = vpop.permute.xlu1 %1498  ;;  %5060 = vmatmul.mubr.msk.f32.vlgmr.msra.gmra.mrb[16].mxu1 %vm80_vm1, %v1424_v60 }
 0xdf3   :  { %5071 = vmatmul.mubr.msk.f32.vlgmr.msra.gmra.mrb[24].mxu0 %vm80_vm1, %v1499_v61  ;;  %5632 = vmatpush3.bf16.msra.mxu1 %v6316_v9 }
 0xdf4   :  { %5633 = vmatprep.subr.bf16.mxu1 %v6192_v3  ;;  %5081 = vmatprep.mubr.msk.f32.mxu1 %vm6194_vm0, %v6193_v8 }
 0xdf5   :  { %5638 = vmatpush3.bf16.msra.mxu0 %v6365_v35  ;;  %5092 = vmatprep.mubr.msk.f32.mxu0 %vm6194_vm0, %v6193_v8 }
 0xdf6   :  { %5639 = vmatprep.subr.bf16.mxu0 %v6192_v3 }
 0xdf7   :  { %5635 = vmatpush3.bf16.msra.mxu1 %v6330_v13 }
 0xdf8   :  { %5642 = vmatprep.subr.bf16.mxu1 %v6192_v3 }
 0xdf9   :  { %5641 = vmatpush3.bf16.msra.mxu0 %v6371_v37 }
 0xdfa   :  { %5082 = vmatmul.mubr.msk.f32.vlgmr.msra.gmra.mrb[18].mxu1 %vm80_vm1, %v1499_v61  ;;  %5648 = vmatprep.subr.bf16.mxu0 %v6192_v3 }
 0xdfb   :  { %5644 = vmatpush3.bf16.msra.mxu1 %v6383_v40  ;;  %5103 = vmatprep.mubr.msk.f32.mxu1 %vm6194_vm0, %v6193_v8 }
 0xdfc   :  { %5645 = vmatprep.subr.bf16.mxu1 %v6192_v3 }
 0xdff   :  { %5647 = vmatpush3.bf16.msra.mxu1 %v6397_v44 }
 0xe00   :  { %5654 = vmatprep.subr.bf16.mxu1 %v6192_v3 }
 0xec5   :  { %v1493_v62 = vpop.f32.mrb[16].mxu1 }
 0xec6   :  { %v1568_v63 = vpop.f32.mrb[24].mxu0  ;;  %v5061_v0 = vpop.f32.mrb[17].mxu1 }
 0xec7   :  { %v1569_v1 = vadd.f32 %v1568_v63, %v1493_v62  ;;  %v5072_v2 = vpop.f32.mrb[25].mxu0 }
 0xec9   :  { %v1572_v4 = vadd.f32 %v6428_v53, %v1569_v1 }
 0xecb   :  { %6020 = vtanh.f32 %v1572_v4  ;;  %v4511_v14 = vmul.f32 -1.442695, %v1572_v4 }
 0xecd   :  { %v1665_v5 = vpop.f32.mrb[18].mxu1 }
 0xece   :  { %v1669_v6 = vadd.f32 %v1665_v5, %v6481_v43  ;;  %v5083_v7 = vpop.f32.mrb[19].mxu1 }
 0xed0   :  { %v1670_v10 = vadd.f32 %v6348_v16, %v1669_v6  ;;  %v6197_v6 = vmov 0  }
 0xed1   :  { %5946 = vset.pattern.permute.xlu1 %v6197_v6  ;;  %5947 = vset.pattern.permute.xlu0 %v6197_v6 }
 0xed2   :  { %6022 = vtanh.f32 %v1670_v10  ;;  %v4513_v15 = vmul.f32 -1.442695, %v1670_v10 }
 0xed3   :  { %6024 = vpow2.f32 %v4511_v14 }
 0xed4   :  { %6026 = vpow2.f32 %v4513_v15 }
 0xed5   :  { %v6021_v11 = vpop.eup %6020 }
 0xed6   :  { %1582 = vrot.lane.b32.xlu0 %v6021_v11, %s6195_s21  ;;  %v2183_v11 = vld [vmem:[%s7378_s2] sm:$0xff] }
 0xedc   :  { %v6023_v12 = vpop.eup %6022 }
 0xedd   :  { %1680 = vrot.lane.b32.xlu1 %v6023_v12, %s6195_s21  ;;  %v6025_v17 = vpop.eup %6024 }
 0xede   :  { %v1576_v18 = vadd.f32 1.0, %v6025_v17  ;;  %v6027_v20 = vpop.eup %6026 }
 0xedf   :  { %v1674_v21 = vadd.f32 1.0, %v6027_v20  ;;  %v2191_v20 = vld [vmem:[%s7385_s9 + $0x8] sm:$0xff] }
 0xee0   :  { %6028 = vrcp.f32 %v1576_v18  ;;  %v2190_v18 = vld [vmem:[%s7385_s9] sm:$0xff] }
 0xee1   :  { %6030 = vrcp.f32 %v1674_v21  ;;  %v5673_v21 = vpack.c.bf16 %v2191_v20, %v2190_v18 }
 0xeea   :  { %v6029_v43 = vpop.eup %6028 }
 0xeeb   :  { %v6031_v25 = vpop.eup %6030  ;;  %v1580_v27 = vmul.f32 %v6029_v43, %v6594_v51 }
 0xeec   :  { %v1678_v29 = vmul.f32 %v6031_v25, %v6596_v54 }
 0xf48   :  { %v1583_v23 = vpop.permute.xlu0 %1582 }
 0xf49   :  { %v1585_v24 = vmul.f32 %v6029_v43, %v1583_v23  ;;  %v2145_v23 = vld [vmem:[%s7386_s10 + $0x8] sm:$0xff] }
 0xf4b   :  { %1587 = vrot.lane.b32.xlu0 %v1585_v24, %s6195_s21  ;;  %v2192_v24 = vld [vmem:[%s7385_s9 + $0x10] sm:$0xff] }
 0xf4f   :  { %v1681_v26 = vpop.permute.xlu1 %1680 }
 0xf50   :  { %v1683_v19 = vmul.f32 %v6031_v25, %v1681_v26 }
 0xf52   :  { %1685 = vrot.lane.b32.xlu1 %v1683_v19, %s6195_s21 }
 0xfbd   :  { %v1588_v28 = vpop.permute.xlu0 %1587 }
 0xfbe   :  { %v6633_v22 = vadd.f32 %v1588_v28, %v1580_v27  ;;  %v2146_v28 = vld [vmem:[%s7386_s10 + $0x10] sm:$0xff] }
 0xfc0   :  { %6032 = vtanh.f32 %v6633_v22 }
 0xfc4   :  { %v1686_v30 = vpop.permute.xlu1 %1685 }
 0xfc5   :  { %v6637_v31 = vadd.f32 %v1686_v30, %v1678_v29  ;;  %v2147_v29 = vld [vmem:[%s7386_s10 + $0x18] sm:$0xff]  ;;  %v2194_v30 = vld [vmem:[%s7385_s9 + $0x20] sm:$0xff] }
 0xfc7   :  { %6034 = vtanh.f32 %v6637_v31 }
 0xfca   :  { %v6033_v32 = vpop.eup %6032 }
 0xfcb   :  { %1593 = vrot.lane.b32.xlu0 %v6033_v32, %s6195_s21 }
 0xfd1   :  { %v6035_v41 = vpop.eup %6034 }
 0xfd2   :  { %1691 = vrot.lane.b32.xlu1 %v6035_v41, %s6195_s21  ;;  %v6732_v41 = vpack.c.bf16 %v2147_v29, %v2146_v28 }
0x103d   :  { %v1594_v33 = vpop.permute.xlu0 %1593 }
0x103e   :  { %v1596_v34 = vmul.f32 %v6029_v43, %v1594_v33  ;;  %v2144_v43 = vld [vmem:[%s7386_s10] sm:$0xff] }
0x103f   :  { %v6708_v19 = vpack.c.bf16 %v2145_v23, %v2144_v43 }
0x1040   :  { %1696 = vrot.lane.b32.xlu0 %v1596_v34, %s6196_s5  ;;  %v2196_v34 = vld [vmem:[%s7385_s9 + $0x30] sm:$0xff] }
0x1044   :  { %v1692_v36 = vpop.permute.xlu1 %1691 }
0x1045   :  { %v1694_v39 = vmul.f32 %v6031_v25, %v1692_v36  ;;  %v2193_v25 = vld [vmem:[%s7385_s9 + $0x18] sm:$0xff] }
0x1046   :  { %v5676_v27 = vpack.c.bf16 %v2193_v25, %v2192_v24  ;;  %v2197_v36 = vld [vmem:[%s7385_s9 + $0x38] sm:$0xff] }
0x1047   :  { %1771 = vrot.lane.b32.xlu1 %v1694_v39, %s6196_s5  ;;  %v5682_v39 = vpack.c.bf16 %v2197_v36, %v2196_v34 }
0x10b2   :  { %v1697_v42 = vpop.permute.xlu0 %1696 }
0x10b3   :  { %5093 = vmatmul.mubr.msk.f32.vlgmr.msra.gmra.mrb[26].mxu0 %vm80_vm1, %v1697_v42  ;;  %v2198_v42 = vld [vmem:[%s7385_s9 + $0x40] sm:$0xff] }
0x10b4   :  { %5650 = vmatpush3.bf16.msra.mxu0 %v6316_v9  ;;  %5114 = vmatprep.mubr.msk.f32.mxu0 %vm6194_vm0, %v6193_v8 }
0x10b5   :  { %5651 = vmatprep.subr.bf16.mxu0 %v6192_v3 }
0x10b8   :  { %5653 = vmatpush3.bf16.msra.mxu0 %v6330_v13 }
0x10b9   :  { %v1772_v45 = vpop.permute.xlu1 %1771  ;;  %5660 = vmatprep.subr.bf16.mxu0 %v6192_v3 }
0x10ba   :  { %5104 = vmatmul.mubr.msk.f32.vlgmr.msra.gmra.mrb[20].mxu1 %vm80_vm1, %v1772_v45 }
0x10bb   :  { %5115 = vmatmul.mubr.msk.f32.vlgmr.msra.gmra.mrb[28].mxu0 %vm80_vm1, %v1772_v45  ;;  %5656 = vmatpush3.bf16.msra.mxu1 %v6365_v35  ;;  %v2199_v45 = vld [vmem:[%s7385_s9 + $0x48] sm:$0xff] }
0x10bc   :  { %5662 = vmatpush3.bf16.msra.mxu0 %v6383_v40  ;;  %5657 = vmatprep.subr.bf16.mxu1 %v6192_v3 }
0x10bd   :  { %5663 = vmatprep.subr.bf16.mxu0 %v6192_v3  ;;  %5136 = vmatprep.mubr.msk.f32.mxu0 %vm6194_vm0, %v6193_v8 }
0x10be   :  { %5125 = vmatprep.mubr.msk.f32.mxu1 %vm6194_vm0, %v6193_v8 }
0x10bf   :  { %5659 = vmatpush3.bf16.msra.mxu1 %v6371_v37 }
0x10c0   :  { %5665 = vmatpush3.bf16.msra.mxu0 %v6397_v44  ;;  %5666 = vmatprep.subr.bf16.mxu1 %v6192_v3 }
0x10c1   :  { %5672 = vmatprep.subr.bf16.mxu0 %v6192_v3 }
0x1186   :  { %v1766_v9 = vpop.f32.mrb[26].mxu0 }
0x1187   :  { %v5094_v13 = vpop.f32.mrb[27].mxu0 }
0x1188   :  { %v2200_v13 = vld [vmem:[%s7385_s9 + $0x50] sm:$0xff] }
0x118d   :  { %v1841_v35 = vpop.f32.mrb[20].mxu1 }
0x118e   :  { %v1842_v40 = vadd.f32 %v1841_v35, %v1766_v9  ;;  %v1938_v47 = vpop.f32.mrb[28].mxu0  ;;  %v5105_v48 = vpop.f32.mrb[21].mxu1  ;;  %v5685_v9 = vpack.c.bf16 %v2199_v45, %v2198_v42  ;;  %v2201_v35 = vld [vmem:[%s7385_s9 + $0x58] sm:$0xff] }
0x118f   :  { %v1942_v49 = vadd.f32 %v1938_v47, %v6483_v46  ;;  %v5116_v50 = vpop.f32.mrb[29].mxu0  ;;  %v2202_v47 = vld [vmem:[%s7385_s9 + $0x60] sm:$0xff]  ;;  %v2203_v48 = vld [vmem:[%s7385_s9 + $0x68] sm:$0xff] }
0x1190   :  { %v1845_v51 = vadd.f32 %v6428_v53, %v1842_v40  ;;  %v5688_v40 = vpack.c.bf16 %v2201_v35, %v2200_v13  ;;  %v2181_v50 = vlaneseq  ;;  %v2148_v13 = vld [vmem:[%s7388_s12] sm:$0xff]  ;;  %v2149_v35 = vld [vmem:[%s7388_s12 + $0x8] sm:$0xff] }
0x1191   :  { %v1943_v52 = vadd.f32 %v6348_v16, %v1942_v49  ;;  %v5691_v49 = vpack.c.bf16 %v2203_v48, %v2202_v47  ;;  %v2150_v47 = vld [vmem:[%s7388_s12 + $0x10] sm:$0xff]  ;;  %v2151_v48 = vld [vmem:[%s7388_s12 + $0x18] sm:$0xff] }
0x1192   :  { %6036 = vtanh.f32 %v1845_v51  ;;  %v4516_v54 = vmul.f32 -1.442695, %v1845_v51  ;;  %v2204_v51 = vld [vmem:[%s7385_s9 + $0x70] sm:$0xff] }
0x1193   :  { %6038 = vtanh.f32 %v1943_v52  ;;  %v4518_v55 = vmul.f32 -1.442695, %v1943_v52  ;;  %v2205_v52 = vld [vmem:[%s7385_s9 + $0x78] sm:$0xff] }
0x1194   :  { %6040 = vpow2.f32 %v4516_v54 }
0x1195   :  { %6042 = vpow2.f32 %v4518_v55  ;;  %v6198_v55 = vmov 1.0  }
0x119c   :  { %v6037_v37 = vpop.eup %6036 }
0x119d   :  { %v6039_v44 = vpop.eup %6038  ;;  %1855 = vrot.lane.b32.xlu1 %v6037_v37, %s6195_s21  ;;  %v5694_v37 = vpack.c.bf16 %v2205_v52, %v2204_v51 }
0x119e   :  { %1953 = vrot.lane.b32.xlu0 %v6039_v44, %s6195_s21  ;;  %v6041_v56 = vpop.eup %6040  ;;  %v6777_v44 = vand.u32 127, %v2181_v50  ;;  %v6838_v50 = vpack.c.bf16 %v2151_v48, %v2150_v47 }
0x119f   :  { %v6043_v38 = vpop.eup %6042  ;;  %v1849_v46 = vadd.f32 1.0, %v6041_v56 }
0x11a0   :  { %v1947_v57 = vadd.f32 1.0, %v6043_v38 }
0x11a1   :  { %6044 = vrcp.f32 %v1849_v46 }
0x11a2   :  { %6046 = vrcp.f32 %v1947_v57 }
0x11ab   :  { %v6045_v58 = vpop.eup %6044 }
0x11ac   :  { %v6047_v59 = vpop.eup %6046  ;;  %v1853_v63 = vmul.f32 %v6045_v58, %v6633_v22  ;;  %v6716_v22 = vld [vmem:[%s7393_s17] sm:$0xff] }
0x11ad   :  { %v1951_v1 = vmul.f32 %v6047_v59, %v6637_v31  ;;  %v2195_v31 = vld [vmem:[%s7385_s9 + $0x28] sm:$0xff] }
0x11ae   :  { %v5679_v33 = vpack.c.bf16 %v2195_v31, %v2194_v30  ;;  %v2152_v31 = vld [vmem:[%s7389_s13] sm:$0xff] }
0x120f   :  { %v1856_v16 = vpop.permute.xlu1 %1855 }
0x1210   :  { %v1858_v60 = vmul.f32 %v6045_v58, %v1856_v16  ;;  %v1954_v61 = vpop.permute.xlu0 %1953 }
0x1211   :  { %v1956_v62 = vmul.f32 %v6047_v59, %v1954_v61 }
0x1212   :  { %1860 = vrot.lane.b32.xlu1 %v1858_v60, %s6195_s21 }
0x1213   :  { %1958 = vrot.lane.b32.xlu0 %v1956_v62, %s6195_s21  ;;  %v6787_v62 = vld [vmem:[%s7387_s11] ss:$0 sm:$0xff] }
0x1284   :  { %v1861_v0 = vpop.permute.xlu1 %1860 }
0x1285   :  { %v6674_v2 = vadd.f32 %v1861_v0, %v1853_v63  ;;  %v1959_v4 = vpop.permute.xlu0 %1958 }
0x1286   :  { %v6676_v5 = vadd.f32 %v1959_v4, %v1951_v1 }
0x1287   :  { %6048 = vtanh.f32 %v6674_v2 }
0x1288   :  { %6050 = vtanh.f32 %v6676_v5 }
0x1291   :  { %v6049_v7 = vpop.eup %6048 }
0x1292   :  { %v6051_v10 = vpop.eup %6050  ;;  %1866 = vrot.lane.b32.xlu1 %v6049_v7, %s6195_s21 }
0x1293   :  { %1964 = vrot.lane.b32.xlu0 %v6051_v10, %s6195_s21 }
0x1296   :  { %2185 = vperm.xlu1 %5946, %v2183_v11  }
0x1304   :  { %v1867_v15 = vpop.permute.xlu1 %1866 }
0x1305   :  { %v1965_v12 = vpop.permute.xlu0 %1964  ;;  %v1869_v17 = vmul.f32 %v6045_v58, %v1867_v15 }
0x1306   :  { %v1967_v14 = vmul.f32 %v6047_v59, %v1965_v12 }
0x1308   :  { %2044 = vrot.lane.b32.xlu0 %v1967_v14, %s6196_s5 }
0x130c   :  { %1969 = vrot.lane.b32.xlu0 %v1869_v17, %s6196_s5 }
0x1315   :  { %v2186_v54 = vpop.permute.xlu1 %2185 }
0x1316   :  { %vm2187_vm2 = vcmp.eq.s32.totalorder %v6777_v44, %v2186_v54  ;;  %v6854_v54 = vld [vmem:[%s7390_s14] ss:$0 sm:$0xff] }
0x137a   :  { %v2045_v26 = vpop.permute.xlu0 %2044 }
0x137b   :  { %5137 = vmatmul.mubr.msk.f32.vlgmr.msra.gmra.mrb[30].mxu0 %vm80_vm1, %v2045_v26 }
0x137c   :  { %5674 = vmatpush3.bf16.msra.mxu0 %v5673_v21  ;;  %5182 = vmatprep.mubr.msk.f32.mxu0 %vm6194_vm0, %v6716_v22 }
0x137d   :  { %5675 = vmatprep.subr.bf16.mxu0 %v6192_v3 }
0x137e   :  { %v1970_v32 = vpop.permute.xlu0 %1969 }
0x137f   :  { %5126 = vmatmul.mubr.msk.f32.vlgmr.msra.gmra.mrb[22].mxu1 %vm80_vm1, %v1970_v32  ;;  %v2154_v32 = vld [vmem:[%s7389_s13 + $0x10] sm:$0xff] }
0x1380   :  { %5668 = vmatpush3.bf16.msra.mxu1 %v6708_v19  ;;  %5677 = vmatpush3.bf16.msra.mxu0 %v5676_v27 }
0x1381   :  { %5669 = vmatprep.subr.bf16.mxu1 %v6192_v3  ;;  %5678 = vmatprep.subr.bf16.mxu0 %v6192_v3 }
0x1382   :  { %5147 = vmatprep.mubr.msk.f32.mxu1 %vm6194_vm0, %v6716_v22 }
0x1384   :  { %5671 = vmatpush3.bf16.msra.mxu1 %v6732_v41  ;;  %5680 = vmatpush3.bf16.msra.mxu0 %v5679_v33 }
0x1385   :  { %5681 = vmatprep.subr.bf16.mxu0 %v6192_v3  ;;  %5696 = vmatprep.subr.bf16.mxu1 %v6192_v3 }
0x1387   :  { %5148 = vmatmul.mubr.msk.f32.vlgmr.msra.gmra.mrb[24].mxu1 %vm80_vm1, %v2045_v26 }
0x1388   :  { %5683 = vmatpush3.bf16.msra.mxu0 %v5682_v39  ;;  %5193 = vmatprep.mubr.msk.f32.mxu1 %vm6194_vm0, %v6716_v22 }
0x1389   :  { %5684 = vmatprep.subr.bf16.mxu0 %v6192_v3 }
0x138c   :  { %5686 = vmatpush3.bf16.msra.mxu0 %v5685_v9 }
0x138d   :  { %5687 = vmatprep.subr.bf16.mxu0 %v6192_v3 }
0x1390   :  { %5689 = vmatpush3.bf16.msra.mxu0 %v5688_v40  ;;  %v6828_v40 = vpack.c.bf16 %v2149_v35, %v2148_v13 }
0x1391   :  { %5690 = vmatprep.subr.bf16.mxu0 %v6192_v3 }
0x1394   :  { %5692 = vmatpush3.bf16.msra.mxu0 %v5691_v49 }
0x1395   :  { %5693 = vmatprep.subr.bf16.mxu0 %v6192_v3 }
0x1398   :  { %5695 = vmatpush3.bf16.msra.mxu0 %v5694_v37 }
0x139b   :  { %5183 = vmatmul.mubr.msk.f32.vlgmr.msra.gmra.mrb[32].mxu0 %vm2187_vm2, %v6198_v55 }
0x144e   :  { %v2114_v56 = vpop.f32.mrb[30].mxu0 }
0x144f   :  { %v5138_v38 = vpop.f32.mrb[31].mxu0 }
0x1452   :  { %v2039_v46 = vpop.f32.mrb[22].mxu1 }
0x1453   :  { %v2115_v57 = vadd.f32 %v2114_v56, %v2039_v46  ;;  %v5127_v58 = vpop.f32.mrb[23].mxu1 }
0x1455   :  { %v2118_v16 = vadd.f32 %v6428_v53, %v2115_v57 }
0x1457   :  { %6052 = vtanh.f32 %v2118_v16  ;;  %v4521_v53 = vmul.f32 -1.442695, %v2118_v16 }
0x145a   :  { %v2272_v59 = vpop.f32.mrb[24].mxu1 }
0x145b   :  { %v5149_v60 = vpop.f32.mrb[25].mxu1 }
0x1461   :  { %v6053_v61 = vpop.eup %6052 }
0x1462   :  { %2128 = vrot.lane.b32.xlu1 %v6053_v61, %s6195_s21 }
0x146e   :  { %v2342_v63 = vpop.f32.mrb[32].mxu0 }
0x146f   :  { %v2343_v0 = vadd.f32 %v2342_v63, %v2272_v59  ;;  %v5184_v1 = vpop.f32.mrb[33].mxu0 }
0x1471   :  { %v2346_v4 = vadd.f32 %v6787_v62, %v2343_v0 }
0x1473   :  { %6054 = vtanh.f32 %v2346_v4  ;;  %v4528_v12 = vmul.f32 -1.442695, %v2346_v4 }
0x1474   :  { %6056 = vpow2.f32 %v4521_v53  ;;  %v2171_v53 = vld [vmem:[%s7391_s15 + $0x8] sm:$0xff] }
0x147d   :  { %v6055_v7 = vpop.eup %6054 }
0x147e   :  { %2356 = vrot.lane.b32.xlu0 %v6055_v7, %s6195_s21  ;;  %v6057_v10 = vpop.eup %6056  ;;  %v2170_v7 = vld [vmem:[%s7391_s15] sm:$0xff] }
0x147f   :  { %v2122_v11 = vadd.f32 1.0, %v6057_v10  ;;  %v2172_v10 = vld [vmem:[%s7391_s15 + $0x10] sm:$0xff] }
0x1481   :  { %6058 = vrcp.f32 %v2122_v11  ;;  %v6871_v11 = vpack.c.bf16 %v2171_v53, %v2170_v7 }
0x1482   :  { %6060 = vpow2.f32 %v4528_v12  ;;  %v2173_v12 = vld [vmem:[%s7391_s15 + $0x18] sm:$0xff]  ;;  %s4535_s15 = sld [smem:[#allocation3 + $0x1]] }
0x1488   :  { %p2626_p5 = scmp.eq.s32.totalorder %s4535_s15, 1 }
0x148b   :  { %v6059_v14 = vpop.eup %6058 }
0x148c   :  { %v6061_v18 = vpop.eup %6060  ;;  %v2126_v24 = vmul.f32 %v6059_v14, %v6674_v2  ;;  %v2153_v2 = vld [vmem:[%s7389_s13 + $0x8] sm:$0xff] }
0x148d   :  { %v2350_v20 = vadd.f32 1.0, %v6061_v18  ;;  %v6808_v33 = vpack.c.bf16 %v2153_v2, %v2152_v31 }
0x148f   :  { %6062 = vrcp.f32 %v2350_v20  ;;  %5698 = vmatpush3.bf16.msra.mxu1 %v6808_v33 }
0x1490   :  { %5699 = vmatprep.subr.bf16.mxu1 %v6192_v3 }
0x1499   :  { %v6063_v21 = vpop.eup %6062 }
0x149a   :  { %v2354_v28 = vmul.f32 %v6063_v21, %v6676_v5  ;;  %v2155_v5 = vld [vmem:[%s7389_s13 + $0x18] sm:$0xff] }
0x149b   :  { %v6814_v34 = vpack.c.bf16 %v2155_v5, %v2154_v32 }
0x149d   :  { %5701 = vmatpush3.bf16.msra.mxu1 %v6814_v34 }
0x149e   :  { %5702 = vmatprep.subr.bf16.mxu1 %v6192_v3 }
0x14d4   :  { %v2129_v15 = vpop.permute.xlu1 %2128 }
0x14d5   :  { %v2131_v17 = vmul.f32 %v6059_v14, %v2129_v15 }
0x14d7   :  { %2133 = vrot.lane.b32.xlu1 %v2131_v17, %s6195_s21 }
0x14f0   :  { %v2357_v43 = vpop.permute.xlu0 %2356 }
0x14f1   :  { %v2359_v23 = vmul.f32 %v6063_v21, %v2357_v43  ;;  %v6893_v43 = vld [vmem:[%s7392_s16] ss:$0 sm:$0xff] }
0x14f3   :  { %2361 = vrot.lane.b32.xlu0 %v2359_v23, %s6195_s21 }
0x1549   :  { %v2134_v25 = vpop.permute.xlu1 %2133 }
0x154a   :  { %v2136_v26 = vadd.f32 %v2134_v25, %v2126_v24 }
0x154c   :  { %6064 = vtanh.f32 %v2136_v26 }
0x1556   :  { %v6065_v27 = vpop.eup %6064 }
0x1557   :  { %2139 = vrot.lane.b32.xlu1 %v6065_v27, %s6195_s21 }
0x1565   :  { %v2362_v29 = vpop.permute.xlu0 %2361 }
0x1566   :  { %v6796_v30 = vadd.f32 %v2362_v29, %v2354_v28 }
0x1568   :  { %6066 = vtanh.f32 %v6796_v30 }
0x1572   :  { %v6067_v36 = vpop.eup %6066 }
0x1573   :  { %2367 = vrot.lane.b32.xlu0 %v6067_v36, %s6195_s21 }
0x15c9   :  { %v2140_v39 = vpop.permute.xlu1 %2139 }
0x15ca   :  { %v2142_v42 = vmul.f32 %v6059_v14, %v2140_v39  ;;  %v6877_v14 = vpack.c.bf16 %v2173_v12, %v2172_v10 }
0x15cc   :  { %2372 = vrot.lane.b32.xlu1 %v2142_v42, %s6196_s5 }
0x15e5   :  { %v2368_v45 = vpop.permute.xlu0 %2367 }
0x15e6   :  { %v2370_v9 = vmul.f32 %v6063_v21, %v2368_v45  ;;  %v4534_v21 = vld [vmem:[%s7378_s2 + $0x8] sm:$0xff]  }
0x15e8   :  { %2447 = vrot.lane.b32.xlu0 %v2370_v9, %s6196_s5 }
0x163e   :  { %v2373_v49 = vpop.permute.xlu1 %2372 }
0x163f   :  { %5194 = vmatmul.mubr.msk.f32.vlgmr.msra.gmra.mrb[26].mxu1 %vm80_vm1, %v2373_v49 }
0x1640   :  { %5704 = vmatpush3.bf16.msra.mxu1 %v6828_v40  ;;  %5204 = vmatprep.mubr.msk.f32.mxu1 %vm6194_vm0, %v6716_v22 }
0x1641   :  { %5705 = vmatprep.subr.bf16.mxu1 %v6192_v3 }
0x1644   :  { %5707 = vmatpush3.bf16.msra.mxu1 %v6838_v50 }
0x1645   :  { %5708 = vmatprep.subr.bf16.mxu1 %v6192_v3 }
0x165a   :  { %v6845_v51 = vpop.permute.xlu0 %2447 }
0x165b   :  { %5205 = vmatmul.mubr.msk.f32.vlgmr.msra.gmra.mrb[28].mxu1 %vm80_vm1, %v6845_v51 }
0x165c   :  { %5215 = vmatprep.mubr.msk.f32.mxu1 %vm6194_vm0, %v6716_v22  ;;  %5710 = vmatpush3.bf16.msra.mxu1 %v6871_v11 }
0x165d   :  { %5711 = vmatprep.subr.bf16.mxu1 %v6192_v3 }
0x1660   :  { %5713 = vmatpush3.bf16.msra.mxu1 %v6877_v14 }
0x1712   :  { %v2442_v52 = vpop.f32.mrb[26].mxu1 }
0x1713   :  { %v5195_v37 = vpop.f32.mrb[27].mxu1 }
0x172e   :  { %v2517_v56 = vpop.f32.mrb[28].mxu1 }
0x172f   :  { %v2518_v38 = vadd.f32 %v2517_v56, %v2442_v52  ;;  %v5206_v46 = vpop.f32.mrb[29].mxu1 }
0x1731   :  { %v2521_v57 = vadd.f32 %v6854_v54, %v2518_v38 }
0x1733   :  { %6068 = vtanh.f32 %v2521_v57  ;;  %v4531_v16 = vmul.f32 -1.442695, %v2521_v57 }
0x1735   :  { %6070 = vpow2.f32 %v4531_v16 }
0x173d   :  { %v6069_v58 = vpop.eup %6068 }
0x173e   :  { %2531 = vrot.lane.b32.xlu1 %v6069_v58, %s6195_s21 }
0x173f   :  { %v6071_v59 = vpop.eup %6070 }
0x1740   :  { %v2525_v22 = vadd.f32 1.0, %v6071_v59 }
0x1742   :  { %6072 = vrcp.f32 %v2525_v22 }
0x174c   :  { %v6073_v60 = vpop.eup %6072 }
0x174d   :  { %v2529_v0 = vmul.f32 %v6073_v60, %v2136_v26  ;;  %v6175_v26 = vmov %v4534_v21  }
0x17b0   :  { %v2532_v61 = vpop.permute.xlu1 %2531 }
0x17b1   :  { %v2534_v63 = vmul.f32 %v6073_v60, %v2532_v61 }
0x17b3   :  { %2536 = vrot.lane.b32.xlu0 %v2534_v63, %s6195_s21 }
0x1825   :  { %v2537_v1 = vpop.permute.xlu0 %2536 }
0x1826   :  { %v6859_v4 = vadd.f32 %v2537_v1, %v2529_v0 }
0x1828   :  { %6074 = vtanh.f32 %v6859_v4 }
0x1832   :  { %v6075_v15 = vpop.eup %6074 }
0x1833   :  { %2542 = vrot.lane.b32.xlu1 %v6075_v15, %s6195_s21 }
0x18a5   :  { %v2543_v17 = vpop.permute.xlu1 %2542 }
0x18a6   :  { %v2545_v18 = vmul.f32 %v6073_v60, %v2543_v17 }
0x18a8   :  { %2547 = vrot.lane.b32.xlu0 %v2545_v18, %s6196_s5 }
0x191a   :  { %v6883_v20 = vpop.permute.xlu0 %2547 }
0x191b   :  { %5216 = vmatmul.mubr.msk.f32.vlgmr.msra.gmra.mrb[30].mxu1 %vm80_vm1, %v6883_v20 }
0x19eb   :  { %2632 = sbr.rel (%p2626_p5) target bundleno = 7078 (0x1ba6), region = 81 }
0x19ee   :  { %v2617_v23 = vpop.f32.mrb[30].mxu1 }
0x19ef   :  { %v2618_v24 = vadd.f32 %v6893_v43, %v2617_v23  ;;  %v5217_v25 = vpop.f32.mrb[31].mxu1 }
0x19f1   :  { %4533 = vst [vmem:[%s7393_s17 + $0x8] sm:$0xff] %v2618_v24  ;;  %2633 = vmax.xlane.f32.xlu0 (!%p2626_p5), %v2618_v24 }
0x1a7e   :  { %v2634_v27 = vpop.xlane.xlu0 %2633 }
0x1a7f   :  { %vm2635_vm3 = vcmp.eq.f32.partialorder %v2618_v24, %v2634_v27 }
0x1a80   :  { %v2636_v28 = vsel %vm2635_vm3, %v6777_v44, 128 }
0x1a81   :  { %v2638_v29 = vshra.s32 %v2636_v28, 16  ;;  %v2637_v2 = vand.u32 65535, %v2636_v28 }
0x1a83   :  { %v2640_v31 = vcvt.s32.f32 %v2638_v29  ;;  %v2639_v5 = vcvt.s32.f32 %v2637_v2 }
0x1a85   :  { %2641 = vmin.xlane.f32.xlu0 %v2640_v31 }
0x1b12   :  { %v2642_v32 = vpop.xlane.xlu0 %2641 }
0x1b13   :  { %vm2643_vm4 = vcmp.eq.f32.partialorder %v2640_v31, %v2642_v32  ;;  %v2648_v39 = vcvt.f32.s32 %v2642_v32 }
0x1b14   :  { %v2644_v36 = vsel %vm2643_vm4, %v2639_v5, inf }
0x1b15   :  { %2645 = vmin.xlane.f32.xlu1 %v2644_v36  ;;  %v2649_v45 = vshll.u32 %v2648_v39, 16 }
0x1ba2   :  { %v2646_v42 = vpop.xlane.xlu1 %2645 }
0x1ba3   :  { %v2647_v9 = vcvt.f32.s32 %v2646_v42 }
0x1ba5   :  { %v2650_v26 = vadd.s32 %v2649_v45, %v2647_v9  }
0x1ba6 PF:  { %6077 = vset.pattern.permute.xlu0 %v6197_v6  ;;  %5720 = vmatprep.subr.bf16.mxu0 %v6192_v3  ;;  %v2658_v13 = vld [vmem:[%s7385_s9] sm:$0xff]  ;;  %v2659_v35 = vld [vmem:[%s7385_s9 + $0x8] sm:$0xff]  ;;  %v2660_v47 = vld [vmem:[%s7385_s9 + $0x10] sm:$0xff]  ;;  %s4546_s30 = sld [smem:[#allocation3 + $0x2]]  ;;  %v6177_v26 = vphi %v6175_v26, %v2650_v26  }
0x1ba7   :  { %2653 = vperm.xlu0 %6077, %v6177_v26   ;;  %v5721_v48 = vpack.c.bf16 %v2659_v35, %v2658_v13  ;;  %v2661_v49 = vld [vmem:[%s7385_s9 + $0x18] sm:$0xff]  ;;  %5714 = vmatprep.subr.bf16.mxu1 %v6192_v3  ;;  %v2662_v37 = vld [vmem:[%s7385_s9 + $0x20] sm:$0xff]  ;;  %v2663_v56 = vld [vmem:[%s7385_s9 + $0x28] sm:$0xff] }
0x1ba8   :  { %5716 = vmatpush3.bf16.msra.mxu1 %v6708_v19  ;;  %5226 = vmatprep.mubr.msk.f32.mxu1 %vm6194_vm0, %v6193_v8  ;;  %v5724_v52 = vpack.c.bf16 %v2661_v49, %v2660_v47  ;;  %v5727_v38 = vpack.c.bf16 %v2663_v56, %v2662_v37  ;;  %v2664_v46 = vld [vmem:[%s7385_s9 + $0x30] sm:$0xff]  ;;  %v2665_v57 = vld [vmem:[%s7385_s9 + $0x38] sm:$0xff]  ;;  %v2666_v16 = vld [vmem:[%s7385_s9 + $0x40] sm:$0xff] }
0x1ba9   :  { %5722 = vmatpush3.bf16.msra.mxu0 %v5721_v48  ;;  %5717 = vmatprep.subr.bf16.mxu1 %v6192_v3  ;;  %v5730_v58 = vpack.c.bf16 %v2665_v57, %v2664_v46  ;;  %v2667_v59 = vld [vmem:[%s7385_s9 + $0x48] sm:$0xff]  ;;  %v2668_v22 = vld [vmem:[%s7385_s9 + $0x50] sm:$0xff]  ;;  %v2669_v60 = vld [vmem:[%s7385_s9 + $0x58] sm:$0xff] }
0x1baa   :  { %5723 = vmatprep.subr.bf16.mxu0 %v6192_v3  ;;  %5261 = vmatprep.mubr.msk.f32.mxu0 %vm6194_vm0, %v6193_v8  ;;  %v5736_v61 = vpack.c.bf16 %v2669_v60, %v2668_v22  ;;  %v2670_v63 = vld [vmem:[%s7385_s9 + $0x60] sm:$0xff]  ;;  %v2671_v0 = vld [vmem:[%s7385_s9 + $0x68] sm:$0xff]  ;;  %v2672_v7 = vld [vmem:[%s7385_s9 + $0x70] sm:$0xff] }
0x1bab   :  { %v5739_v1 = vpack.c.bf16 %v2671_v0, %v2670_v63  ;;  %v2673_v53 = vld [vmem:[%s7385_s9 + $0x78] sm:$0xff] }
0x1bac   :  { %5719 = vmatpush3.bf16.msra.mxu1 %v6732_v41  ;;  %v5742_v10 = vpack.c.bf16 %v2673_v53, %v2672_v7  ;;  %p3089_p6 = scmp.eq.s32.totalorder %s4546_s30, 1 }
0x1bad   :  { %5725 = vmatpush3.bf16.msra.mxu0 %v5724_v52  ;;  %5744 = vmatprep.subr.bf16.mxu1 %v6192_v3 }
0x1bae   :  { %5726 = vmatprep.subr.bf16.mxu0 %v6192_v3 }
0x1baf   :  { %5227 = vmatmul.mubr.msk.f32.vlgmr.msra.gmra.mrb[32].mxu1 %vm80_vm1, %v6845_v51  ;;  %v5733_v51 = vpack.c.bf16 %v2667_v59, %v2666_v16 }
0x1bb0   :  { %5746 = vmatpush3.bf16.msra.mxu1 %v6808_v33  ;;  %5272 = vmatprep.mubr.msk.f32.mxu1 %vm6194_vm0, %v6193_v8 }
0x1bb1   :  { %5728 = vmatpush3.bf16.msra.mxu0 %v5727_v38  ;;  %5747 = vmatprep.subr.bf16.mxu1 %v6192_v3 }
0x1bb2   :  { %5729 = vmatprep.subr.bf16.mxu0 %v6192_v3 }
0x1bb4   :  { %5749 = vmatpush3.bf16.msra.mxu1 %v6814_v34 }
0x1bb5   :  { %5731 = vmatpush3.bf16.msra.mxu0 %v5730_v58  ;;  %5750 = vmatprep.subr.bf16.mxu1 %v6192_v3 }
0x1bb6   :  { %5732 = vmatprep.subr.bf16.mxu0 %v6192_v3 }
0x1bb7   :  { %5273 = vmatmul.mubr.msk.f32.vlgmr.msra.gmra.mrb[34].mxu1 %vm80_vm1, %v6883_v20 }
0x1bb8   :  { %5752 = vmatpush3.bf16.msra.mxu1 %v6828_v40  ;;  %5283 = vmatprep.mubr.msk.f32.mxu1 %vm6194_vm0, %v6193_v8 }
0x1bb9   :  { %5734 = vmatpush3.bf16.msra.mxu0 %v5733_v51  ;;  %5753 = vmatprep.subr.bf16.mxu1 %v6192_v3 }
0x1bba   :  { %5735 = vmatprep.subr.bf16.mxu0 %v6192_v3 }
0x1bbc   :  { %5755 = vmatpush3.bf16.msra.mxu1 %v6838_v50 }
0x1bbd   :  { %5737 = vmatpush3.bf16.msra.mxu0 %v5736_v61  ;;  %5756 = vmatprep.subr.bf16.mxu1 %v6192_v3 }
0x1bbe   :  { %5738 = vmatprep.subr.bf16.mxu0 %v6192_v3 }
0x1bc1   :  { %5740 = vmatpush3.bf16.msra.mxu0 %v5739_v1 }
0x1bc2   :  { %5741 = vmatprep.subr.bf16.mxu0 %v6192_v3 }
0x1bc5   :  { %5743 = vmatpush3.bf16.msra.mxu0 %v5742_v10 }
0x1c26   :  { %v2654_v12 = vpop.permute.xlu0 %2653 }
0x1c27   :  { %vm2655_vm5 = vcmp.eq.s32.totalorder %v6777_v44, %v2654_v12 }
0x1c28   :  { %5262 = vmatmul.mubr.msk.f32.vlgmr.msra.gmra.mrb[34].mxu0 %vm2655_vm5, %v6198_v55 }
0x1c82   :  { %v2740_v15 = vpop.f32.mrb[32].mxu1 }
0x1c83   :  { %v5228_v17 = vpop.f32.mrb[33].mxu1 }
0x1c8a   :  { %v2905_v39 = vpop.f32.mrb[34].mxu1 }
0x1c8b   :  { %v5274_v42 = vpop.f32.mrb[35].mxu1 }
0x1cfb   :  { %v2810_v18 = vpop.f32.mrb[34].mxu0 }
0x1cfc   :  { %v2811_v20 = vadd.f32 %v2810_v18, %v2740_v15  ;;  %v5263_v21 = vpop.f32.mrb[35].mxu0 }
0x1cfe   :  { %v2814_v23 = vadd.f32 %v6787_v62, %v2811_v20 }
0x1d00   :  { %6078 = vtanh.f32 %v2814_v23  ;;  %v4539_v25 = vmul.f32 -1.442695, %v2814_v23 }
0x1d02   :  { %6080 = vpow2.f32 %v4539_v25 }
0x1d0a   :  { %v6079_v24 = vpop.eup %6078 }
0x1d0b   :  { %2824 = vrot.lane.b32.xlu0 %v6079_v24, %s6195_s21 }
0x1d0c   :  { %v6081_v26 = vpop.eup %6080 }
0x1d0d   :  { %v2818_v27 = vadd.f32 1.0, %v6081_v26 }
0x1d0f   :  { %6082 = vrcp.f32 %v2818_v27 }
0x1d19   :  { %v6083_v28 = vpop.eup %6082 }
0x1d1a   :  { %v2822_v2 = vmul.f32 %v6083_v28, %v6796_v30 }
0x1d7d   :  { %v2825_v29 = vpop.permute.xlu0 %2824 }
0x1d7e   :  { %v2827_v31 = vmul.f32 %v6083_v28, %v2825_v29 }
0x1d80   :  { %2829 = vrot.lane.b32.xlu1 %v2827_v31, %s6195_s21 }
0x1df2   :  { %v2830_v32 = vpop.permute.xlu1 %2829 }
0x1df3   :  { %v6988_v5 = vadd.f32 %v2830_v32, %v2822_v2 }
0x1df5   :  { %6084 = vtanh.f32 %v6988_v5 }
0x1dff   :  { %v6085_v36 = vpop.eup %6084 }
0x1e00   :  { %2835 = vrot.lane.b32.xlu1 %v6085_v36, %s6195_s21 }
0x1e72   :  { %v2836_v45 = vpop.permute.xlu1 %2835 }
0x1e73   :  { %v2838_v9 = vmul.f32 %v6083_v28, %v2836_v45 }
0x1e75   :  { %2910 = vrot.lane.b32.xlu0 %v2838_v9, %s6196_s5 }
0x1ee7   :  { %v6993_v13 = vpop.permute.xlu0 %2910 }
0x1ee8   :  { %5284 = vmatmul.mubr.msk.f32.vlgmr.msra.gmra.mrb[36].mxu1 %vm80_vm1, %v6993_v13 }
0x1ee9   :  { %5758 = vmatpush3.bf16.msra.mxu1 %v6871_v11  ;;  %5294 = vmatprep.mubr.msk.f32.mxu1 %vm6194_vm0, %v6193_v8 }
0x1eea   :  { %5759 = vmatprep.subr.bf16.mxu1 %v6192_v3 }
0x1eed   :  { %5761 = vmatpush3.bf16.msra.mxu1 %v6877_v14 }
0x1fbb   :  { %v2980_v30 = vpop.f32.mrb[36].mxu1 }
0x1fbc   :  { %v2981_v35 = vadd.f32 %v2980_v30, %v2905_v39  ;;  %v5285_v47 = vpop.f32.mrb[37].mxu1 }
0x1fbe   :  { %v2984_v48 = vadd.f32 %v6854_v54, %v2981_v35 }
0x1fc0   :  { %6086 = vtanh.f32 %v2984_v48  ;;  %v4542_v52 = vmul.f32 -1.442695, %v2984_v48 }
0x1fc2   :  { %6088 = vpow2.f32 %v4542_v52 }
0x1fca   :  { %v6087_v49 = vpop.eup %6086 }
0x1fcb   :  { %2994 = vrot.lane.b32.xlu1 %v6087_v49, %s6195_s21 }
0x1fcc   :  { %v6089_v37 = vpop.eup %6088 }
0x1fcd   :  { %v2988_v56 = vadd.f32 1.0, %v6089_v37 }
0x1fcf   :  { %6090 = vrcp.f32 %v2988_v56 }
0x1fd9   :  { %v6091_v38 = vpop.eup %6090 }
0x1fda   :  { %v2992_v58 = vmul.f32 %v6091_v38, %v6859_v4  ;;  %v4545_v4 = vld [vmem:[%s7378_s2 + $0x10] sm:$0xff]  }
0x1fdb   :  { %v6179_v7 = vmov %v4545_v4  }
0x203d   :  { %v2995_v46 = vpop.permute.xlu1 %2994 }
0x203e   :  { %v2997_v57 = vmul.f32 %v6091_v38, %v2995_v46 }
0x2040   :  { %2999 = vrot.lane.b32.xlu0 %v2997_v57, %s6195_s21 }
0x20b2   :  { %v3000_v16 = vpop.permute.xlu0 %2999 }
0x20b3   :  { %v7006_v59 = vadd.f32 %v3000_v16, %v2992_v58 }
0x20b5   :  { %6092 = vtanh.f32 %v7006_v59 }
0x20bf   :  { %v6093_v51 = vpop.eup %6092 }
0x20c0   :  { %3005 = vrot.lane.b32.xlu1 %v6093_v51, %s6195_s21 }
0x2132   :  { %v3006_v22 = vpop.permute.xlu1 %3005 }
0x2133   :  { %v3008_v60 = vmul.f32 %v6091_v38, %v3006_v22 }
0x2135   :  { %3010 = vrot.lane.b32.xlu0 %v3008_v60, %s6196_s5 }
0x21a7   :  { %v7011_v61 = vpop.permute.xlu0 %3010 }
0x21a8   :  { %5295 = vmatmul.mubr.msk.f32.vlgmr.msra.gmra.mrb[38].mxu1 %vm80_vm1, %v7011_v61 }
0x2278   :  { %3095 = sbr.rel (%p3089_p6) target bundleno = 9267 (0x2433), region = 89 }
0x227b   :  { %v3080_v63 = vpop.f32.mrb[38].mxu1 }
0x227c   :  { %v3081_v0 = vadd.f32 %v6893_v43, %v3080_v63  ;;  %v5296_v1 = vpop.f32.mrb[39].mxu1 }
0x227e   :  { %4544 = vst [vmem:[%s7393_s17 + $0x10] sm:$0xff] %v3081_v0  ;;  %3096 = vmax.xlane.f32.xlu0 (!%p3089_p6), %v3081_v0 }
0x230b   :  { %v3097_v53 = vpop.xlane.xlu0 %3096 }
0x230c   :  { %vm3098_vm6 = vcmp.eq.f32.partialorder %v3081_v0, %v3097_v53 }
0x230d   :  { %v3099_v10 = vsel %vm3098_vm6, %v6777_v44, 128 }
0x230e   :  { %v3101_v12 = vshra.s32 %v3099_v10, 16  ;;  %v3100_v17 = vand.u32 65535, %v3099_v10 }
0x2310   :  { %v3103_v15 = vcvt.s32.f32 %v3101_v12  ;;  %v3102_v20 = vcvt.s32.f32 %v3100_v17 }
0x2312   :  { %3104 = vmin.xlane.f32.xlu0 %v3103_v15 }
0x239f   :  { %v3105_v18 = vpop.xlane.xlu0 %3104 }
0x23a0   :  { %vm3106_vm7 = vcmp.eq.f32.partialorder %v3103_v15, %v3105_v18  ;;  %v3111_v23 = vcvt.f32.s32 %v3105_v18 }
0x23a1   :  { %v3107_v21 = vsel %vm3106_vm7, %v3102_v20, inf }
0x23a2   :  { %3108 = vmin.xlane.f32.xlu1 %v3107_v21  ;;  %v3112_v25 = vshll.u32 %v3111_v23, 16 }
0x242f   :  { %v3109_v24 = vpop.xlane.xlu1 %3108 }
0x2430   :  { %v3110_v26 = vcvt.f32.s32 %v3109_v24 }
0x2432   :  { %v3113_v7 = vadd.s32 %v3112_v25, %v3110_v26  }
0x2433 PF:  { %6094 = vset.pattern.permute.xlu0 %v6197_v6  ;;  %5768 = vmatprep.subr.bf16.mxu0 %v6192_v3  ;;  %v3121_v27 = vld [vmem:[%s7385_s9] sm:$0xff]  ;;  %v3122_v28 = vld [vmem:[%s7385_s9 + $0x8] sm:$0xff]  ;;  %v3123_v29 = vld [vmem:[%s7385_s9 + $0x10] sm:$0xff]  ;;  %s4557_s11 = sld [smem:[#allocation3 + $0x3]]  ;;  %v6181_v7 = vphi %v6179_v7, %v3113_v7  }
0x2434   :  { %3116 = vperm.xlu0 %6094, %v6181_v7   ;;  %v5769_v31 = vpack.c.bf16 %v3122_v28, %v3121_v27  ;;  %v3124_v2 = vld [vmem:[%s7385_s9 + $0x18] sm:$0xff]  ;;  %5762 = vmatprep.subr.bf16.mxu1 %v6192_v3  ;;  %v3125_v36 = vld [vmem:[%s7385_s9 + $0x20] sm:$0xff]  ;;  %v3126_v39 = vld [vmem:[%s7385_s9 + $0x28] sm:$0xff] }
0x2435   :  { %5764 = vmatpush3.bf16.msra.mxu1 %v6708_v19  ;;  %5305 = vmatprep.mubr.msk.f32.mxu1 %vm6194_vm0, %v6193_v8  ;;  %v5772_v32 = vpack.c.bf16 %v3124_v2, %v3123_v29  ;;  %v5775_v42 = vpack.c.bf16 %v3126_v39, %v3125_v36  ;;  %v3127_v45 = vld [vmem:[%s7385_s9 + $0x30] sm:$0xff]  ;;  %v3128_v9 = vld [vmem:[%s7385_s9 + $0x38] sm:$0xff]  ;;  %v3129_v35 = vld [vmem:[%s7385_s9 + $0x40] sm:$0xff] }
0x2436   :  { %5770 = vmatpush3.bf16.msra.mxu0 %v5769_v31  ;;  %5765 = vmatprep.subr.bf16.mxu1 %v6192_v3  ;;  %v5778_v30 = vpack.c.bf16 %v3128_v9, %v3127_v45  ;;  %v3130_v47 = vld [vmem:[%s7385_s9 + $0x48] sm:$0xff]  ;;  %v3131_v48 = vld [vmem:[%s7385_s9 + $0x50] sm:$0xff]  ;;  %v3132_v49 = vld [vmem:[%s7385_s9 + $0x58] sm:$0xff] }
0x2437   :  { %5771 = vmatprep.subr.bf16.mxu0 %v6192_v3  ;;  %5340 = vmatprep.mubr.msk.f32.mxu0 %vm6194_vm0, %v6193_v8  ;;  %v5784_v52 = vpack.c.bf16 %v3132_v49, %v3131_v48  ;;  %v3133_v37 = vld [vmem:[%s7385_s9 + $0x60] sm:$0xff]  ;;  %v3134_v56 = vld [vmem:[%s7385_s9 + $0x68] sm:$0xff]  ;;  %v3135_v46 = vld [vmem:[%s7385_s9 + $0x70] sm:$0xff] }
0x2438   :  { %v5787_v38 = vpack.c.bf16 %v3134_v56, %v3133_v37  ;;  %v3136_v57 = vld [vmem:[%s7385_s9 + $0x78] sm:$0xff] }
0x2439   :  { %5767 = vmatpush3.bf16.msra.mxu1 %v6732_v41  ;;  %v5790_v58 = vpack.c.bf16 %v3136_v57, %v3135_v46  ;;  %p3552_p7 = scmp.eq.s32.totalorder %s4557_s11, 1 }
0x243a   :  { %5773 = vmatpush3.bf16.msra.mxu0 %v5772_v32  ;;  %5792 = vmatprep.subr.bf16.mxu1 %v6192_v3 }
0x243b   :  { %5774 = vmatprep.subr.bf16.mxu0 %v6192_v3 }
0x243c   :  { %5306 = vmatmul.mubr.msk.f32.vlgmr.msra.gmra.mrb[40].mxu1 %vm80_vm1, %v6993_v13  ;;  %v5781_v13 = vpack.c.bf16 %v3130_v47, %v3129_v35 }
0x243d   :  { %5794 = vmatpush3.bf16.msra.mxu1 %v6808_v33  ;;  %5351 = vmatprep.mubr.msk.f32.mxu1 %vm6194_vm0, %v6193_v8 }
0x243e   :  { %5776 = vmatpush3.bf16.msra.mxu0 %v5775_v42  ;;  %5795 = vmatprep.subr.bf16.mxu1 %v6192_v3 }
0x243f   :  { %5777 = vmatprep.subr.bf16.mxu0 %v6192_v3 }
0x2441   :  { %5797 = vmatpush3.bf16.msra.mxu1 %v6814_v34 }
0x2442   :  { %5779 = vmatpush3.bf16.msra.mxu0 %v5778_v30  ;;  %5798 = vmatprep.subr.bf16.mxu1 %v6192_v3 }
0x2443   :  { %5780 = vmatprep.subr.bf16.mxu0 %v6192_v3 }
0x2444   :  { %5352 = vmatmul.mubr.msk.f32.vlgmr.msra.gmra.mrb[42].mxu1 %vm80_vm1, %v7011_v61 }
0x2445   :  { %5800 = vmatpush3.bf16.msra.mxu1 %v6828_v40  ;;  %5362 = vmatprep.mubr.msk.f32.mxu1 %vm6194_vm0, %v6193_v8 }
0x2446   :  { %5782 = vmatpush3.bf16.msra.mxu0 %v5781_v13  ;;  %5801 = vmatprep.subr.bf16.mxu1 %v6192_v3 }
0x2447   :  { %5783 = vmatprep.subr.bf16.mxu0 %v6192_v3 }
0x2449   :  { %5803 = vmatpush3.bf16.msra.mxu1 %v6838_v50 }
0x244a   :  { %5785 = vmatpush3.bf16.msra.mxu0 %v5784_v52  ;;  %5804 = vmatprep.subr.bf16.mxu1 %v6192_v3 }
0x244b   :  { %5786 = vmatprep.subr.bf16.mxu0 %v6192_v3 }
0x244e   :  { %5788 = vmatpush3.bf16.msra.mxu0 %v5787_v38 }
0x244f   :  { %5789 = vmatprep.subr.bf16.mxu0 %v6192_v3 }
0x2452   :  { %5791 = vmatpush3.bf16.msra.mxu0 %v5790_v58 }
0x24b3   :  { %v3117_v16 = vpop.permute.xlu0 %3116 }
0x24b4   :  { %vm3118_vm8 = vcmp.eq.s32.totalorder %v6777_v44, %v3117_v16 }
0x24b5   :  { %5341 = vmatmul.mubr.msk.f32.vlgmr.msra.gmra.mrb[36].mxu0 %vm3118_vm8, %v6198_v55 }
0x250f   :  { %v3203_v51 = vpop.f32.mrb[40].mxu1 }
0x2510   :  { %v5307_v22 = vpop.f32.mrb[41].mxu1 }
0x2517   :  { %v3368_v23 = vpop.f32.mrb[42].mxu1 }
0x2518   :  { %v5353_v24 = vpop.f32.mrb[43].mxu1 }
0x2588   :  { %v3273_v60 = vpop.f32.mrb[36].mxu0 }
0x2589   :  { %v3274_v61 = vadd.f32 %v3273_v60, %v3203_v51  ;;  %v5342_v4 = vpop.f32.mrb[37].mxu0 }
0x258b   :  { %v3277_v63 = vadd.f32 %v6787_v62, %v3274_v61 }
0x258d   :  { %6095 = vtanh.f32 %v3277_v63  ;;  %v4550_v1 = vmul.f32 -1.442695, %v3277_v63 }
0x258f   :  { %6097 = vpow2.f32 %v4550_v1 }
0x2597   :  { %v6096_v0 = vpop.eup %6095 }
0x2598   :  { %3287 = vrot.lane.b32.xlu0 %v6096_v0, %s6195_s21 }
0x2599   :  { %v6098_v7 = vpop.eup %6097 }
0x259a   :  { %v3281_v53 = vadd.f32 1.0, %v6098_v7 }
0x259c   :  { %6099 = vrcp.f32 %v3281_v53 }
0x25a6   :  { %v6100_v10 = vpop.eup %6099 }
0x25a7   :  { %v3285_v17 = vmul.f32 %v6100_v10, %v6988_v5 }
0x260a   :  { %v3288_v12 = vpop.permute.xlu0 %3287 }
0x260b   :  { %v3290_v15 = vmul.f32 %v6100_v10, %v3288_v12 }
0x260d   :  { %3292 = vrot.lane.b32.xlu1 %v3290_v15, %s6195_s21 }
0x267f   :  { %v3293_v18 = vpop.permute.xlu1 %3292 }
0x2680   :  { %v7111_v20 = vadd.f32 %v3293_v18, %v3285_v17 }
0x2682   :  { %6101 = vtanh.f32 %v7111_v20 }
0x268c   :  { %v6102_v21 = vpop.eup %6101 }
0x268d   :  { %3298 = vrot.lane.b32.xlu1 %v6102_v21, %s6195_s21 }
0x26ff   :  { %v3299_v25 = vpop.permute.xlu1 %3298 }
0x2700   :  { %v3301_v26 = vmul.f32 %v6100_v10, %v3299_v25 }
0x2702   :  { %3373 = vrot.lane.b32.xlu0 %v3301_v26, %s6196_s5 }
0x2774   :  { %v7116_v27 = vpop.permute.xlu0 %3373 }
0x2775   :  { %5363 = vmatmul.mubr.msk.f32.vlgmr.msra.gmra.mrb[44].mxu1 %vm80_vm1, %v7116_v27 }
0x2776   :  { %5806 = vmatpush3.bf16.msra.mxu1 %v6871_v11  ;;  %5373 = vmatprep.mubr.msk.f32.mxu1 %vm6194_vm0, %v6193_v8 }
0x2777   :  { %5807 = vmatprep.subr.bf16.mxu1 %v6192_v3 }
0x277a   :  { %5809 = vmatpush3.bf16.msra.mxu1 %v6877_v14 }
0x2848   :  { %v3443_v5 = vpop.f32.mrb[44].mxu1 }
0x2849   :  { %v3444_v28 = vadd.f32 %v3443_v5, %v3368_v23  ;;  %v5364_v29 = vpop.f32.mrb[45].mxu1 }
0x284b   :  { %v3447_v31 = vadd.f32 %v6854_v54, %v3444_v28 }
0x284d   :  { %6103 = vtanh.f32 %v3447_v31  ;;  %v4553_v32 = vmul.f32 -1.442695, %v3447_v31 }
0x284f   :  { %6105 = vpow2.f32 %v4553_v32 }
0x2857   :  { %v6104_v2 = vpop.eup %6103 }
0x2858   :  { %3457 = vrot.lane.b32.xlu1 %v6104_v2, %s6195_s21 }
0x2859   :  { %v6106_v36 = vpop.eup %6105 }
0x285a   :  { %v3451_v39 = vadd.f32 1.0, %v6106_v36 }
0x285c   :  { %6107 = vrcp.f32 %v3451_v39 }
0x2866   :  { %v6108_v42 = vpop.eup %6107 }
0x2867   :  { %v3455_v30 = vmul.f32 %v6108_v42, %v7006_v59  ;;  %v4556_v59 = vld [vmem:[%s7378_s2 + $0x18] sm:$0xff]  }
0x2868   :  { %v6183_v46 = vmov %v4556_v59  }
0x28ca   :  { %v3458_v45 = vpop.permute.xlu1 %3457 }
0x28cb   :  { %v3460_v9 = vmul.f32 %v6108_v42, %v3458_v45 }
0x28cd   :  { %3462 = vrot.lane.b32.xlu0 %v3460_v9, %s6195_s21 }
0x293f   :  { %v3463_v35 = vpop.permute.xlu0 %3462 }
0x2940   :  { %v7129_v47 = vadd.f32 %v3463_v35, %v3455_v30 }
0x2942   :  { %6109 = vtanh.f32 %v7129_v47 }
0x294c   :  { %v6110_v13 = vpop.eup %6109 }
0x294d   :  { %3468 = vrot.lane.b32.xlu1 %v6110_v13, %s6195_s21 }
0x29bf   :  { %v3469_v48 = vpop.permute.xlu1 %3468 }
0x29c0   :  { %v3471_v49 = vmul.f32 %v6108_v42, %v3469_v48 }
0x29c2   :  { %3473 = vrot.lane.b32.xlu0 %v3471_v49, %s6196_s5 }
0x2a34   :  { %v7134_v52 = vpop.permute.xlu0 %3473 }
0x2a35   :  { %5374 = vmatmul.mubr.msk.f32.vlgmr.msra.gmra.mrb[46].mxu1 %vm80_vm1, %v7134_v52 }
0x2b05   :  { %3558 = sbr.rel (%p3552_p7) target bundleno = 11456 (0x2cc0), region = 97 }
0x2b08   :  { %v3543_v37 = vpop.f32.mrb[46].mxu1 }
0x2b09   :  { %v3544_v56 = vadd.f32 %v6893_v43, %v3543_v37  ;;  %v5375_v38 = vpop.f32.mrb[47].mxu1 }
0x2b0b   :  { %4555 = vst [vmem:[%s7393_s17 + $0x18] sm:$0xff] %v3544_v56  ;;  %3559 = vmax.xlane.f32.xlu0 (!%p3552_p7), %v3544_v56 }
0x2b98   :  { %v3560_v57 = vpop.xlane.xlu0 %3559 }
0x2b99   :  { %vm3561_vm9 = vcmp.eq.f32.partialorder %v3544_v56, %v3560_v57 }
0x2b9a   :  { %v3562_v58 = vsel %vm3561_vm9, %v6777_v44, 128 }
0x2b9b   :  { %v3564_v16 = vshra.s32 %v3562_v58, 16  ;;  %v3563_v22 = vand.u32 65535, %v3562_v58 }
0x2b9d   :  { %v3566_v51 = vcvt.s32.f32 %v3564_v16  ;;  %v3565_v61 = vcvt.s32.f32 %v3563_v22 }
0x2b9f   :  { %3567 = vmin.xlane.f32.xlu0 %v3566_v51 }
0x2c2c   :  { %v3568_v60 = vpop.xlane.xlu0 %3567 }
0x2c2d   :  { %vm3569_vm10 = vcmp.eq.f32.partialorder %v3566_v51, %v3568_v60  ;;  %v3574_v63 = vcvt.f32.s32 %v3568_v60 }
0x2c2e   :  { %v3570_v4 = vsel %vm3569_vm10, %v3565_v61, inf }
0x2c2f   :  { %3571 = vmin.xlane.f32.xlu1 %v3570_v4  ;;  %v3575_v1 = vshll.u32 %v3574_v63, 16 }
0x2cbc   :  { %v3572_v0 = vpop.xlane.xlu1 %3571 }
0x2cbd   :  { %v3573_v7 = vcvt.f32.s32 %v3572_v0 }
0x2cbf   :  { %v3576_v46 = vadd.s32 %v3575_v1, %v3573_v7  }
0x2cc0 PF:  { %6111 = vset.pattern.permute.xlu0 %v6197_v6  ;;  %5816 = vmatprep.subr.bf16.mxu0 %v6192_v3  ;;  %v3584_v53 = vld [vmem:[%s7385_s9] sm:$0xff]  ;;  %v3585_v10 = vld [vmem:[%s7385_s9 + $0x8] sm:$0xff]  ;;  %v3586_v12 = vld [vmem:[%s7385_s9 + $0x10] sm:$0xff]  ;;  %s4568_s27 = sld [smem:[#allocation3 + $0x4]]  ;;  %v6185_v46 = vphi %v6183_v46, %v3576_v46  }
0x2cc1   :  { %3579 = vperm.xlu0 %6111, %v6185_v46   ;;  %v5817_v15 = vpack.c.bf16 %v3585_v10, %v3584_v53  ;;  %v3587_v17 = vld [vmem:[%s7385_s9 + $0x18] sm:$0xff]  ;;  %5810 = vmatprep.subr.bf16.mxu1 %v6192_v3  ;;  %v3588_v21 = vld [vmem:[%s7385_s9 + $0x20] sm:$0xff]  ;;  %v3589_v23 = vld [vmem:[%s7385_s9 + $0x28] sm:$0xff] }
0x2cc2   :  { %5812 = vmatpush3.bf16.msra.mxu1 %v6708_v19  ;;  %5384 = vmatprep.mubr.msk.f32.mxu1 %vm6194_vm0, %v6193_v8  ;;  %v5820_v18 = vpack.c.bf16 %v3587_v17, %v3586_v12  ;;  %v5823_v24 = vpack.c.bf16 %v3589_v23, %v3588_v21  ;;  %v3590_v25 = vld [vmem:[%s7385_s9 + $0x30] sm:$0xff]  ;;  %v3591_v26 = vld [vmem:[%s7385_s9 + $0x38] sm:$0xff]  ;;  %v3592_v28 = vld [vmem:[%s7385_s9 + $0x40] sm:$0xff] }
0x2cc3   :  { %5818 = vmatpush3.bf16.msra.mxu0 %v5817_v15  ;;  %5813 = vmatprep.subr.bf16.mxu1 %v6192_v3  ;;  %v5826_v5 = vpack.c.bf16 %v3591_v26, %v3590_v25  ;;  %v3593_v29 = vld [vmem:[%s7385_s9 + $0x48] sm:$0xff]  ;;  %v3594_v31 = vld [vmem:[%s7385_s9 + $0x50] sm:$0xff]  ;;  %v3595_v2 = vld [vmem:[%s7385_s9 + $0x58] sm:$0xff] }
0x2cc4   :  { %5819 = vmatprep.subr.bf16.mxu0 %v6192_v3  ;;  %5419 = vmatprep.mubr.msk.f32.mxu0 %vm6194_vm0, %v6193_v8  ;;  %v5832_v32 = vpack.c.bf16 %v3595_v2, %v3594_v31  ;;  %v3596_v36 = vld [vmem:[%s7385_s9 + $0x60] sm:$0xff]  ;;  %v3597_v39 = vld [vmem:[%s7385_s9 + $0x68] sm:$0xff]  ;;  %v3598_v45 = vld [vmem:[%s7385_s9 + $0x70] sm:$0xff] }
0x2cc5   :  { %v5835_v42 = vpack.c.bf16 %v3597_v39, %v3596_v36  ;;  %v3599_v9 = vld [vmem:[%s7385_s9 + $0x78] sm:$0xff] }
0x2cc6   :  { %5815 = vmatpush3.bf16.msra.mxu1 %v6732_v41  ;;  %v5838_v30 = vpack.c.bf16 %v3599_v9, %v3598_v45  ;;  %p4015_p8 = scmp.eq.s32.totalorder %s4568_s27, 1 }
0x2cc7   :  { %5821 = vmatpush3.bf16.msra.mxu0 %v5820_v18  ;;  %5840 = vmatprep.subr.bf16.mxu1 %v6192_v3 }
0x2cc8   :  { %5822 = vmatprep.subr.bf16.mxu0 %v6192_v3 }
0x2cc9   :  { %5385 = vmatmul.mubr.msk.f32.vlgmr.msra.gmra.mrb[48].mxu1 %vm80_vm1, %v7116_v27  ;;  %v5829_v27 = vpack.c.bf16 %v3593_v29, %v3592_v28 }
0x2cca   :  { %5842 = vmatpush3.bf16.msra.mxu1 %v6808_v33  ;;  %5430 = vmatprep.mubr.msk.f32.mxu1 %vm6194_vm0, %v6193_v8 }
0x2ccb   :  { %5824 = vmatpush3.bf16.msra.mxu0 %v5823_v24  ;;  %5843 = vmatprep.subr.bf16.mxu1 %v6192_v3 }
0x2ccc   :  { %5825 = vmatprep.subr.bf16.mxu0 %v6192_v3 }
0x2cce   :  { %5845 = vmatpush3.bf16.msra.mxu1 %v6814_v34 }
0x2ccf   :  { %5827 = vmatpush3.bf16.msra.mxu0 %v5826_v5  ;;  %5846 = vmatprep.subr.bf16.mxu1 %v6192_v3 }
0x2cd0   :  { %5828 = vmatprep.subr.bf16.mxu0 %v6192_v3 }
0x2cd1   :  { %5431 = vmatmul.mubr.msk.f32.vlgmr.msra.gmra.mrb[50].mxu1 %vm80_vm1, %v7134_v52 }
0x2cd2   :  { %5848 = vmatpush3.bf16.msra.mxu1 %v6828_v40  ;;  %5441 = vmatprep.mubr.msk.f32.mxu1 %vm6194_vm0, %v6193_v8 }
0x2cd3   :  { %5830 = vmatpush3.bf16.msra.mxu0 %v5829_v27  ;;  %5849 = vmatprep.subr.bf16.mxu1 %v6192_v3 }
0x2cd4   :  { %5831 = vmatprep.subr.bf16.mxu0 %v6192_v3 }
0x2cd6   :  { %5851 = vmatpush3.bf16.msra.mxu1 %v6838_v50 }
0x2cd7   :  { %5833 = vmatpush3.bf16.msra.mxu0 %v5832_v32  ;;  %5852 = vmatprep.subr.bf16.mxu1 %v6192_v3 }
0x2cd8   :  { %5834 = vmatprep.subr.bf16.mxu0 %v6192_v3 }
0x2cdb   :  { %5836 = vmatpush3.bf16.msra.mxu0 %v5835_v42 }
0x2cdc   :  { %5837 = vmatprep.subr.bf16.mxu0 %v6192_v3 }
0x2cdf   :  { %5839 = vmatpush3.bf16.msra.mxu0 %v5838_v30 }
0x2d40   :  { %v3580_v35 = vpop.permute.xlu0 %3579 }
0x2d41   :  { %vm3581_vm11 = vcmp.eq.s32.totalorder %v6777_v44, %v3580_v35 }
0x2d42   :  { %5420 = vmatmul.mubr.msk.f32.vlgmr.msra.gmra.mrb[38].mxu0 %vm3581_vm11, %v6198_v55 }
0x2d9c   :  { %v3666_v13 = vpop.f32.mrb[48].mxu1 }
0x2d9d   :  { %v5386_v48 = vpop.f32.mrb[49].mxu1 }
0x2da4   :  { %v3831_v63 = vpop.f32.mrb[50].mxu1 }
0x2da5   :  { %v5432_v0 = vpop.f32.mrb[51].mxu1 }
0x2e15   :  { %v3736_v49 = vpop.f32.mrb[38].mxu0 }
0x2e16   :  { %v3737_v52 = vadd.f32 %v3736_v49, %v3666_v13  ;;  %v5421_v59 = vpop.f32.mrb[39].mxu0 }
0x2e18   :  { %v3740_v37 = vadd.f32 %v6787_v62, %v3737_v52 }
0x2e1a   :  { %6112 = vtanh.f32 %v3740_v37  ;;  %v4561_v38 = vmul.f32 -1.442695, %v3740_v37 }
0x2e1c   :  { %6114 = vpow2.f32 %v4561_v38 }
0x2e24   :  { %v6113_v56 = vpop.eup %6112 }
0x2e25   :  { %3750 = vrot.lane.b32.xlu0 %v6113_v56, %s6195_s21 }
0x2e26   :  { %v6115_v46 = vpop.eup %6114 }
0x2e27   :  { %v3744_v57 = vadd.f32 1.0, %v6115_v46 }
0x2e29   :  { %6116 = vrcp.f32 %v3744_v57 }
0x2e33   :  { %v6117_v58 = vpop.eup %6116 }
0x2e34   :  { %v3748_v22 = vmul.f32 %v6117_v58, %v7111_v20 }
0x2e97   :  { %v3751_v16 = vpop.permute.xlu0 %3750 }
0x2e98   :  { %v3753_v51 = vmul.f32 %v6117_v58, %v3751_v16 }
0x2e9a   :  { %3755 = vrot.lane.b32.xlu1 %v3753_v51, %s6195_s21 }
0x2f0c   :  { %v3756_v60 = vpop.permute.xlu1 %3755 }
0x2f0d   :  { %v7234_v61 = vadd.f32 %v3756_v60, %v3748_v22 }
0x2f0f   :  { %6118 = vtanh.f32 %v7234_v61 }
0x2f19   :  { %v6119_v4 = vpop.eup %6118 }
0x2f1a   :  { %3761 = vrot.lane.b32.xlu1 %v6119_v4, %s6195_s21 }
0x2f8c   :  { %v3762_v1 = vpop.permute.xlu1 %3761 }
0x2f8d   :  { %v3764_v7 = vmul.f32 %v6117_v58, %v3762_v1 }
0x2f8f   :  { %3836 = vrot.lane.b32.xlu0 %v3764_v7, %s6196_s5 }
0x3001   :  { %v7239_v53 = vpop.permute.xlu0 %3836 }
0x3002   :  { %5442 = vmatmul.mubr.msk.f32.vlgmr.msra.gmra.mrb[52].mxu1 %vm80_vm1, %v7239_v53 }
0x3003   :  { %5854 = vmatpush3.bf16.msra.mxu1 %v6871_v11  ;;  %5452 = vmatprep.mubr.msk.f32.mxu1 %vm6194_vm0, %v6193_v8 }
0x3004   :  { %5855 = vmatprep.subr.bf16.mxu1 %v6192_v3 }
0x3007   :  { %5857 = vmatpush3.bf16.msra.mxu1 %v6877_v14 }
0x30d5   :  { %v3906_v20 = vpop.f32.mrb[52].mxu1 }
0x30d6   :  { %v3907_v10 = vadd.f32 %v3906_v20, %v3831_v63  ;;  %v5443_v12 = vpop.f32.mrb[53].mxu1 }
0x30d8   :  { %v3910_v15 = vadd.f32 %v6854_v54, %v3907_v10 }
0x30da   :  { %6120 = vtanh.f32 %v3910_v15  ;;  %v4564_v18 = vmul.f32 -1.442695, %v3910_v15 }
0x30dc   :  { %6122 = vpow2.f32 %v4564_v18 }
0x30e4   :  { %v6121_v17 = vpop.eup %6120 }
0x30e5   :  { %3920 = vrot.lane.b32.xlu1 %v6121_v17, %s6195_s21 }
0x30e6   :  { %v6123_v21 = vpop.eup %6122 }
0x30e7   :  { %v3914_v23 = vadd.f32 1.0, %v6123_v21 }
0x30e9   :  { %6124 = vrcp.f32 %v3914_v23 }
0x30f3   :  { %v6125_v24 = vpop.eup %6124 }
0x30f4   :  { %v3918_v5 = vmul.f32 %v6125_v24, %v7129_v47  ;;  %v4567_v47 = vld [vmem:[%s7378_s2 + $0x20] sm:$0xff]  }
0x30f5   :  { %v6187_v45 = vmov %v4567_v47  }
0x3157   :  { %v3921_v25 = vpop.permute.xlu1 %3920 }
0x3158   :  { %v3923_v26 = vmul.f32 %v6125_v24, %v3921_v25 }
0x315a   :  { %3925 = vrot.lane.b32.xlu0 %v3923_v26, %s6195_s21 }
0x31cc   :  { %v3926_v28 = vpop.permute.xlu0 %3925 }
0x31cd   :  { %v7252_v29 = vadd.f32 %v3926_v28, %v3918_v5 }
0x31cf   :  { %6126 = vtanh.f32 %v7252_v29 }
0x31d9   :  { %v6127_v27 = vpop.eup %6126 }
0x31da   :  { %3931 = vrot.lane.b32.xlu1 %v6127_v27, %s6195_s21 }
0x324c   :  { %v3932_v31 = vpop.permute.xlu1 %3931 }
0x324d   :  { %v3934_v2 = vmul.f32 %v6125_v24, %v3932_v31 }
0x324f   :  { %3936 = vrot.lane.b32.xlu0 %v3934_v2, %s6196_s5 }
0x32c1   :  { %v7257_v32 = vpop.permute.xlu0 %3936 }
0x32c2   :  { %5453 = vmatmul.mubr.msk.f32.vlgmr.msra.gmra.mrb[54].mxu1 %vm80_vm1, %v7257_v32 }
0x3392   :  { %4021 = sbr.rel (%p4015_p8) target bundleno = 13645 (0x354d), region = 105 }
0x3395   :  { %v4006_v36 = vpop.f32.mrb[54].mxu1 }
0x3396   :  { %v4007_v39 = vadd.f32 %v6893_v43, %v4006_v36  ;;  %v5454_v42 = vpop.f32.mrb[55].mxu1 }
0x3398   :  { %4566 = vst [vmem:[%s7393_s17 + $0x20] sm:$0xff] %v4007_v39  ;;  %4022 = vmax.xlane.f32.xlu0 (!%p4015_p8), %v4007_v39 }
0x3425   :  { %v4023_v9 = vpop.xlane.xlu0 %4022 }
0x3426   :  { %vm4024_vm12 = vcmp.eq.f32.partialorder %v4007_v39, %v4023_v9 }
0x3427   :  { %v4025_v30 = vsel %vm4024_vm12, %v6777_v44, 128 }
0x3428   :  { %v4027_v35 = vshra.s32 %v4025_v30, 16  ;;  %v4026_v48 = vand.u32 65535, %v4025_v30 }
0x342a   :  { %v4029_v13 = vcvt.s32.f32 %v4027_v35  ;;  %v4028_v52 = vcvt.s32.f32 %v4026_v48 }
0x342c   :  { %4030 = vmin.xlane.f32.xlu0 %v4029_v13 }
0x34b9   :  { %v4031_v49 = vpop.xlane.xlu0 %4030 }
0x34ba   :  { %vm4032_vm13 = vcmp.eq.f32.partialorder %v4029_v13, %v4031_v49  ;;  %v4037_v37 = vcvt.f32.s32 %v4031_v49 }
0x34bb   :  { %v4033_v59 = vsel %vm4032_vm13, %v4028_v52, inf }
0x34bc   :  { %4034 = vmin.xlane.f32.xlu1 %v4033_v59  ;;  %v4038_v38 = vshll.u32 %v4037_v37, 16 }
0x3549   :  { %v4035_v56 = vpop.xlane.xlu1 %4034 }
0x354a   :  { %v4036_v46 = vcvt.f32.s32 %v4035_v56 }
0x354c   :  { %v4039_v45 = vadd.s32 %v4038_v38, %v4036_v46  }
0x354d PF:  { %6128 = vset.pattern.permute.xlu0 %v6197_v6  ;;  %5864 = vmatprep.subr.bf16.mxu0 %v6192_v3  ;;  %v4047_v57 = vld [vmem:[%s7385_s9] sm:$0xff]  ;;  %v4048_v58 = vld [vmem:[%s7385_s9 + $0x8] sm:$0xff]  ;;  %v4049_v16 = vld [vmem:[%s7385_s9 + $0x10] sm:$0xff]  ;;  %v6189_v45 = vphi %v6187_v45, %v4039_v45  }
0x354e   :  { %4042 = vperm.xlu0 %6128, %v6189_v45   ;;  %v5865_v51 = vpack.c.bf16 %v4048_v58, %v4047_v57  ;;  %v4050_v6 = vld [vmem:[%s7385_s9 + $0x18] sm:$0xff]  ;;  %5858 = vmatprep.subr.bf16.mxu1 %v6192_v3  ;;  %v4051_v60 = vld [vmem:[%s7385_s9 + $0x20] sm:$0xff]  ;;  %v4052_v4 = vld [vmem:[%s7385_s9 + $0x28] sm:$0xff] }
0x354f   :  { %5860 = vmatpush3.bf16.msra.mxu1 %v6708_v19  ;;  %5463 = vmatprep.mubr.msk.f32.mxu1 %vm6194_vm0, %v6193_v8  ;;  %v5868_v22 = vpack.c.bf16 %v4050_v6, %v4049_v16  ;;  %v5871_v19 = vpack.c.bf16 %v4052_v4, %v4051_v60  ;;  %v4053_v63 = vld [vmem:[%s7385_s9 + $0x30] sm:$0xff]  ;;  %v4054_v0 = vld [vmem:[%s7385_s9 + $0x38] sm:$0xff]  ;;  %v4055_v1 = vld [vmem:[%s7385_s9 + $0x40] sm:$0xff] }
0x3550   :  { %5866 = vmatpush3.bf16.msra.mxu0 %v5865_v51  ;;  %5861 = vmatprep.subr.bf16.mxu1 %v6192_v3  ;;  %v4056_v7 = vld [vmem:[%s7385_s9 + $0x48] sm:$0xff]  ;;  %v4058_v20 = vld [vmem:[%s7385_s9 + $0x58] sm:$0xff]  ;;  %v4059_v10 = vld [vmem:[%s7385_s9 + $0x60] sm:$0xff] }
0x3551   :  { %5867 = vmatprep.subr.bf16.mxu0 %v6192_v3  ;;  %5498 = vmatprep.mubr.msk.f32.mxu0 %vm6194_vm0, %v6193_v8  ;;  %v4060_v12 = vld [vmem:[%s7385_s9 + $0x68] sm:$0xff]  ;;  %v4061_v15 = vld [vmem:[%s7385_s9 + $0x70] sm:$0xff]  ;;  %v4062_v17 = vld [vmem:[%s7385_s9 + $0x78] sm:$0xff] }
0x3552   :  { %v5886_v18 = vpack.c.bf16 %v4062_v17, %v4061_v15 }
0x3553   :  { %5863 = vmatpush3.bf16.msra.mxu1 %v6732_v41  ;;  %v5874_v41 = vpack.c.bf16 %v4054_v0, %v4053_v63 }
0x3554   :  { %5869 = vmatpush3.bf16.msra.mxu0 %v5868_v22  ;;  %5888 = vmatprep.subr.bf16.mxu1 %v6192_v3 }
0x3555   :  { %5870 = vmatprep.subr.bf16.mxu0 %v6192_v3 }
0x3556   :  { %5464 = vmatmul.mubr.msk.f32.vlgmr.msra.gmra.mrb[56].mxu1 %vm80_vm1, %v7239_v53  ;;  %v4057_v53 = vld [vmem:[%s7385_s9 + $0x50] sm:$0xff] }
0x3557   :  { %5890 = vmatpush3.bf16.msra.mxu1 %v6808_v33  ;;  %5509 = vmatprep.mubr.msk.f32.mxu1 %vm6194_vm0, %v6193_v8  ;;  %v5877_v33 = vpack.c.bf16 %v4056_v7, %v4055_v1 }
0x3558   :  { %5872 = vmatpush3.bf16.msra.mxu0 %v5871_v19  ;;  %5891 = vmatprep.subr.bf16.mxu1 %v6192_v3 }
0x3559   :  { %5873 = vmatprep.subr.bf16.mxu0 %v6192_v3 }
0x355b   :  { %5893 = vmatpush3.bf16.msra.mxu1 %v6814_v34  ;;  %v5880_v34 = vpack.c.bf16 %v4058_v20, %v4057_v53 }
0x355c   :  { %5875 = vmatpush3.bf16.msra.mxu0 %v5874_v41  ;;  %5894 = vmatprep.subr.bf16.mxu1 %v6192_v3 }
0x355d   :  { %5876 = vmatprep.subr.bf16.mxu0 %v6192_v3 }
0x355e   :  { %5510 = vmatmul.mubr.msk.f32.vlgmr.msra.gmra.mrb[58].mxu1 %vm80_vm1, %v7257_v32 }
0x355f   :  { %5896 = vmatpush3.bf16.msra.mxu1 %v6828_v40  ;;  %5520 = vmatprep.mubr.msk.f32.mxu1 %vm6194_vm0, %v6193_v8  ;;  %v5883_v40 = vpack.c.bf16 %v4060_v12, %v4059_v10 }
0x3560   :  { %5878 = vmatpush3.bf16.msra.mxu0 %v5877_v33  ;;  %5897 = vmatprep.subr.bf16.mxu1 %v6192_v3 }
0x3561   :  { %5879 = vmatprep.subr.bf16.mxu0 %v6192_v3 }
0x3563   :  { %5899 = vmatpush3.bf16.msra.mxu1 %v6838_v50 }
0x3564   :  { %5881 = vmatpush3.bf16.msra.mxu0 %v5880_v34  ;;  %5900 = vmatprep.subr.bf16.mxu1 %v6192_v3 }
0x3565   :  { %5882 = vmatprep.subr.bf16.mxu0 %v6192_v3 }
0x3568   :  { %5884 = vmatpush3.bf16.msra.mxu0 %v5883_v40 }
0x3569   :  { %5885 = vmatprep.subr.bf16.mxu0 %v6192_v3 }
0x356c   :  { %5887 = vmatpush3.bf16.msra.mxu0 %v5886_v18 }
0x35cd   :  { %v4043_v50 = vpop.permute.xlu0 %4042 }
0x35ce   :  { %vm4044_vm14 = vcmp.eq.s32.totalorder %v6777_v44, %v4043_v50 }
0x35cf   :  { %5499 = vmatmul.mubr.msk.f32.vlgmr.msra.gmra.mrb[40].mxu0 %vm4044_vm14, %v6198_v55 }
0x3629   :  { %v4129_v21 = vpop.f32.mrb[56].mxu1 }
0x362a   :  { %v5465_v23 = vpop.f32.mrb[57].mxu1 }
0x3631   :  { %v4294_v42 = vpop.f32.mrb[58].mxu1 }
0x3632   :  { %v5511_v45 = vpop.f32.mrb[59].mxu1 }
0x36a2   :  { %v4199_v24 = vpop.f32.mrb[40].mxu0 }
0x36a3   :  { %v4200_v25 = vadd.f32 %v4199_v24, %v4129_v21  ;;  %v5500_v26 = vpop.f32.mrb[41].mxu0 }
0x36a5   :  { %v4203_v5 = vadd.f32 %v6787_v62, %v4200_v25 }
0x36a7   :  { %6129 = vtanh.f32 %v4203_v5  ;;  %v4572_v27 = vmul.f32 -1.442695, %v4203_v5 }
0x36a9   :  { %6131 = vpow2.f32 %v4572_v27 }
0x36b1   :  { %v6130_v28 = vpop.eup %6129 }
0x36b2   :  { %4213 = vrot.lane.b32.xlu0 %v6130_v28, %s6195_s21 }
0x36b3   :  { %v6132_v31 = vpop.eup %6131 }
0x36b4   :  { %v4207_v2 = vadd.f32 1.0, %v6132_v31 }
0x36b6   :  { %6133 = vrcp.f32 %v4207_v2 }
0x36c0   :  { %v6134_v32 = vpop.eup %6133 }
0x36c1   :  { %v4211_v55 = vmul.f32 %v6134_v32, %v7234_v61 }
0x3724   :  { %v4214_v44 = vpop.permute.xlu0 %4213 }
0x3725   :  { %v4216_v47 = vmul.f32 %v6134_v32, %v4214_v44 }
0x3727   :  { %4218 = vrot.lane.b32.xlu1 %v4216_v47, %s6195_s21 }
0x3799   :  { %v4219_v36 = vpop.permute.xlu1 %4218 }
0x379a   :  { %v4221_v39 = vadd.f32 %v4219_v36, %v4211_v55 }
0x379c   :  { %6135 = vtanh.f32 %v4221_v39 }
0x37a6   :  { %v6136_v62 = vpop.eup %6135 }
0x37a7   :  { %4224 = vrot.lane.b32.xlu1 %v6136_v62, %s6195_s21 }
0x3819   :  { %v4225_v9 = vpop.permute.xlu1 %4224 }
0x381a   :  { %v4227_v30 = vmul.f32 %v6134_v32, %v4225_v9 }
0x381c   :  { %4299 = vrot.lane.b32.xlu0 %v4227_v30, %s6196_s5 }
0x388e   :  { %v4300_v35 = vpop.permute.xlu0 %4299 }
0x388f   :  { %5521 = vmatmul.mubr.msk.f32.vlgmr.msra.gmra.mrb[60].mxu1 %vm80_vm1, %v4300_v35 }
0x3890   :  { %5902 = vmatpush3.bf16.msra.mxu1 %v6871_v11  ;;  %5531 = vmatprep.mubr.msk.f32.mxu1 %vm6194_vm0, %v6193_v8 }
0x3891   :  { %5903 = vmatprep.subr.bf16.mxu1 %v6192_v3 }
0x3894   :  { %5905 = vmatpush3.bf16.msra.mxu1 %v6877_v14 }
0x3962   :  { %v4369_v61 = vpop.f32.mrb[60].mxu1 }
0x3963   :  { %v4370_v13 = vadd.f32 %v4369_v61, %v4294_v42  ;;  %v5522_v48 = vpop.f32.mrb[61].mxu1 }
0x3965   :  { %v4373_v49 = vadd.f32 %v6854_v54, %v4370_v13 }
0x3967   :  { %6137 = vtanh.f32 %v4373_v49  ;;  %v4575_v59 = vmul.f32 -1.442695, %v4373_v49 }
0x3969   :  { %6139 = vpow2.f32 %v4575_v59 }
0x3971   :  { %v6138_v52 = vpop.eup %6137 }
0x3972   :  { %4383 = vrot.lane.b32.xlu1 %v6138_v52, %s6195_s21 }
0x3973   :  { %v6140_v37 = vpop.eup %6139 }
0x3974   :  { %v4377_v11 = vadd.f32 1.0, %v6140_v37 }
0x3976   :  { %6141 = vrcp.f32 %v4377_v11 }
0x3980   :  { %v6142_v56 = vpop.eup %6141 }
0x3981   :  { %v4381_v3 = vmul.f32 %v6142_v56, %v7252_v29 }
0x39e4   :  { %v4384_v8 = vpop.permute.xlu1 %4383 }
0x39e5   :  { %v4386_v38 = vmul.f32 %v6142_v56, %v4384_v8 }
0x39e7   :  { %4388 = vrot.lane.b32.xlu0 %v4386_v38, %s6195_s21 }
0x3a59   :  { %v4389_v14 = vpop.permute.xlu0 %4388 }
0x3a5a   :  { %v4391_v46 = vadd.f32 %v4389_v14, %v4381_v3 }
0x3a5c   :  { %6143 = vtanh.f32 %v4391_v46 }
0x3a66   :  { %v6144_v54 = vpop.eup %6143 }
0x3a67   :  { %4394 = vrot.lane.b32.xlu1 %v6144_v54, %s6195_s21 }
0x3ad9   :  { %v4395_v57 = vpop.permute.xlu1 %4394 }
0x3ada   :  { %v4397_v58 = vmul.f32 %v6142_v56, %v4395_v57 }
0x3adc   :  { %4399 = vrot.lane.b32.xlu0 %v4397_v58, %s6196_s5 }
0x3b4e   :  { %v4400_v16 = vpop.permute.xlu0 %4399 }
0x3b4f   :  { %5532 = vmatmul.mubr.msk.f32.vlgmr.msra.gmra.mrb[62].mxu1 %vm80_vm1, %v4400_v16 }
0x3c22   :  { %v4469_v51 = vpop.f32.mrb[62].mxu1 }
0x3c23   :  { %v4470_v6 = vadd.f32 %v6893_v43, %v4469_v51  ;;  %v5533_v22 = vpop.f32.mrb[63].mxu1 }
0x3c25   :  { %4577 = vst [vmem:[%s7393_s17 + $0x28] sm:$0xff] %v4470_v6 }
0x3c26   :  { %4479 = vsyncpa [#allocation4], 1 }

</bundles_post_ra>
